<compile_context>
chip_gen: v7x
topology: tpu7x:2x2x1
jax: 0.10.0
libtpu: 0.0.40
codegen_flags: <defaults>
</compile_context>

<pallas_src>
import functools

import numpy as np
import jax
import jax.numpy as jnp
from jax.experimental import pallas as pl
from jax.experimental.pallas import tpu as pltpu


def _stage(h, w_ref, s_ref, b_ref, *, maxpool, slope):
    """One conv1d(k=3, reflect 'same') + folded-BN affine + LeakyReLU [+ maxpool2].

    h:      (NB, L, Cin) f32 activation (lives in VMEM/vregs)
    w_ref:  (3, Cin, Cout) bf16 weights
    s_ref:  (1, Cout) f32 folded BN scale, b_ref: (1, Cout) f32 folded BN bias
    returns (NB, L//2 if maxpool else L, Cout) f32
    """
    NB, L, Cin = h.shape
    Cout = w_ref.shape[2]

    # In-kernel ReflectionPad1d((1,1)) along L: [x1, x0..x_{L-1}, x_{L-2}].
    hp = jnp.concatenate([h[:, 1:2, :], h, h[:, L - 2:L - 1, :]], axis=1)
    hp = hp.astype(jnp.bfloat16)                       # bf16 MXU operands

    acc = jnp.zeros((NB * L, Cout), jnp.float32)
    for k in range(3):                                 # 3 shifted matmuls (MXU)
        xk = hp[:, k:k + L, :].reshape(NB * L, Cin)
        acc = acc + jnp.dot(xk, w_ref[k], preferred_element_type=jnp.float32)

    y = acc * s_ref[...] + b_ref[...]                  # folded BN + conv bias (f32)
    y = jnp.where(y >= 0.0, y, slope * y)              # LeakyReLU(0.01), f32 VPU

    y = y.reshape(NB, L, Cout)
    if maxpool:                                        # MaxPool1d(kernel=2, stride=2), floor
        L2 = L // 2
        y = y[:, :2 * L2, :].reshape(NB * L2, 2, Cout)
        y = jnp.max(y, axis=1).reshape(NB, L2, Cout)
    return y


def _fused_kernel(x_ref,
                  w1_ref, s1_ref, b1_ref,
                  w2_ref, s2_ref, b2_ref,
                  w3_ref, s3_ref, b3_ref,
                  w4_ref, s4_ref, b4_ref,
                  o_ref, *, slope):
    """Whole DownSamplingConvBlock for NB batch elements; intermediates stay in VMEM."""
    h = x_ref[...].astype(jnp.float32)                                   # (NB, W, 5)
    h = _stage(h, w1_ref, s1_ref, b1_ref, maxpool=False, slope=slope)    # (NB, W,   256)
    h = _stage(h, w2_ref, s2_ref, b2_ref, maxpool=True,  slope=slope)    # (NB, W/2, 512)
    h = _stage(h, w3_ref, s3_ref, b3_ref, maxpool=False, slope=slope)    # (NB, W/2, 512)
    h = _stage(h, w4_ref, s4_ref, b4_ref, maxpool=True,  slope=slope)    # (NB, W/4, 256)
    o_ref[...] = h.astype(o_ref.dtype)


def _pick_batch_block(N, W):
    """Batch elements per grid step: grow MXU M (= nb*W), keep >=2 grid steps
    when N >= 2 (v7x megacore), cap per-block rows to bound VMEM (nb*W <= 2048)."""
    target = max(1, -(-256 // max(W, 1)))    # ceil(256 / W)
    cap = max(1, 2048 // max(W, 1))
    nb = max(1, min(N, target, cap))
    if N >= 2:
        nb = min(nb, max(1, N // 2))
    while N % nb:                            # require nb | N
        nb -= 1
    return nb


def _vmem_limit_bytes(nb, W):
    f32, bf16 = 4, 2
    wout = (W // 2) // 2
    io = 2 * (nb * W * 5 * f32 + nb * max(wout, 1) * 256 * f32)            # dbl-buffered I/O
    wts = 2 * bf16 * (3 * 5 * 256 + 3 * 256 * 512 + 3 * 512 * 512 + 3 * 512 * 256)
    sb = 2 * f32 * 2 * (256 + 512 + 512 + 256)
    inter = 2 * nb * (W + 2) * 512 * (bf16 + 2 * f32)                      # padded + acc + out
    est = io + wts + sb + inter
    return int(min(64 * 2 ** 20, max(32 * 2 ** 20, 2 * est)))              # cap for v7x VMEM


def downsampling_conv_block(x_nchw, stages):
    """x_nchw: (N, 1, 5, W) PyTorch NCHW input.  Returns (N, 256, W//4)."""
    N, C, H, W = x_nchw.shape
    assert C == 1 and H == 5 and W >= 4
    x = jnp.transpose(x_nchw[:, 0, :, :], (0, 2, 1))   # (N, W, 5): rows -> channels on lanes
    wout = (W // 2) // 2
    nb = _pick_batch_block(N, W)
    grid = (N // nb,)

    flat_args = [x]
    in_specs = [pl.BlockSpec((nb, W, 5), lambda b: (b, 0, 0))]
    for (w, s, bias) in stages:
        flat_args += [w, s, bias]
        in_specs += [
            pl.BlockSpec(w.shape, lambda b: (0, 0, 0)),     # weights resident (constant map)
            pl.BlockSpec(s.shape, lambda b: (0, 0)),
            pl.BlockSpec(bias.shape, lambda b: (0, 0)),
        ]

    kernel = functools.partial(_fused_kernel, slope=0.01)
    out = pl.pallas_call(
        kernel,
        out_shape=jax.ShapeDtypeStruct((N, wout, 256), jnp.float32),
        grid=grid,
        in_specs=in_specs,
        out_specs=pl.BlockSpec((nb, wout, 256), lambda b: (b, 0, 0)),
        compiler_params=pltpu.CompilerParams(
            dimension_semantics=("parallel",),
            vmem_limit_bytes=_vmem_limit_bytes(nb, W),
        ),
    )(*flat_args)
    return jnp.transpose(out, (0, 2, 1))                # (N, 256, W//4) like PyTorch NCL


def _fold_bn(conv_b, gamma, beta, mean, var, eps=1e-5):
    s = gamma / jnp.sqrt(var + eps)
    return s, (conv_b - mean) * s + beta


def init_params(seed=0):
    key = jax.random.PRNGKey(seed)
    keys = iter(jax.random.split(key, 40))

    def conv(cin, cout, k=3, fan_in=None):
        fan_in = cin * k if fan_in is None else fan_in
        bound = 1.0 / np.sqrt(fan_in)
        w = jax.random.uniform(next(keys), (k, cin, cout), jnp.float32, -bound, bound)
        b = jax.random.uniform(next(keys), (cout,), jnp.float32, -bound, bound)
        return w, b

    def bn(c):
        gamma = 1.0 + 0.1 * jax.random.normal(next(keys), (c,), jnp.float32)
        beta = 0.1 * jax.random.normal(next(keys), (c,), jnp.float32)
        mean = 0.1 * jax.random.normal(next(keys), (c,), jnp.float32)
        var = jnp.abs(1.0 + 0.1 * jax.random.normal(next(keys), (c,), jnp.float32))
        return gamma, beta, mean, var

    # Stage 1: Conv2d(1,256,(5,3)) == conv1d over width with Cin=5 (height rows);
    # PyTorch fan_in = 1*5*3 = 15.
    w1, b1 = conv(5, 256, fan_in=15)
    w2, b2 = conv(256, 512)
    w3, b3 = conv(512, 512)
    w4, b4 = conv(512, 256)

    stages = []
    for (w, b, c) in [(w1, b1, 256), (w2, b2, 512), (w3, b3, 512), (w4, b4, 256)]:
        gamma, beta, mean, var = bn(c)
        scale, bias = _fold_bn(b, gamma, beta, mean, var)
        stages.append((jnp.asarray(w, jnp.bfloat16),          # bf16 MXU weights
                       jnp.asarray(scale, jnp.float32).reshape(1, c),
                       jnp.asarray(bias, jnp.float32).reshape(1, c)))
    return stages


if __name__ == "__main__":
    key = jax.random.PRNGKey(0)
    x = jax.random.normal(key, (2, 1, 5, 16), jnp.float32)   # (N=2, C=1, H=5, W=16)
    stages = init_params(seed=0)
    out = downsampling_conv_block(x, stages)
    out = jax.block_until_ready(out)
    assert out.shape == (2, 256, 4), out.shape
    assert bool(jnp.all(jnp.isfinite(out)))
    print("KERNEL_OK")
</pallas_src>

<mosaic_0001>
module attributes {stable_mosaic.version = 11 : i64} {
  func.func @_fused_kernel(%arg0: i32, %arg1: memref<1x16x5xf32, #tpu.memory_space<vmem>>, %arg2: memref<3x5x256xbf16, #tpu.memory_space<vmem>>, %arg3: memref<1x256xf32, #tpu.memory_space<vmem>>, %arg4: memref<1x256xf32, #tpu.memory_space<vmem>>, %arg5: memref<3x256x512xbf16, #tpu.memory_space<vmem>>, %arg6: memref<1x512xf32, #tpu.memory_space<vmem>>, %arg7: memref<1x512xf32, #tpu.memory_space<vmem>>, %arg8: memref<3x512x512xbf16, #tpu.memory_space<vmem>>, %arg9: memref<1x512xf32, #tpu.memory_space<vmem>>, %arg10: memref<1x512xf32, #tpu.memory_space<vmem>>, %arg11: memref<3x512x256xbf16, #tpu.memory_space<vmem>>, %arg12: memref<1x256xf32, #tpu.memory_space<vmem>>, %arg13: memref<1x256xf32, #tpu.memory_space<vmem>>, %arg14: memref<1x4x256xf32, #tpu.memory_space<vmem>>) attributes {dimension_semantics = [#tpu.dimension_semantics<parallel>], iteration_bounds = array<i64: 2>, scalar_prefetch = 0 : i64, scratch_operands = 0 : i64, tpu.core_type = #tpu.core_type<tc>, window_params = [{transform_indices = @transform_0, window_bounds = array<i64: 1, 16, 5>}, {pipeline_mode = #tpu.pipeline_mode<synchronous>, transform_indices = @transform_1, window_bounds = array<i64: 3, 5, 256>}, {pipeline_mode = #tpu.pipeline_mode<synchronous>, transform_indices = @transform_2, window_bounds = array<i64: 1, 256>}, {pipeline_mode = #tpu.pipeline_mode<synchronous>, transform_indices = @transform_3, window_bounds = array<i64: 1, 256>}, {pipeline_mode = #tpu.pipeline_mode<synchronous>, transform_indices = @transform_4, window_bounds = array<i64: 3, 256, 512>}, {pipeline_mode = #tpu.pipeline_mode<synchronous>, transform_indices = @transform_5, window_bounds = array<i64: 1, 512>}, {pipeline_mode = #tpu.pipeline_mode<synchronous>, transform_indices = @transform_6, window_bounds = array<i64: 1, 512>}, {pipeline_mode = #tpu.pipeline_mode<synchronous>, transform_indices = @transform_7, window_bounds = array<i64: 3, 512, 512>}, {pipeline_mode = #tpu.pipeline_mode<synchronous>, transform_indices = @transform_8, window_bounds = array<i64: 1, 512>}, {pipeline_mode = #tpu.pipeline_mode<synchronous>, transform_indices = @transform_9, window_bounds = array<i64: 1, 512>}, {pipeline_mode = #tpu.pipeline_mode<synchronous>, transform_indices = @transform_10, window_bounds = array<i64: 3, 512, 256>}, {pipeline_mode = #tpu.pipeline_mode<synchronous>, transform_indices = @transform_11, window_bounds = array<i64: 1, 256>}, {pipeline_mode = #tpu.pipeline_mode<synchronous>, transform_indices = @transform_12, window_bounds = array<i64: 1, 256>}, {transform_indices = @transform_13, window_bounds = array<i64: 1, 4, 256>}]} {
    %c0 = arith.constant 0 : index
    %c0_0 = arith.constant 0 : index
    %c0_1 = arith.constant 0 : index
    %0 = vector.load %arg1[%c0, %c0_0, %c0_1] : memref<1x16x5xf32, #tpu.memory_space<vmem>>, vector<1x16x5xf32>
    %1 = vector.extract_strided_slice %0 {offsets = [0, 1, 0], sizes = [1, 1, 5], strides = [1, 1, 1]} : vector<1x16x5xf32> to vector<1x1x5xf32>
    %2 = vector.extract_strided_slice %0 {offsets = [0, 14, 0], sizes = [1, 1, 5], strides = [1, 1, 1]} : vector<1x16x5xf32> to vector<1x1x5xf32>
    %3 = tpu.concatenate %1, %0, %2 in 1 : vector<1x1x5xf32>, vector<1x16x5xf32>, vector<1x1x5xf32> -> vector<1x18x5xf32>
    %4 = arith.truncf %3 : vector<1x18x5xf32> to vector<1x18x5xbf16>
    %cst = arith.constant 0.000000e+00 : f32
    %5 = vector.broadcast %cst : f32 to vector<16x256xf32>
    %6 = vector.extract_strided_slice %4 {offsets = [0, 0, 0], sizes = [1, 16, 5], strides = [1, 1, 1]} : vector<1x18x5xbf16> to vector<1x16x5xbf16>
    %7 = vector.shape_cast %6 : vector<1x16x5xbf16> to vector<16x5xbf16>
    %c0_2 = arith.constant 0 : index
    %c0_3 = arith.constant 0 : index
    %c0_4 = arith.constant 0 : index
    %8 = vector.load %arg2[%c0_2, %c0_3, %c0_4] : memref<3x5x256xbf16, #tpu.memory_space<vmem>>, vector<1x5x256xbf16>
    %9 = vector.shape_cast %8 : vector<1x5x256xbf16> to vector<5x256xbf16>
    %cst_5 = arith.constant dense<0.000000e+00> : vector<16x256xf32>
    %10 = tpu.matmul %7, %9, %cst_5 {dimension_numbers = #tpu.dot_dimension_numbers<[1], [0], [0], [1], [0, 0, 1, 1], [], []>} : vector<16x5xbf16>, vector<5x256xbf16>, vector<16x256xf32> -> vector<16x256xf32>
    %11 = arith.addf %5, %10 : vector<16x256xf32>
    %12 = vector.extract_strided_slice %4 {offsets = [0, 1, 0], sizes = [1, 16, 5], strides = [1, 1, 1]} : vector<1x18x5xbf16> to vector<1x16x5xbf16>
    %13 = vector.shape_cast %12 : vector<1x16x5xbf16> to vector<16x5xbf16>
    %c1 = arith.constant 1 : index
    %c0_6 = arith.constant 0 : index
    %c0_7 = arith.constant 0 : index
    %14 = vector.load %arg2[%c1, %c0_6, %c0_7] : memref<3x5x256xbf16, #tpu.memory_space<vmem>>, vector<1x5x256xbf16>
    %15 = vector.shape_cast %14 : vector<1x5x256xbf16> to vector<5x256xbf16>
    %cst_8 = arith.constant dense<0.000000e+00> : vector<16x256xf32>
    %16 = tpu.matmul %13, %15, %cst_8 {dimension_numbers = #tpu.dot_dimension_numbers<[1], [0], [0], [1], [0, 0, 1, 1], [], []>} : vector<16x5xbf16>, vector<5x256xbf16>, vector<16x256xf32> -> vector<16x256xf32>
    %17 = arith.addf %11, %16 : vector<16x256xf32>
    %18 = vector.extract_strided_slice %4 {offsets = [0, 2, 0], sizes = [1, 16, 5], strides = [1, 1, 1]} : vector<1x18x5xbf16> to vector<1x16x5xbf16>
    %19 = vector.shape_cast %18 : vector<1x16x5xbf16> to vector<16x5xbf16>
    %c2 = arith.constant 2 : index
    %c0_9 = arith.constant 0 : index
    %c0_10 = arith.constant 0 : index
    %20 = vector.load %arg2[%c2, %c0_9, %c0_10] : memref<3x5x256xbf16, #tpu.memory_space<vmem>>, vector<1x5x256xbf16>
    %21 = vector.shape_cast %20 : vector<1x5x256xbf16> to vector<5x256xbf16>
    %cst_11 = arith.constant dense<0.000000e+00> : vector<16x256xf32>
    %22 = tpu.matmul %19, %21, %cst_11 {dimension_numbers = #tpu.dot_dimension_numbers<[1], [0], [0], [1], [0, 0, 1, 1], [], []>} : vector<16x5xbf16>, vector<5x256xbf16>, vector<16x256xf32> -> vector<16x256xf32>
    %23 = arith.addf %17, %22 : vector<16x256xf32>
    %c0_12 = arith.constant 0 : index
    %c0_13 = arith.constant 0 : index
    %24 = vector.load %arg3[%c0_12, %c0_13] : memref<1x256xf32, #tpu.memory_space<vmem>>, vector<1x256xf32>
    %25 = vector.broadcast %24 : vector<1x256xf32> to vector<16x256xf32>
    %26 = arith.mulf %23, %25 : vector<16x256xf32>
    %c0_14 = arith.constant 0 : index
    %c0_15 = arith.constant 0 : index
    %27 = vector.load %arg4[%c0_14, %c0_15] : memref<1x256xf32, #tpu.memory_space<vmem>>, vector<1x256xf32>
    %28 = vector.broadcast %27 : vector<1x256xf32> to vector<16x256xf32>
    %29 = arith.addf %26, %28 : vector<16x256xf32>
    %cst_16 = arith.constant 0.000000e+00 : f32
    %30 = vector.broadcast %cst_16 : f32 to vector<16x256xf32>
    %31 = arith.cmpf oge, %29, %30 : vector<16x256xf32>
    %cst_17 = arith.constant 0.00999999977 : f32
    %32 = vector.broadcast %cst_17 : f32 to vector<16x256xf32>
    %33 = arith.mulf %32, %29 : vector<16x256xf32>
    %34 = arith.select %31, %29, %33 : vector<16x256xi1>, vector<16x256xf32>
    %35 = vector.shape_cast %34 : vector<16x256xf32> to vector<1x16x256xf32>
    %36 = vector.extract_strided_slice %35 {offsets = [0, 1, 0], sizes = [1, 1, 256], strides = [1, 1, 1]} : vector<1x16x256xf32> to vector<1x1x256xf32>
    %37 = vector.extract_strided_slice %35 {offsets = [0, 14, 0], sizes = [1, 1, 256], strides = [1, 1, 1]} : vector<1x16x256xf32> to vector<1x1x256xf32>
    %38 = tpu.concatenate %36, %35, %37 in 1 : vector<1x1x256xf32>, vector<1x16x256xf32>, vector<1x1x256xf32> -> vector<1x18x256xf32>
    %39 = arith.truncf %38 : vector<1x18x256xf32> to vector<1x18x256xbf16>
    %cst_18 = arith.constant 0.000000e+00 : f32
    %40 = vector.broadcast %cst_18 : f32 to vector<16x512xf32>
    %41 = vector.extract_strided_slice %39 {offsets = [0, 0, 0], sizes = [1, 16, 256], strides = [1, 1, 1]} : vector<1x18x256xbf16> to vector<1x16x256xbf16>
    %42 = vector.shape_cast %41 : vector<1x16x256xbf16> to vector<16x256xbf16>
    %c0_19 = arith.constant 0 : index
    %c0_20 = arith.constant 0 : index
    %c0_21 = arith.constant 0 : index
    %43 = vector.load %arg5[%c0_19, %c0_20, %c0_21] : memref<3x256x512xbf16, #tpu.memory_space<vmem>>, vector<1x256x512xbf16>
    %44 = vector.shape_cast %43 : vector<1x256x512xbf16> to vector<256x512xbf16>
    %cst_22 = arith.constant dense<0.000000e+00> : vector<16x512xf32>
    %45 = tpu.matmul %42, %44, %cst_22 {dimension_numbers = #tpu.dot_dimension_numbers<[1], [0], [0], [1], [0, 0, 1, 1], [], []>} : vector<16x256xbf16>, vector<256x512xbf16>, vector<16x512xf32> -> vector<16x512xf32>
    %46 = arith.addf %40, %45 : vector<16x512xf32>
    %47 = vector.extract_strided_slice %39 {offsets = [0, 1, 0], sizes = [1, 16, 256], strides = [1, 1, 1]} : vector<1x18x256xbf16> to vector<1x16x256xbf16>
    %48 = vector.shape_cast %47 : vector<1x16x256xbf16> to vector<16x256xbf16>
    %c1_23 = arith.constant 1 : index
    %c0_24 = arith.constant 0 : index
    %c0_25 = arith.constant 0 : index
    %49 = vector.load %arg5[%c1_23, %c0_24, %c0_25] : memref<3x256x512xbf16, #tpu.memory_space<vmem>>, vector<1x256x512xbf16>
    %50 = vector.shape_cast %49 : vector<1x256x512xbf16> to vector<256x512xbf16>
    %cst_26 = arith.constant dense<0.000000e+00> : vector<16x512xf32>
    %51 = tpu.matmul %48, %50, %cst_26 {dimension_numbers = #tpu.dot_dimension_numbers<[1], [0], [0], [1], [0, 0, 1, 1], [], []>} : vector<16x256xbf16>, vector<256x512xbf16>, vector<16x512xf32> -> vector<16x512xf32>
    %52 = arith.addf %46, %51 : vector<16x512xf32>
    %53 = vector.extract_strided_slice %39 {offsets = [0, 2, 0], sizes = [1, 16, 256], strides = [1, 1, 1]} : vector<1x18x256xbf16> to vector<1x16x256xbf16>
    %54 = vector.shape_cast %53 : vector<1x16x256xbf16> to vector<16x256xbf16>
    %c2_27 = arith.constant 2 : index
    %c0_28 = arith.constant 0 : index
    %c0_29 = arith.constant 0 : index
    %55 = vector.load %arg5[%c2_27, %c0_28, %c0_29] : memref<3x256x512xbf16, #tpu.memory_space<vmem>>, vector<1x256x512xbf16>
    %56 = vector.shape_cast %55 : vector<1x256x512xbf16> to vector<256x512xbf16>
    %cst_30 = arith.constant dense<0.000000e+00> : vector<16x512xf32>
    %57 = tpu.matmul %54, %56, %cst_30 {dimension_numbers = #tpu.dot_dimension_numbers<[1], [0], [0], [1], [0, 0, 1, 1], [], []>} : vector<16x256xbf16>, vector<256x512xbf16>, vector<16x512xf32> -> vector<16x512xf32>
    %58 = arith.addf %52, %57 : vector<16x512xf32>
    %c0_31 = arith.constant 0 : index
    %c0_32 = arith.constant 0 : index
    %59 = vector.load %arg6[%c0_31, %c0_32] : memref<1x512xf32, #tpu.memory_space<vmem>>, vector<1x512xf32>
    %60 = vector.broadcast %59 : vector<1x512xf32> to vector<16x512xf32>
    %61 = arith.mulf %58, %60 : vector<16x512xf32>
    %c0_33 = arith.constant 0 : index
    %c0_34 = arith.constant 0 : index
    %62 = vector.load %arg7[%c0_33, %c0_34] : memref<1x512xf32, #tpu.memory_space<vmem>>, vector<1x512xf32>
    %63 = vector.broadcast %62 : vector<1x512xf32> to vector<16x512xf32>
    %64 = arith.addf %61, %63 : vector<16x512xf32>
    %cst_35 = arith.constant 0.000000e+00 : f32
    %65 = vector.broadcast %cst_35 : f32 to vector<16x512xf32>
    %66 = arith.cmpf oge, %64, %65 : vector<16x512xf32>
    %cst_36 = arith.constant 0.00999999977 : f32
    %67 = vector.broadcast %cst_36 : f32 to vector<16x512xf32>
    %68 = arith.mulf %67, %64 : vector<16x512xf32>
    %69 = arith.select %66, %64, %68 : vector<16x512xi1>, vector<16x512xf32>
    %70 = vector.shape_cast %69 : vector<16x512xf32> to vector<1x16x512xf32>
    %71 = vector.shape_cast %70 : vector<1x16x512xf32> to vector<8x2x512xf32>
    %cst_37 = arith.constant dense<0xFF800000> : vector<8x512xf32>
    %72 = vector.multi_reduction <maximumf>, %71, %cst_37 [1] : vector<8x2x512xf32> to vector<8x512xf32>
    %73 = vector.shape_cast %72 : vector<8x512xf32> to vector<1x8x512xf32>
    %74 = vector.extract_strided_slice %73 {offsets = [0, 1, 0], sizes = [1, 1, 512], strides = [1, 1, 1]} : vector<1x8x512xf32> to vector<1x1x512xf32>
    %75 = vector.extract_strided_slice %73 {offsets = [0, 6, 0], sizes = [1, 1, 512], strides = [1, 1, 1]} : vector<1x8x512xf32> to vector<1x1x512xf32>
    %76 = tpu.concatenate %74, %73, %75 in 1 : vector<1x1x512xf32>, vector<1x8x512xf32>, vector<1x1x512xf32> -> vector<1x10x512xf32>
    %77 = arith.truncf %76 : vector<1x10x512xf32> to vector<1x10x512xbf16>
    %cst_38 = arith.constant 0.000000e+00 : f32
    %78 = vector.broadcast %cst_38 : f32 to vector<8x512xf32>
    %79 = vector.extract_strided_slice %77 {offsets = [0, 0, 0], sizes = [1, 8, 512], strides = [1, 1, 1]} : vector<1x10x512xbf16> to vector<1x8x512xbf16>
    %80 = vector.shape_cast %79 : vector<1x8x512xbf16> to vector<8x512xbf16>
    %c0_39 = arith.constant 0 : index
    %c0_40 = arith.constant 0 : index
    %c0_41 = arith.constant 0 : index
    %81 = vector.load %arg8[%c0_39, %c0_40, %c0_41] : memref<3x512x512xbf16, #tpu.memory_space<vmem>>, vector<1x512x512xbf16>
    %82 = vector.shape_cast %81 : vector<1x512x512xbf16> to vector<512x512xbf16>
    %cst_42 = arith.constant dense<0.000000e+00> : vector<8x512xf32>
    %83 = tpu.matmul %80, %82, %cst_42 {dimension_numbers = #tpu.dot_dimension_numbers<[1], [0], [0], [1], [0, 0, 1, 1], [], []>} : vector<8x512xbf16>, vector<512x512xbf16>, vector<8x512xf32> -> vector<8x512xf32>
    %84 = arith.addf %78, %83 : vector<8x512xf32>
    %85 = vector.extract_strided_slice %77 {offsets = [0, 1, 0], sizes = [1, 8, 512], strides = [1, 1, 1]} : vector<1x10x512xbf16> to vector<1x8x512xbf16>
    %86 = vector.shape_cast %85 : vector<1x8x512xbf16> to vector<8x512xbf16>
    %c1_43 = arith.constant 1 : index
    %c0_44 = arith.constant 0 : index
    %c0_45 = arith.constant 0 : index
    %87 = vector.load %arg8[%c1_43, %c0_44, %c0_45] : memref<3x512x512xbf16, #tpu.memory_space<vmem>>, vector<1x512x512xbf16>
    %88 = vector.shape_cast %87 : vector<1x512x512xbf16> to vector<512x512xbf16>
    %cst_46 = arith.constant dense<0.000000e+00> : vector<8x512xf32>
    %89 = tpu.matmul %86, %88, %cst_46 {dimension_numbers = #tpu.dot_dimension_numbers<[1], [0], [0], [1], [0, 0, 1, 1], [], []>} : vector<8x512xbf16>, vector<512x512xbf16>, vector<8x512xf32> -> vector<8x512xf32>
    %90 = arith.addf %84, %89 : vector<8x512xf32>
    %91 = vector.extract_strided_slice %77 {offsets = [0, 2, 0], sizes = [1, 8, 512], strides = [1, 1, 1]} : vector<1x10x512xbf16> to vector<1x8x512xbf16>
    %92 = vector.shape_cast %91 : vector<1x8x512xbf16> to vector<8x512xbf16>
    %c2_47 = arith.constant 2 : index
    %c0_48 = arith.constant 0 : index
    %c0_49 = arith.constant 0 : index
    %93 = vector.load %arg8[%c2_47, %c0_48, %c0_49] : memref<3x512x512xbf16, #tpu.memory_space<vmem>>, vector<1x512x512xbf16>
    %94 = vector.shape_cast %93 : vector<1x512x512xbf16> to vector<512x512xbf16>
    %cst_50 = arith.constant dense<0.000000e+00> : vector<8x512xf32>
    %95 = tpu.matmul %92, %94, %cst_50 {dimension_numbers = #tpu.dot_dimension_numbers<[1], [0], [0], [1], [0, 0, 1, 1], [], []>} : vector<8x512xbf16>, vector<512x512xbf16>, vector<8x512xf32> -> vector<8x512xf32>
    %96 = arith.addf %90, %95 : vector<8x512xf32>
    %c0_51 = arith.constant 0 : index
    %c0_52 = arith.constant 0 : index
    %97 = vector.load %arg9[%c0_51, %c0_52] : memref<1x512xf32, #tpu.memory_space<vmem>>, vector<1x512xf32>
    %98 = vector.broadcast %97 : vector<1x512xf32> to vector<8x512xf32>
    %99 = arith.mulf %96, %98 : vector<8x512xf32>
    %c0_53 = arith.constant 0 : index
    %c0_54 = arith.constant 0 : index
    %100 = vector.load %arg10[%c0_53, %c0_54] : memref<1x512xf32, #tpu.memory_space<vmem>>, vector<1x512xf32>
    %101 = vector.broadcast %100 : vector<1x512xf32> to vector<8x512xf32>
    %102 = arith.addf %99, %101 : vector<8x512xf32>
    %cst_55 = arith.constant 0.000000e+00 : f32
    %103 = vector.broadcast %cst_55 : f32 to vector<8x512xf32>
    %104 = arith.cmpf oge, %102, %103 : vector<8x512xf32>
    %cst_56 = arith.constant 0.00999999977 : f32
    %105 = vector.broadcast %cst_56 : f32 to vector<8x512xf32>
    %106 = arith.mulf %105, %102 : vector<8x512xf32>
    %107 = arith.select %104, %102, %106 : vector<8x512xi1>, vector<8x512xf32>
    %108 = vector.shape_cast %107 : vector<8x512xf32> to vector<1x8x512xf32>
    %109 = vector.extract_strided_slice %108 {offsets = [0, 1, 0], sizes = [1, 1, 512], strides = [1, 1, 1]} : vector<1x8x512xf32> to vector<1x1x512xf32>
    %110 = vector.extract_strided_slice %108 {offsets = [0, 6, 0], sizes = [1, 1, 512], strides = [1, 1, 1]} : vector<1x8x512xf32> to vector<1x1x512xf32>
    %111 = tpu.concatenate %109, %108, %110 in 1 : vector<1x1x512xf32>, vector<1x8x512xf32>, vector<1x1x512xf32> -> vector<1x10x512xf32>
    %112 = arith.truncf %111 : vector<1x10x512xf32> to vector<1x10x512xbf16>
    %cst_57 = arith.constant 0.000000e+00 : f32
    %113 = vector.broadcast %cst_57 : f32 to vector<8x256xf32>
    %114 = vector.extract_strided_slice %112 {offsets = [0, 0, 0], sizes = [1, 8, 512], strides = [1, 1, 1]} : vector<1x10x512xbf16> to vector<1x8x512xbf16>
    %115 = vector.shape_cast %114 : vector<1x8x512xbf16> to vector<8x512xbf16>
    %c0_58 = arith.constant 0 : index
    %c0_59 = arith.constant 0 : index
    %c0_60 = arith.constant 0 : index
    %116 = vector.load %arg11[%c0_58, %c0_59, %c0_60] : memref<3x512x256xbf16, #tpu.memory_space<vmem>>, vector<1x512x256xbf16>
    %117 = vector.shape_cast %116 : vector<1x512x256xbf16> to vector<512x256xbf16>
    %cst_61 = arith.constant dense<0.000000e+00> : vector<8x256xf32>
    %118 = tpu.matmul %115, %117, %cst_61 {dimension_numbers = #tpu.dot_dimension_numbers<[1], [0], [0], [1], [0, 0, 1, 1], [], []>} : vector<8x512xbf16>, vector<512x256xbf16>, vector<8x256xf32> -> vector<8x256xf32>
    %119 = arith.addf %113, %118 : vector<8x256xf32>
    %120 = vector.extract_strided_slice %112 {offsets = [0, 1, 0], sizes = [1, 8, 512], strides = [1, 1, 1]} : vector<1x10x512xbf16> to vector<1x8x512xbf16>
    %121 = vector.shape_cast %120 : vector<1x8x512xbf16> to vector<8x512xbf16>
    %c1_62 = arith.constant 1 : index
    %c0_63 = arith.constant 0 : index
    %c0_64 = arith.constant 0 : index
    %122 = vector.load %arg11[%c1_62, %c0_63, %c0_64] : memref<3x512x256xbf16, #tpu.memory_space<vmem>>, vector<1x512x256xbf16>
    %123 = vector.shape_cast %122 : vector<1x512x256xbf16> to vector<512x256xbf16>
    %cst_65 = arith.constant dense<0.000000e+00> : vector<8x256xf32>
    %124 = tpu.matmul %121, %123, %cst_65 {dimension_numbers = #tpu.dot_dimension_numbers<[1], [0], [0], [1], [0, 0, 1, 1], [], []>} : vector<8x512xbf16>, vector<512x256xbf16>, vector<8x256xf32> -> vector<8x256xf32>
    %125 = arith.addf %119, %124 : vector<8x256xf32>
    %126 = vector.extract_strided_slice %112 {offsets = [0, 2, 0], sizes = [1, 8, 512], strides = [1, 1, 1]} : vector<1x10x512xbf16> to vector<1x8x512xbf16>
    %127 = vector.shape_cast %126 : vector<1x8x512xbf16> to vector<8x512xbf16>
    %c2_66 = arith.constant 2 : index
    %c0_67 = arith.constant 0 : index
    %c0_68 = arith.constant 0 : index
    %128 = vector.load %arg11[%c2_66, %c0_67, %c0_68] : memref<3x512x256xbf16, #tpu.memory_space<vmem>>, vector<1x512x256xbf16>
    %129 = vector.shape_cast %128 : vector<1x512x256xbf16> to vector<512x256xbf16>
    %cst_69 = arith.constant dense<0.000000e+00> : vector<8x256xf32>
    %130 = tpu.matmul %127, %129, %cst_69 {dimension_numbers = #tpu.dot_dimension_numbers<[1], [0], [0], [1], [0, 0, 1, 1], [], []>} : vector<8x512xbf16>, vector<512x256xbf16>, vector<8x256xf32> -> vector<8x256xf32>
    %131 = arith.addf %125, %130 : vector<8x256xf32>
    %c0_70 = arith.constant 0 : index
    %c0_71 = arith.constant 0 : index
    %132 = vector.load %arg12[%c0_70, %c0_71] : memref<1x256xf32, #tpu.memory_space<vmem>>, vector<1x256xf32>
    %133 = vector.broadcast %132 : vector<1x256xf32> to vector<8x256xf32>
    %134 = arith.mulf %131, %133 : vector<8x256xf32>
    %c0_72 = arith.constant 0 : index
    %c0_73 = arith.constant 0 : index
    %135 = vector.load %arg13[%c0_72, %c0_73] : memref<1x256xf32, #tpu.memory_space<vmem>>, vector<1x256xf32>
    %136 = vector.broadcast %135 : vector<1x256xf32> to vector<8x256xf32>
    %137 = arith.addf %134, %136 : vector<8x256xf32>
    %cst_74 = arith.constant 0.000000e+00 : f32
    %138 = vector.broadcast %cst_74 : f32 to vector<8x256xf32>
    %139 = arith.cmpf oge, %137, %138 : vector<8x256xf32>
    %cst_75 = arith.constant 0.00999999977 : f32
    %140 = vector.broadcast %cst_75 : f32 to vector<8x256xf32>
    %141 = arith.mulf %140, %137 : vector<8x256xf32>
    %142 = arith.select %139, %137, %141 : vector<8x256xi1>, vector<8x256xf32>
    %143 = vector.shape_cast %142 : vector<8x256xf32> to vector<1x8x256xf32>
    %144 = vector.shape_cast %143 : vector<1x8x256xf32> to vector<4x2x256xf32>
    %cst_76 = arith.constant dense<0xFF800000> : vector<4x256xf32>
    %145 = vector.multi_reduction <maximumf>, %144, %cst_76 [1] : vector<4x2x256xf32> to vector<4x256xf32>
    %146 = vector.shape_cast %145 : vector<4x256xf32> to vector<1x4x256xf32>
    %c0_77 = arith.constant 0 : index
    %c0_78 = arith.constant 0 : index
    %c0_79 = arith.constant 0 : index
    %147 = vector.load %arg14[%c0_77, %c0_78, %c0_79] : memref<1x4x256xf32, #tpu.memory_space<vmem>>, vector<1x4x256xf32>
    tpu.vector_store %arg14[%c0_77, %c0_78, %c0_79], %146 {strides = array<i32>} : memref<1x4x256xf32, #tpu.memory_space<vmem>>, vector<1x4x256xf32>,
    return
  }
  func.func @transform_0(%arg0: i32) -> (i32, i32, i32) {
    %c0_i32 = arith.constant 0 : i32
    %c0_i32_0 = arith.constant 0 : i32
    %c0_i32_1 = arith.constant 0 : i32
    return %arg0, %c0_i32, %c0_i32_0 : i32, i32, i32
  }
  func.func @transform_1(%arg0: i32) -> (i32, i32, i32) {
    %c0_i32 = arith.constant 0 : i32
    %c0_i32_0 = arith.constant 0 : i32
    %c0_i32_1 = arith.constant 0 : i32
    %c0_i32_2 = arith.constant 0 : i32
    return %c0_i32, %c0_i32_0, %c0_i32_1 : i32, i32, i32
  }
  func.func @transform_2(%arg0: i32) -> (i32, i32) {
    %c0_i32 = arith.constant 0 : i32
    %c0_i32_0 = arith.constant 0 : i32
    %c0_i32_1 = arith.constant 0 : i32
    return %c0_i32, %c0_i32_0 : i32, i32
  }
  func.func @transform_3(%arg0: i32) -> (i32, i32) {
    %c0_i32 = arith.constant 0 : i32
    %c0_i32_0 = arith.constant 0 : i32
    %c0_i32_1 = arith.constant 0 : i32
    return %c0_i32, %c0_i32_0 : i32, i32
  }
  func.func @transform_4(%arg0: i32) -> (i32, i32, i32) {
    %c0_i32 = arith.constant 0 : i32
    %c0_i32_0 = arith.constant 0 : i32
    %c0_i32_1 = arith.constant 0 : i32
    %c0_i32_2 = arith.constant 0 : i32
    return %c0_i32, %c0_i32_0, %c0_i32_1 : i32, i32, i32
  }
  func.func @transform_5(%arg0: i32) -> (i32, i32) {
    %c0_i32 = arith.constant 0 : i32
    %c0_i32_0 = arith.constant 0 : i32
    %c0_i32_1 = arith.constant 0 : i32
    return %c0_i32, %c0_i32_0 : i32, i32
  }
  func.func @transform_6(%arg0: i32) -> (i32, i32) {
    %c0_i32 = arith.constant 0 : i32
    %c0_i32_0 = arith.constant 0 : i32
    %c0_i32_1 = arith.constant 0 : i32
    return %c0_i32, %c0_i32_0 : i32, i32
  }
  func.func @transform_7(%arg0: i32) -> (i32, i32, i32) {
    %c0_i32 = arith.constant 0 : i32
    %c0_i32_0 = arith.constant 0 : i32
    %c0_i32_1 = arith.constant 0 : i32
    %c0_i32_2 = arith.constant 0 : i32
    return %c0_i32, %c0_i32_0, %c0_i32_1 : i32, i32, i32
  }
  func.func @transform_8(%arg0: i32) -> (i32, i32) {
    %c0_i32 = arith.constant 0 : i32
    %c0_i32_0 = arith.constant 0 : i32
    %c0_i32_1 = arith.constant 0 : i32
    return %c0_i32, %c0_i32_0 : i32, i32
  }
  func.func @transform_9(%arg0: i32) -> (i32, i32) {
    %c0_i32 = arith.constant 0 : i32
    %c0_i32_0 = arith.constant 0 : i32
    %c0_i32_1 = arith.constant 0 : i32
    return %c0_i32, %c0_i32_0 : i32, i32
  }
  func.func @transform_10(%arg0: i32) -> (i32, i32, i32) {
    %c0_i32 = arith.constant 0 : i32
    %c0_i32_0 = arith.constant 0 : i32
    %c0_i32_1 = arith.constant 0 : i32
    %c0_i32_2 = arith.constant 0 : i32
    return %c0_i32, %c0_i32_0, %c0_i32_1 : i32, i32, i32
  }
  func.func @transform_11(%arg0: i32) -> (i32, i32) {
    %c0_i32 = arith.constant 0 : i32
    %c0_i32_0 = arith.constant 0 : i32
    %c0_i32_1 = arith.constant 0 : i32
    return %c0_i32, %c0_i32_0 : i32, i32
  }
  func.func @transform_12(%arg0: i32) -> (i32, i32) {
    %c0_i32 = arith.constant 0 : i32
    %c0_i32_0 = arith.constant 0 : i32
    %c0_i32_1 = arith.constant 0 : i32
    return %c0_i32, %c0_i32_0 : i32, i32
  }
  func.func @transform_13(%arg0: i32) -> (i32, i32, i32) {
    %c0_i32 = arith.constant 0 : i32
    %c0_i32_0 = arith.constant 0 : i32
    %c0_i32_1 = arith.constant 0 : i32
    return %arg0, %c0_i32, %c0_i32_0 : i32, i32, i32
  }
}

</mosaic_0001>

<bundles_post_ra>
// kernel: tpu_custom_call.1
= control target key start
LH: loop header
LB: loop body
LE: loop exit
PB: predicated region body
PF: predicated region fallthrough
CT: control target
= control target key end

     0   :  { %s11245_s0 = inlined_call_operand.vmem [shape: f32[2,16,5], index: 0, kind: input, shape index: {}]   ;;  %s11246_s1 = inlined_call_operand.vmem [shape: bf16[3,5,256], index: 1, kind: input, shape index: {}]   ;;  %s11247_s2 = inlined_call_operand.hbm [shape: f32[1,256], index: 2, kind: input, shape index: {}]   ;;  %s11248_s3 = inlined_call_operand.hbm [shape: f32[1,256], index: 3, kind: input, shape index: {}]   ;;  %s11249_s4 = inlined_call_operand.hbm [shape: bf16[3,256,512], index: 4, kind: input, shape index: {}]   ;;  %s11250_s5 = inlined_call_operand.hbm [shape: f32[1,512], index: 5, kind: input, shape index: {}]   ;;  %s11251_s6 = inlined_call_operand.hbm [shape: f32[1,512], index: 6, kind: input, shape index: {}]   ;;  %s11252_s7 = inlined_call_operand.hbm [shape: bf16[3,512,512], index: 7, kind: input, shape index: {}]   ;;  %s11253_s8 = inlined_call_operand.hbm [shape: f32[1,512], index: 8, kind: input, shape index: {}]   ;;  %s11254_s9 = inlined_call_operand.hbm [shape: f32[1,512], index: 9, kind: input, shape index: {}]   ;;  %s11255_s10 = inlined_call_operand.hbm [shape: bf16[3,512,256], index: 10, kind: input, shape index: {}]   ;;  %s11256_s11 = inlined_call_operand.hbm [shape: f32[1,256], index: 11, kind: input, shape index: {}]   ;;  %s11257_s12 = inlined_call_operand.hbm [shape: f32[1,256], index: 12, kind: input, shape index: {}]   ;;  %s11258_s13 = inlined_call_operand.hbm [shape: f32[2,4,256], index: 13, kind: output, shape index: {}]  }
   0x1   :  { %11273 = sst [smem:[#allocation36_spill]] %s11248_s3 }
   0x2   :  { %11274 = sst [smem:[#allocation37_spill]] %s11250_s5 }
   0x3   :  { %11275 = sst [smem:[#allocation38_spill]] %s11258_s13 }
   0x4   :  { %18 = vsyncpa [#allocation3], 0 }
   0x5   :  { %19 = vsyncpa [#allocation6], 0 }
   0x6   :  { %20 = vsyncpa [#allocation9], 0 }
   0x7   :  { %21 = vsyncpa [#allocation12], 0 }
   0x8   :  { %22 = vsyncpa [#allocation15], 0 }
   0x9   :  { %23 = vsyncpa [#allocation18], 0 }
   0xa   :  { %24 = vsyncpa [#allocation4], 0 }
   0xb   :  { %26 = vsyncpa [#allocation4 + $0x1], 0  ;;  %s10436_s25 = smov 0   ;;  %s10438_s26 = smov 0  }
   0xc   :  { %s10440_s27 = smov 0   ;;  %s10442_s28 = smov 0  }
   0xd LB: > { %11276 = sst [smem:[#allocation28_spill]] %s10333_s25  ;;  %s10457_s29 = sadd.s32 4294967295, %s10345_s28   ;;  %s10345_s28 = sphi %s10442_s28, %s11312_s28   ;;  %s10341_s27 = sphi %s10440_s27, %s11315_s27   ;;  %s10337_s26 = sphi %s10438_s26, %s11314_s26   ;;  %s10333_s25 = sphi %s10436_s25, %s11313_s25  }
   0xe   : > { %11277 = sst [smem:[#allocation29_spill]] %s10337_s26  ;;  %s7729_s30 = sadd.s32 4294967294, %s10345_s28  }
   0xf   : > { %11278 = sst [smem:[#allocation30_spill]] %s10341_s27  ;;  %s10461_s14 = sadd.s32 1, %s10345_s28  }
  0x10   : > { %11279 = sst [smem:[#allocation31_spill]] %s10345_s28  ;;  %s317_s15 = sadd.s32 1, %s10341_s27 }
  0x11   : > { %11280 = sst [smem:[#allocation32_spill]] %s10461_s14  ;;  %s314_s16 = ssub.s32 %s10345_s28, %s10461_s14 }
  0x12   : > { %p327_p0 = scmp.ne.s32.totalorder %s10341_s27, %s10337_s26  ;;  %p315_p1 = scmp.eq.s32.totalorder %s314_s16, 0 }
  0x13   : > { %p328_p2 = scmp.eq.s32.totalorder %s10457_s29, 1  ;;  %p333_p3 = scmp.ne.s32.totalorder %s10337_s26, %s10333_s25 }
  0x14   : > { %p334_p4 = scmp.eq.s32.totalorder %s7729_s30, 1  ;;  %p7730_p7 = scmp.ge.s32.totalorder %s10345_s28, 1 }
  0x15   : > { %s10472_s17 = scalar_select %p315_p1, %s10341_s27, %s317_s15  }
  0x16   : > { %p10474_p5 = por %p328_p2, %p327_p0  ;;  %p10478_p6 = por %p334_p4, %p333_p3 }
  0x17   : > { %11281 = sst [smem:[#allocation33_spill]] %s10472_s17  ;;  %p341_p8 = scmp.lt.s32.totalorder %s10345_s28, 3 }
  0x18   : > { %s11282_s18 = scalar_select %p10474_p5, 1, 0 }
  0x19   : > { %s11284_s19 = scalar_select %p10478_p6, 1, 0 }
  0x1a   : > { %11283 = sst [smem:[#allocation34_spill]] %s11282_s18  ;;  %p11264_p9 = scmp.eq.s32.totalorder %s10457_s29, 0 }
  0x1b   : > { %11285 = sst [smem:[#allocation35_spill]] %s11284_s19  ;;  %p10485_p10 = pnand %p7730_p7, %p341_p8 }
  0x1c   : > { %s10347_s21 = smov [#allocation5]   ;;  %s10348_s23 = smov [#allocation8]  }
  0x1d   : > { %s11286_s20 = scalar_select %p10485_p10, 1, 0 }
  0x1e   : > { %s368_s22 = sshll.u32 %s10347_s21, 4  ;;  %p8682_p11 = pneg %p10485_p10  ;;  %s369_s22 = int_to_ptr.vmem [resolvable:$true] %s368_s22 }
  0x1f   : > { %s392_s24 = sshll.u32 %s10348_s23, 4  ;;  %s10349_s15 = smov [#allocation11]   ;;  %s10497_s24 = int_to_ptr.vmem [resolvable:$true] %s392_s24 }
  0x20   : > { %p10493_p12 = pnand %p11264_p9, %p8682_p11  ;;  %s10499_s16 = sshll.u32 %s10349_s15, 4  ;;  %s414_s16 = int_to_ptr.vmem [resolvable:$true] %s10499_s16 }
  0x21   : > { %s11288_s3 = sld [smem:[#allocation36_spill]] }
  0x22   : > { %p10509_p0 = pneg %p10493_p12 }
  0x27   : > { %s9951_s21 = scalar_lea.hbm %s11288_s3, 32 }
  0x28   : > { %p9952_p13 = scmp.ne.s32.totalorder %s11288_s3, %s9951_s21  ;;  %p9958_p3 = scmp.lt.u32.totalorder %s9951_s21, %s11288_s3 }
  0x2a   : > { %p9954_p1 = pnand %p10509_p0, %p9952_p13 }
  0x2c   : > { %p9955_p2 = pneg %p9954_p1 }
  0x2e   : > { %p9960_p4 = pnand %p9958_p3, %p9955_p2 }
  0x30   : > { %9963 = shalt.err (!%p9960_p4)
}
  0x31   : > { %s9964_s27 = scalar_lea.vmem %s369_s22, 32  ;;  %p9972_p9 = scmp.lt.s32.totalorder %s369_s22, %s369_s22 }
  0x32   : > { %p9965_p7 = scmp.ne.s32.totalorder %s369_s22, %s9964_s27  ;;  %p9973_p6 = scmp.lt.s32.totalorder %s9964_s27, %s9964_s27 }
  0x34   : > { %p9967_p8 = pnand %p9965_p7, %p10509_p0  ;;  %p9974_p5 = por %p9973_p6, %p9972_p9 }
  0x36   : > { %p9968_p11 = pneg %p9967_p8 }
  0x38   : > { %p9975_p10 = pnand %p9974_p5, %p9968_p11 }
  0x3a   : > { %9978 = shalt.err (!%p9975_p10)
}
  0x3b   : > { %8688 = dma.hbm_to_vmem [thread:$0]  (!%p10493_p12), %s11288_s3, 32, %s369_s22, [#allocation6]  }
  0x3c   : > { %s11290_s5 = sld [smem:[#allocation37_spill]] }
  0x42   : > { %s9979_s21 = scalar_lea.hbm %s11290_s5, 64 }
  0x43   : > { %p9980_p13 = scmp.ne.s32.totalorder %s11290_s5, %s9979_s21  ;;  %p9986_p5 = scmp.lt.u32.totalorder %s9979_s21, %s11290_s5 }
  0x45   : > { %p9982_p1 = pnand %p9980_p13, %p10509_p0 }
  0x47   : > { %p9983_p6 = pneg %p9982_p1 }
  0x49   : > { %p9988_p9 = pnand %p9986_p5, %p9983_p6 }
  0x4b   : > { %9991 = shalt.err (!%p9988_p9)
}
  0x4c   : > { %s9992_s22 = scalar_lea.vmem %s10497_s24, 64  ;;  %p10000_p4 = scmp.lt.s32.totalorder %s10497_s24, %s10497_s24 }
  0x4d   : > { %p9993_p10 = scmp.ne.s32.totalorder %s10497_s24, %s9992_s22  ;;  %p10001_p7 = scmp.lt.s32.totalorder %s9992_s22, %s9992_s22 }
  0x4f   : > { %p9995_p2 = pnand %p9993_p10, %p10509_p0  ;;  %p10002_p8 = por %p10001_p7, %p10000_p4 }
  0x51   : > { %p9996_p3 = pneg %p9995_p2 }
  0x53   : > { %p10003_p11 = pnand %p10002_p8, %p9996_p3 }
  0x55   : > { %10006 = shalt.err (!%p10003_p11)
}
  0x56   : > { %8694 = dma.hbm_to_vmem [thread:$0]  (!%p10493_p12), %s11290_s5, 64, %s10497_s24, [#allocation9]  }
  0x57   : > { %s10007_s25 = scalar_lea.hbm %s11252_s7, 49152 }
  0x58   : > { %p10008_p13 = scmp.ne.s32.totalorder %s11252_s7, %s10007_s25  ;;  %p10014_p5 = scmp.lt.u32.totalorder %s10007_s25, %s11252_s7 }
  0x5a   : > { %p10010_p1 = pnand %p10008_p13, %p10509_p0 }
  0x5c   : > { %p10011_p6 = pneg %p10010_p1 }
  0x5e   : > { %p10016_p9 = pnand %p10014_p5, %p10011_p6 }
  0x60   : > { %10019 = shalt.err (!%p10016_p9)
}
  0x61   : > { %s10020_s22 = scalar_lea.vmem %s414_s16, 49152  ;;  %p10028_p4 = scmp.lt.s32.totalorder %s414_s16, %s414_s16 }
  0x62   : > { %p10021_p10 = scmp.ne.s32.totalorder %s414_s16, %s10020_s22  ;;  %p10029_p7 = scmp.lt.s32.totalorder %s10020_s22, %s10020_s22 }
  0x64   : > { %p10023_p2 = pnand %p10021_p10, %p10509_p0  ;;  %p10030_p8 = por %p10029_p7, %p10028_p4 }
  0x66   : > { %p10024_p3 = pneg %p10023_p2 }
  0x68   : > { %p10031_p11 = pnand %p10030_p8, %p10024_p3 }
  0x6a   : > { %10034 = shalt.err (!%p10031_p11)
}
  0x6b   : > { %s10350_s24 = smov 256   ;;  %s10351_s13 = smov 16  }
  0x6c   : > { %8700 = dma.hbm_to_vmem [thread:$0]  (!%p10493_p12), %s11252_s7, 49152, %s414_s16, [#allocation12], %s10350_s24, %s10350_s24, %s10351_s13  }
  0x6d   : > { %s10352_s17 = smov [#allocation14]   ;;  %s10353_s19 = smov [#allocation17]  }
  0x6e   : > { %s438_s25 = sshll.u32 %s10352_s17, 4  ;;  %s462_s21 = sshll.u32 %s10353_s19, 4  ;;  %s439_s25 = int_to_ptr.vmem [resolvable:$true] %s438_s25  ;;  %s463_s21 = int_to_ptr.vmem [resolvable:$true] %s462_s21 }
  0x6f   : > { %s10035_s22 = scalar_lea.hbm %s11254_s9, 64 }
  0x70   : > { %p10036_p13 = scmp.ne.s32.totalorder %s11254_s9, %s10035_s22  ;;  %p10042_p5 = scmp.lt.u32.totalorder %s10035_s22, %s11254_s9 }
  0x72   : > { %p10038_p1 = pnand %p10036_p13, %p10509_p0 }
  0x74   : > { %p10039_p6 = pneg %p10038_p1 }
  0x76   : > { %p10044_p9 = pnand %p10042_p5, %p10039_p6 }
  0x78   : > { %10047 = shalt.err (!%p10044_p9)
}
  0x79   : > { %s10048_s16 = scalar_lea.vmem %s439_s25, 64  ;;  %p10056_p4 = scmp.lt.s32.totalorder %s439_s25, %s439_s25 }
  0x7a   : > { %p10049_p10 = scmp.ne.s32.totalorder %s439_s25, %s10048_s16  ;;  %p10057_p7 = scmp.lt.s32.totalorder %s10048_s16, %s10048_s16 }
  0x7c   : > { %p10051_p2 = pnand %p10049_p10, %p10509_p0  ;;  %p10058_p8 = por %p10057_p7, %p10056_p4 }
  0x7e   : > { %p10052_p3 = pneg %p10051_p2 }
  0x80   : > { %p10059_p11 = pnand %p10058_p8, %p10052_p3 }
  0x82   : > { %10062 = shalt.err (!%p10059_p11)
}
  0x83   : > { %8706 = dma.hbm_to_vmem [thread:$0]  (!%p10493_p12), %s11254_s9, 64, %s439_s25, [#allocation15]  }
  0x84   : > { %s10063_s28 = scalar_lea.hbm %s11256_s11, 32 }
  0x85   : > { %p10064_p13 = scmp.ne.s32.totalorder %s11256_s11, %s10063_s28  ;;  %p10070_p5 = scmp.lt.u32.totalorder %s10063_s28, %s11256_s11 }
  0x87   : > { %p10066_p1 = pnand %p10064_p13, %p10509_p0 }
  0x89   : > { %p10067_p6 = pneg %p10066_p1 }
  0x8b   : > { %p10072_p9 = pnand %p10070_p5, %p10067_p6 }
  0x8d   : > { %10075 = shalt.err (!%p10072_p9)
}
  0x8e   : > { %s10076_s27 = scalar_lea.vmem %s463_s21, 32  ;;  %p10084_p4 = scmp.lt.s32.totalorder %s463_s21, %s463_s21 }
  0x8f   : > { %p10077_p10 = scmp.ne.s32.totalorder %s463_s21, %s10076_s27  ;;  %p10085_p7 = scmp.lt.s32.totalorder %s10076_s27, %s10076_s27 }
  0x91   : > { %p10079_p2 = pnand %p10077_p10, %p10509_p0  ;;  %p10086_p8 = por %p10085_p7, %p10084_p4 }
  0x93   : > { %p10080_p3 = pneg %p10079_p2 }
  0x95   : > { %p10087_p11 = pnand %p10086_p8, %p10080_p3 }
  0x97   : > { %10090 = shalt.err (!%p10087_p11)
}
  0x98   : > { %8712 = dma.hbm_to_vmem [thread:$0]  (!%p10493_p12), %s11256_s11, 32, %s463_s21, [#allocation18]  }
  0x99   : > { %s10354_s16 = smov [#allocation2]   ;;  %s10355_s5 = smov [#allocation7]  }
  0x9a   : > { %s357_s3 = sshll.u32 %s10354_s16, 4  ;;  %s378_s26 = sshll.u32 %s10355_s5, 4  ;;  %s358_s3 = int_to_ptr.vmem [resolvable:$true] %s357_s3  ;;  %s379_s26 = int_to_ptr.vmem [resolvable:$true] %s378_s26 }
  0x9b   : > { %s10091_s14 = scalar_lea.hbm %s11247_s2, 32 }
  0x9c   : > { %p10092_p13 = scmp.ne.s32.totalorder %s11247_s2, %s10091_s14  ;;  %p10098_p5 = scmp.lt.u32.totalorder %s10091_s14, %s11247_s2 }
  0x9e   : > { %p10094_p1 = pnand %p10092_p13, %p10509_p0 }
  0xa0   : > { %p10095_p6 = pneg %p10094_p1 }
  0xa2   : > { %p10100_p9 = pnand %p10098_p5, %p10095_p6 }
  0xa4   : > { %10103 = shalt.err (!%p10100_p9)
}
  0xa5   : > { %s10104_s21 = scalar_lea.vmem %s358_s3, 32  ;;  %p10112_p4 = scmp.lt.s32.totalorder %s358_s3, %s358_s3 }
  0xa6   : > { %p10105_p10 = scmp.ne.s32.totalorder %s358_s3, %s10104_s21  ;;  %p10113_p7 = scmp.lt.s32.totalorder %s10104_s21, %s10104_s21 }
  0xa8   : > { %p10107_p2 = pnand %p10105_p10, %p10509_p0  ;;  %p10114_p8 = por %p10113_p7, %p10112_p4 }
  0xaa   : > { %p10108_p3 = pneg %p10107_p2 }
  0xac   : > { %p10115_p11 = pnand %p10114_p8, %p10108_p3 }
  0xae   : > { %10118 = shalt.err (!%p10115_p11)
}
  0xaf   : > { %8685 = dma.hbm_to_vmem [thread:$0]  (!%p10493_p12), %s11247_s2, 32, %s358_s3, [#allocation3]  }
  0xb0   : > { %s10119_s18 = scalar_lea.hbm %s11249_s4, 24576 }
  0xb1   : > { %p10120_p13 = scmp.ne.s32.totalorder %s11249_s4, %s10119_s18  ;;  %p10126_p5 = scmp.lt.u32.totalorder %s10119_s18, %s11249_s4 }
  0xb3   : > { %p10122_p1 = pnand %p10120_p13, %p10509_p0 }
  0xb5   : > { %p10123_p6 = pneg %p10122_p1 }
  0xb7   : > { %p10128_p9 = pnand %p10126_p5, %p10123_p6 }
  0xb9   : > { %10131 = shalt.err (!%p10128_p9)
}
  0xba   : > { %s10132_s15 = scalar_lea.vmem %s379_s26, 24576  ;;  %p10140_p4 = scmp.lt.s32.totalorder %s379_s26, %s379_s26 }
  0xbb   : > { %p10133_p10 = scmp.ne.s32.totalorder %s379_s26, %s10132_s15  ;;  %p10141_p7 = scmp.lt.s32.totalorder %s10132_s15, %s10132_s15 }
  0xbd   : > { %p10135_p2 = pnand %p10133_p10, %p10509_p0  ;;  %p10142_p8 = por %p10141_p7, %p10140_p4 }
  0xbf   : > { %p10136_p3 = pneg %p10135_p2 }
  0xc1   : > { %p10143_p11 = pnand %p10142_p8, %p10136_p3 }
  0xc3   : > { %10146 = shalt.err (!%p10143_p11)
}
  0xc4   : > { %8691 = dma.hbm_to_vmem [thread:$0]  (!%p10493_p12), %s11249_s4, 24576, %s379_s26, [#allocation6], %s10350_s24, %s10350_s24, %s10351_s13  }
  0xc5   : > { %s10356_s21 = smov [#allocation10]   ;;  %s10357_s22 = smov [#allocation13]  }
  0xc6   : > { %s403_s25 = sshll.u32 %s10356_s21, 4  ;;  %s427_s16 = sshll.u32 %s10357_s22, 4  ;;  %s404_s25 = int_to_ptr.vmem [resolvable:$true] %s403_s25  ;;  %s428_s16 = int_to_ptr.vmem [resolvable:$true] %s427_s16 }
  0xc7   : > { %s10147_s28 = scalar_lea.hbm %s11251_s6, 64 }
  0xc8   : > { %p10148_p13 = scmp.ne.s32.totalorder %s11251_s6, %s10147_s28  ;;  %p10154_p5 = scmp.lt.u32.totalorder %s10147_s28, %s11251_s6 }
  0xca   : > { %p10150_p1 = pnand %p10148_p13, %p10509_p0 }
  0xcc   : > { %p10151_p6 = pneg %p10150_p1 }
  0xce   : > { %p10156_p9 = pnand %p10154_p5, %p10151_p6 }
  0xd0   : > { %10159 = shalt.err (!%p10156_p9)
}
  0xd1   : > { %s10160_s24 = scalar_lea.vmem %s404_s25, 64  ;;  %p10168_p4 = scmp.lt.s32.totalorder %s404_s25, %s404_s25 }
  0xd2   : > { %p10161_p10 = scmp.ne.s32.totalorder %s404_s25, %s10160_s24  ;;  %p10169_p7 = scmp.lt.s32.totalorder %s10160_s24, %s10160_s24 }
  0xd4   : > { %p10163_p2 = pnand %p10161_p10, %p10509_p0  ;;  %p10170_p8 = por %p10169_p7, %p10168_p4 }
  0xd6   : > { %p10164_p3 = pneg %p10163_p2 }
  0xd8   : > { %p10171_p11 = pnand %p10170_p8, %p10164_p3 }
  0xda   : > { %10174 = shalt.err (!%p10171_p11)
}
  0xdb   : > { %8697 = dma.hbm_to_vmem [thread:$0]  (!%p10493_p12), %s11251_s6, 64, %s404_s25, [#allocation9]  }
  0xdc   : > { %s10175_s21 = scalar_lea.hbm %s11253_s8, 64 }
  0xdd   : > { %p10176_p13 = scmp.ne.s32.totalorder %s11253_s8, %s10175_s21  ;;  %p10182_p5 = scmp.lt.u32.totalorder %s10175_s21, %s11253_s8 }
  0xdf   : > { %p10178_p1 = pnand %p10176_p13, %p10509_p0 }
  0xe1   : > { %p10179_p6 = pneg %p10178_p1 }
  0xe3   : > { %p10184_p9 = pnand %p10182_p5, %p10179_p6 }
  0xe5   : > { %10187 = shalt.err (!%p10184_p9)
}
  0xe6   : > { %s10188_s14 = scalar_lea.vmem %s428_s16, 64  ;;  %p10196_p4 = scmp.lt.s32.totalorder %s428_s16, %s428_s16 }
  0xe7   : > { %p10189_p10 = scmp.ne.s32.totalorder %s428_s16, %s10188_s14  ;;  %p10197_p7 = scmp.lt.s32.totalorder %s10188_s14, %s10188_s14 }
  0xe9   : > { %p10191_p2 = pnand %p10189_p10, %p10509_p0  ;;  %p10198_p8 = por %p10197_p7, %p10196_p4 }
  0xeb   : > { %p10192_p3 = pneg %p10191_p2 }
  0xed   : > { %p10199_p11 = pnand %p10198_p8, %p10192_p3 }
  0xef   : > { %10202 = shalt.err (!%p10199_p11)
}
  0xf0   : > { %8703 = dma.hbm_to_vmem [thread:$0]  (!%p10493_p12), %s11253_s8, 64, %s428_s16, [#allocation12]  }
  0xf1   : > { %s10358_s19 = smov [#allocation16]   ;;  %s10203_s26 = scalar_lea.hbm %s11255_s10, 24576 }
  0xf2   : > { %s448_s15 = sshll.u32 %s10358_s19, 4  ;;  %p10204_p13 = scmp.ne.s32.totalorder %s11255_s10, %s10203_s26  ;;  %s449_s15 = int_to_ptr.vmem [resolvable:$true] %s448_s15 }
  0xf3   : > { %p10210_p5 = scmp.lt.u32.totalorder %s10203_s26, %s11255_s10 }
  0xf4   : > { %p10206_p1 = pnand %p10204_p13, %p10509_p0 }
  0xf6   : > { %p10207_p6 = pneg %p10206_p1 }
  0xf8   : > { %p10212_p9 = pnand %p10210_p5, %p10207_p6 }
  0xfa   : > { %10215 = shalt.err (!%p10212_p9)
}
  0xfb   : > { %s10216_s16 = scalar_lea.vmem %s449_s15, 24576  ;;  %p10224_p4 = scmp.lt.s32.totalorder %s449_s15, %s449_s15 }
  0xfc   : > { %p10217_p10 = scmp.ne.s32.totalorder %s449_s15, %s10216_s16  ;;  %p10225_p7 = scmp.lt.s32.totalorder %s10216_s16, %s10216_s16 }
  0xfe   : > { %p10219_p2 = pnand %p10217_p10, %p10509_p0  ;;  %p10226_p8 = por %p10225_p7, %p10224_p4 }
 0x100   : > { %p10220_p3 = pneg %p10219_p2 }
 0x102   : > { %p10227_p11 = pnand %p10226_p8, %p10220_p3 }
 0x104   : > { %10230 = shalt.err (!%p10227_p11)
}
 0x105   : > { %s10359_s5 = smov 128   ;;  %s10360_s18 = smov 8  }
 0x106   : > { %8709 = dma.hbm_to_vmem [thread:$0]  (!%p10493_p12), %s11255_s10, 24576, %s449_s15, [#allocation15], %s10359_s5, %s10359_s5, %s10360_s18  }
 0x107   : > { %s10361_s25 = smov [#allocation19]   ;;  %s10231_s13 = scalar_lea.hbm %s11257_s12, 32 }
 0x108   : > { %s473_s17 = sshll.u32 %s10361_s25, 4  ;;  %p10232_p13 = scmp.ne.s32.totalorder %s11257_s12, %s10231_s13  ;;  %s474_s17 = int_to_ptr.vmem [resolvable:$true] %s473_s17 }
 0x109   : > { %p10238_p5 = scmp.lt.u32.totalorder %s10231_s13, %s11257_s12 }
 0x10a   : > { %p10234_p1 = pnand %p10232_p13, %p10509_p0 }
 0x10c   : > { %p10235_p6 = pneg %p10234_p1 }
 0x10e   : > { %p10240_p9 = pnand %p10238_p5, %p10235_p6 }
 0x110   : > { %10243 = shalt.err (!%p10240_p9)
}
 0x111   : > { %s10244_s15 = scalar_lea.vmem %s474_s17, 32  ;;  %p10252_p4 = scmp.lt.s32.totalorder %s474_s17, %s474_s17 }
 0x112   : > { %p10245_p10 = scmp.ne.s32.totalorder %s474_s17, %s10244_s15  ;;  %p10253_p7 = scmp.lt.s32.totalorder %s10244_s15, %s10244_s15 }
 0x114   : > { %p10247_p2 = pnand %p10245_p10, %p10509_p0  ;;  %p10254_p8 = por %p10253_p7, %p10252_p4 }
 0x116   : > { %p10248_p3 = pneg %p10247_p2 }
 0x118   : > { %p10255_p11 = pnand %p10254_p8, %p10248_p3 }
 0x11a   : > { %10258 = shalt.err (!%p10255_p11)
}
 0x11b   : > { %8715 = dma.hbm_to_vmem [thread:$0]  (!%p10493_p12), %s11257_s12, 32, %s474_s17, [#allocation18]  }
 0x11c   : > { %p11291_p13 = scmp.ne.s32.totalorder %s11286_s20, 0 }
 0x11d   : > { %p11292_p1 = scmp.eq.s32.totalorder (!%p11291_p13), %s10457_s29, 0 }
 0x11e   : > { %494 = sbr.rel (%p11291_p13) target bundleno = 2336 (0x920), region = 72 }
 0x125   : > { %10304 = dma.done.wait (%p11292_p1), [#allocation3], 32   ;;  %p11293_p0 = pmov %p11292_p1 }
 0x127   : > { %10306 = vsyncadd (%p11293_p0), [#allocation3], 4294967264  ;;  %p11294_p6 = pmov %p11293_p0 }
 0x128   : > { %p11295_p5 = pmov %p11293_p0 }
 0x129   : > { %10308 = dma.done.wait (%p11294_p6), [#allocation6], 24608  }
 0x12a   : > { %10310 = vsyncadd (%p11295_p5), [#allocation6], 4294942688  ;;  %p11296_p9 = pmov %p11293_p0 }
 0x12b   : > { %p11297_p12 = pmov %p11293_p0 }
 0x12c   : > { %10312 = dma.done.wait (%p11296_p9), [#allocation9], 128  }
 0x12d   : > { %10314 = vsyncadd (%p11297_p12), [#allocation9], 4294967168  ;;  %p11298_p10 = pmov %p11293_p0 }
 0x12e   : > { %p11299_p2 = pmov %p11293_p0 }
 0x12f   : > { %10316 = dma.done.wait (%p11298_p10), [#allocation12], 49216  }
 0x130   : > { %10318 = vsyncadd (%p11299_p2), [#allocation12], 4294918080  ;;  %p11300_p3 = pmov %p11293_p0 }
 0x131   : > { %p11301_p4 = pmov %p11293_p0 }
 0x132   : > { %10320 = dma.done.wait (%p11300_p3), [#allocation15], 24640  }
 0x133   : > { %10322 = vsyncadd (%p11301_p4), [#allocation15], 4294942656  ;;  %p11302_p7 = pmov %p11293_p0 }
 0x134   : > { %p11303_p8 = pmov %p11293_p0 }
 0x135   : > { %10324 = dma.done.wait (%p11302_p7), [#allocation18], 64  }
 0x136   : > { %10326 = vsyncadd (%p11303_p8), [#allocation18], 4294967232  ;;  %vm628_vm0 = vcmask 1041408   ;;  %v10362_v0 = vmov 0   ;;  %p578_p11 = scmp.lt.s32.totalorder %s10457_s29, 1  ;;  %vm629_vm1 = vcmask 1042432  }
 0x137   : > { %726 = vmatprep.mubr.bf16.mxu0 %v10362_v0  ;;  %670 = vmatprep.mubr.bf16.mxu1 %v10362_v0  ;;  %v10363_v1 = vmov 65535   ;;  %v603_v3 = vld [vmem:[%s11246_s1] sm:$0x77]  ;;  %vm590_vm2 = vcmask 1040384   ;;  %v7765_v11 = vld [vmem:[%s11246_s1 + $0x10] sm:$0x77] }
 0x138   : > { %s579_s20 = scalar_select %p578_p11, %s10457_s29, 1  ;;  %v630_v2 = vsel %vm628_vm0, 4294967295, %v10363_v1  ;;  %v7763_v7 = vcombine.high %v603_v3, %v603_v3  ;;  %v7762_v8 = vcombine.low %v603_v3, %v603_v3  ;;  %v7758_v12 = vld [vmem:[%s11246_s1 + $0x8] sm:$0x77]  ;;  %v7766_v15 = vcombine.low %v7765_v11, %v7765_v11  ;;  %v8799_v40 = vld [vmem:[#allocation7 + $0x200] ss:$16 sps:$4 sm:$0xff]  }
 0x139   : > { %v631_v4 = vsel %vm629_vm1, %v630_v2, 0  ;;  %v7767_v16 = vcombine.high %v7765_v11, %v7765_v11  ;;  %v7760_v20 = vcombine.high %v7758_v12, %v7758_v12  ;;  %v7759_v23 = vcombine.low %v7758_v12, %v7758_v12  ;;  %v8801_v32 = vld [vmem:[#allocation7 + $0x204] ss:$16 sps:$4 sm:$0xff]   ;;  %v8802_v43 = vld [vmem:[#allocation7 + $0x220] ss:$16 sps:$4 sm:$0xff]   ;;  %s11304_s13 = sld [smem:[#allocation29_spill]] }
 0x13a   : > { %s8550_s30 = sshll.u32 %s579_s20, 4  ;;  %v692_v17 = vand.u32 %v7763_v7, %v631_v4  ;;  %v689_v18 = vand.u32 %v7762_v8, %v631_v4  ;;  %vm624_vm3 = vcmask 39936   ;;  %v754_v27 = vand.u32 %v7766_v15, %v631_v4  ;;  %v8804_v41 = vld [vmem:[#allocation7 + $0x224] ss:$16 sps:$4 sm:$0xff]   ;;  %v8805_v45 = vld [vmem:[#allocation7 + $0x240] ss:$16 sps:$4 sm:$0xff]  }
 0x13b   : > { %s582_s18 = scalar_lea.vmem %s11245_s0, %s8550_s30  ;;  %v757_v22 = vand.u32 %v7767_v16, %v631_v4  ;;  %v636_v25 = vand.u32 %v7760_v20, %v631_v4  ;;  %v633_v28 = vand.u32 %v7759_v23, %v631_v4  ;;  %vm606_vm4 = vsmask.f32 7424  ;;  %v8807_v44 = vld [vmem:[#allocation7 + $0x244] ss:$16 sps:$4 sm:$0xff]   ;;  %v8808_v47 = vld [vmem:[#allocation7 + $0x260] ss:$16 sps:$4 sm:$0xff]  }
 0x13c   : > { %v584_v5 = vld [vmem:[%s582_s18] sm:$0xff]  ;;  %v585_v6 = vld [vmem:[%s582_s18 + $0x8] sm:$0xff]  ;;  %694 = vmatprep.subr.bf16.mxu0 %v692_v17  ;;  %vm741_vm5 = vcmask 1046528   ;;  %s11305_s27 = sld [smem:[#allocation34_spill]]  ;;  %s8551_s21 = sshll.u32 %s10457_s29, 7 }
 0x13d   : > { %v587_v9 = vrot.slane %v584_v5, 1  ;;  %v591_v10 = vrot.slane %v584_v5, 7  ;;  %v592_v13 = vrot.slane %v585_v6, 7  ;;  %v597_v14 = vrot.slane %v585_v6, 5  ;;  %695 = vmatpush1.bf16.msra.mxu0 %v689_v18  ;;  %638 = vmatprep.subr.bf16.mxu1 %v636_v25  ;;  %v8810_v46 = vld [vmem:[#allocation7 + $0x264] ss:$16 sps:$4 sm:$0xff]  }
 0x13e   : > { %759 = vmatprep.subr.bf16.mxu0 %v757_v22  ;;  %639 = vmatpush1.bf16.msra.mxu1 %v633_v28  ;;  %v8813_v48 = vld [vmem:[#allocation7 + $0x284] ss:$16 sps:$4 sm:$0xff]   ;;  %v8811_v49 = vld [vmem:[#allocation7 + $0x280] ss:$16 sps:$4 sm:$0xff]   ;;  %v8849_v8 = vld [vmem:[#allocation7 + $0x20c] ss:$16 sps:$4 sm:$0xff]  }
 0x13f   : > { %v599_v19 = vsel %vm590_vm2, %v587_v9, %v591_v10  ;;  %v593_v21 = vsel %vm590_vm2, %v591_v10, %v592_v13  ;;  %v600_v26 = vsel %vm590_vm2, %v592_v13, %v597_v14  ;;  %v8816_v50 = vld [vmem:[#allocation7 + $0x2a4] ss:$16 sps:$4 sm:$0xff]   ;;  %v8814_v51 = vld [vmem:[#allocation7 + $0x2a0] ss:$16 sps:$4 sm:$0xff]   ;;  %v808_v9 = vlaneseq  ;;  %v806_v13 = vld [vmem:[#allocation2] sm:$0x3] }
 0x140   : > { %v601_v24 = vpack.c.bf16 %v593_v21, %v599_v19  ;;  %v602_v29 = vpack.c.bf16 %v600_v26, %v600_v26  ;;  %v8819_v52 = vld [vmem:[#allocation7 + $0x2c4] ss:$16 sps:$4 sm:$0xff]   ;;  %v8817_v53 = vld [vmem:[#allocation7 + $0x2c0] ss:$16 sps:$4 sm:$0xff]   ;;  %v822_v16 = vld [vmem:[#allocation5] sm:$0x3] }
 0x141   : > { %v8822_v54 = vld [vmem:[#allocation7 + $0x2e4] ss:$16 sps:$4 sm:$0xff]   ;;  %v8820_v55 = vld [vmem:[#allocation7 + $0x2e0] ss:$16 sps:$4 sm:$0xff]   ;;  %v10766_v10 = vshrl.u32 %v808_v9, 7  ;;  %s575_s26 = sand.u32 1, %s11304_s13  }
 0x142   : > { %v608_v30 = vshrl.u32 %v601_v24, 16  ;;  %v610_v31 = vshll.u32 %v601_v24, 16  ;;  %v615_v33 = vshll.u32 %v602_v29, 16  ;;  %7764 = vmatmul.mubr.msk.bf16.vlgmr.msra.gmra.mrb[0].mxu0 %vm624_vm3, %v601_v24  ;;  %v742_v38 = vrot.slane %v601_v24, 1  ;;  %v8825_v56 = vld [vmem:[#allocation7 + $0x304] ss:$16 sps:$4 sm:$0xff]  }
 0x143   : > { %760 = vmatpush1.bf16.msra.mxu0 %v754_v27  ;;  %791 = vmatprep.mubr.bf16.mxu0 %v10362_v0  ;;  %v743_v39 = vrot.slane %v602_v29, 1  ;;  %v8823_v57 = vld [vmem:[#allocation7 + $0x300] ss:$16 sps:$4 sm:$0xff]   ;;  %v8828_v58 = vld [vmem:[#allocation7 + $0x324] ss:$16 sps:$4 sm:$0xff]   ;;  %v10769_v15 = vsub.s32 0, %v10766_v10 }
 0x144   : > { %v612_v34 = vrot.slane %v610_v31, 1  ;;  %v617_v35 = vrot.slane %v615_v33, 1  ;;  %1357 = vmatprep.subr.bf16.mxu0 %v8801_v32  ;;  %v8826_v59 = vld [vmem:[#allocation7 + $0x320] ss:$16 sps:$4 sm:$0xff]   ;;  %v8831_v60 = vld [vmem:[#allocation7 + $0x344] ss:$16 sps:$4 sm:$0xff]  }
 0x145   : > { %v744_v42 = vsel %vm741_vm5, %v742_v38, %v743_v39  ;;  %v8829_v61 = vld [vmem:[#allocation7 + $0x340] ss:$16 sps:$4 sm:$0xff]   ;;  %v8834_v62 = vld [vmem:[#allocation7 + $0x364] ss:$16 sps:$4 sm:$0xff]   ;;  %v10772_v18 = vsub.s32 1, %v10766_v10  ;;  %v811_v19 = vrot.slane %v806_v13, %v10769_v15  ;;  %v827_v23 = vrot.slane %v822_v16, %v10769_v15  ;;  %s7755_s3 = sshll.u32 %s575_s26, 3 }
 0x146   : > { %v613_v36 = vor.u32 %v612_v34, %v608_v30  ;;  %v8832_v63 = vld [vmem:[#allocation7 + $0x360] ss:$16 sps:$4 sm:$0xff]   ;;  %v8837_v0 = vld [vmem:[#allocation7 + $0x384] ss:$16 sps:$4 sm:$0xff]   ;;  %v8847_v9 = vld [vmem:[#allocation7 + $0x208] ss:$16 sps:$4 sm:$0xff]  }
 0x147   : > { %v8835_v1 = vld [vmem:[#allocation7 + $0x380] ss:$16 sps:$4 sm:$0xff]   ;;  %v8840_v2 = vld [vmem:[#allocation7 + $0x3a4] ss:$16 sps:$4 sm:$0xff]   ;;  %v815_v21 = vrot.slane %v806_v13, %v10772_v18  ;;  %v831_v26 = vrot.slane %v822_v16, %v10772_v18  ;;  %s577_s15 = scalar_lea.vmem [#allocation20], %s7755_s3  ;;  %s11306_s30 = sld [smem:[#allocation38_spill]] }
 0x148   : > { %v618_v37 = vsel %vm606_vm4, %v613_v36, %v617_v35  ;;  %v8838_v3 = vld [vmem:[#allocation7 + $0x3a0] ss:$16 sps:$4 sm:$0xff]   ;;  %v8843_v4 = vld [vmem:[#allocation7 + $0x3c4] ss:$16 sps:$4 sm:$0xff]   ;;  %s7563_s22 = sshll.u32 %s577_s15, 4  ;;  %s7549_s29 = scalar_lea.sflag [#allocation4], %s575_s26  ;;  %s11202_s22 = int_to_ptr.vmem [resolvable:$true] %s7563_s22 }
 0x149   : > { %7761 = vmatmul.mubr.msk.bf16.vlgmr.msra.gmra.mrb[0].mxu1 %vm624_vm3, %v618_v37  ;;  %v8841_v5 = vld [vmem:[#allocation7 + $0x3c0] ss:$16 sps:$4 sm:$0xff]   ;;  %v8846_v7 = vld [vmem:[#allocation7 + $0x3e4] ss:$16 sps:$4 sm:$0xff]   ;;  %s10259_s5 = scalar_lea.vmem %s11202_s22, 128  ;;  %p11307_p1 = scmp.ne.s32.totalorder %s11305_s27, 0 }
 0x14a   : > { %v8844_v6 = vld [vmem:[#allocation7 + $0x3e0] ss:$16 sps:$4 sm:$0xff]   ;;  %p10260_p13 = scmp.ne.s32.totalorder %s11202_s22, %s10259_s5  ;;  %s10365_s18 = smov [#allocation20]  }
 0x14b   : > { %s10263_s28 = sshll.u32 %s10365_s18, 4  ;;  %s10264_s28 = int_to_ptr.vmem [resolvable:$false] %s10263_s28 }
 0x14c   : > { %p10261_p0 = pnand %p10260_p13, %p11307_p1  ;;  %s10265_s14 = scalar_lea.vmem %s10264_s28, 256 }
 0x14d   : > { %s11200_s23 = scalar_lea.hbm %s11306_s30, %s8551_s21  ;;  %p10266_p5 = scmp.lt.s32.totalorder %s11202_s22, %s10264_s28 }
 0x14e   : > { %7768 = vmatmul.mubr.msk.bf16.vlgmr.msra.gmra.mrb[0].mxu0 %vm624_vm3, %v744_v42  ;;  %p10262_p6 = pneg %p10261_p0  ;;  %p10267_p9 = scmp.lt.s32.totalorder %s10265_s14, %s10259_s5 }
 0x14f   : > { %1358 = vmatpush1.bf16.msra.mxu0 %v8799_v40 }
 0x150   : > { %1359 = vmatprep.subr.bf16.mxu0 %v8804_v41  ;;  %p10268_p12 = por %p10267_p9, %p10266_p5 }
 0x152   : > { %p10269_p10 = pnand %p10268_p12, %p10262_p6 }
 0x153   : > { %1360 = vmatpush1.bf16.msra.mxu0 %v8802_v43 }
 0x154   : > { %1361 = vmatprep.subr.bf16.mxu0 %v8807_v44 }
 0x157   : > { %1362 = vmatpush1.bf16.msra.mxu0 %v8805_v45 }
 0x158   : > { %1363 = vmatprep.subr.bf16.mxu0 %v8810_v46 }
 0x15b   : > { %1364 = vmatpush1.bf16.msra.mxu0 %v8808_v47 }
 0x15c   : > { %1365 = vmatprep.subr.bf16.mxu0 %v8813_v48 }
 0x15f   : > { %1366 = vmatpush1.bf16.msra.mxu0 %v8811_v49 }
 0x160   : > { %1367 = vmatprep.subr.bf16.mxu0 %v8816_v50 }
 0x163   : > { %1368 = vmatpush1.bf16.msra.mxu0 %v8814_v51 }
 0x164   : > { %1369 = vmatprep.subr.bf16.mxu0 %v8819_v52 }
 0x167   : > { %1370 = vmatpush1.bf16.msra.mxu0 %v8817_v53 }
 0x168   : > { %1371 = vmatprep.subr.bf16.mxu0 %v8822_v54 }
 0x16b   : > { %1372 = vmatpush1.bf16.msra.mxu0 %v8820_v55 }
 0x16c   : > { %1373 = vmatprep.subr.bf16.mxu0 %v8825_v56 }
 0x16f   : > { %1374 = vmatpush1.bf16.msra.mxu0 %v8823_v57 }
 0x170   : > { %1375 = vmatprep.subr.bf16.mxu0 %v8828_v58 }
 0x173   : > { %1376 = vmatpush1.bf16.msra.mxu0 %v8826_v59 }
 0x174   : > { %1377 = vmatprep.subr.bf16.mxu0 %v8831_v60 }
 0x177   : > { %1378 = vmatpush1.bf16.msra.mxu0 %v8829_v61 }
 0x178   : > { %1379 = vmatprep.subr.bf16.mxu0 %v8834_v62 }
 0x17b   : > { %1380 = vmatpush1.bf16.msra.mxu0 %v8832_v63 }
 0x17c   : > { %1381 = vmatprep.subr.bf16.mxu0 %v8837_v0 }
 0x17f   : > { %1382 = vmatpush1.bf16.msra.mxu0 %v8835_v1 }
 0x180   : > { %1383 = vmatprep.subr.bf16.mxu0 %v8840_v2 }
 0x183   : > { %1384 = vmatpush1.bf16.msra.mxu0 %v8838_v3 }
 0x184   : > { %1385 = vmatprep.subr.bf16.mxu0 %v8843_v4 }
 0x187   : > { %1386 = vmatpush1.bf16.msra.mxu0 %v8841_v5 }
 0x188   : > { %1387 = vmatprep.subr.bf16.mxu0 %v8846_v7 }
 0x18b   : > { %1388 = vmatpush1.bf16.msra.mxu0 %v8844_v6 }
 0x18c   : > { %1400 = vmatprep.subr.bf16.mxu0 %v8849_v8 }
 0x21c   : > { %v672_v11 = vpop.f32.mrb[0].mxu1 }
 0x21d   : > { %v674_v12 = vpop.f32.mrb[1].mxu1 }
 0x21e   : > { %v676_v14 = vpop.f32.mrb[2].mxu1 }
 0x21f   : > { %v678_v17 = vpop.f32.mrb[3].mxu1 }
 0x221   : > { %v793_v20 = vpop.f32.mrb[0].mxu0 }
 0x222   : > { %v8552_v22 = vadd.f32 %v793_v20, %v672_v11  ;;  %v795_v24 = vpop.f32.mrb[1].mxu0  ;;  %v8850_v20 = vld [vmem:[#allocation7 + $0x228] ss:$16 sps:$4 sm:$0xff]  }
 0x223   : > { %v8553_v25 = vadd.f32 %v795_v24, %v674_v12  ;;  %v797_v27 = vpop.f32.mrb[2].mxu0  ;;  %v8856_v24 = vld [vmem:[#allocation7 + $0x268] ss:$16 sps:$4 sm:$0xff]  }
 0x224   : > { %v818_v28 = vmul.f32 %v8552_v22, %v811_v19  ;;  %v8554_v29 = vadd.f32 %v797_v27, %v676_v14  ;;  %v799_v30 = vpop.f32.mrb[3].mxu0  ;;  %v8853_v22 = vld [vmem:[#allocation7 + $0x248] ss:$16 sps:$4 sm:$0xff]   ;;  %v8864_v27 = vld [vmem:[#allocation7 + $0x2ac] ss:$16 sps:$4 sm:$0xff]  }
 0x225   : > { %v819_v31 = vmul.f32 %v8553_v25, %v815_v21  ;;  %v8555_v32 = vadd.f32 %v799_v30, %v678_v17  ;;  %v8852_v17 = vld [vmem:[#allocation7 + $0x22c] ss:$16 sps:$4 sm:$0xff]   ;;  %v8865_v30 = vld [vmem:[#allocation7 + $0x2c8] ss:$16 sps:$4 sm:$0xff]  }
 0x226   : > { %v834_v33 = vadd.f32 %v827_v23, %v818_v28  ;;  %v820_v34 = vmul.f32 %v8554_v29, %v811_v19  ;;  %v8861_v25 = vld [vmem:[#allocation7 + $0x28c] ss:$16 sps:$4 sm:$0xff]   ;;  %v8862_v28 = vld [vmem:[#allocation7 + $0x2a8] ss:$16 sps:$4 sm:$0xff]  }
 0x227   : > { %v835_v35 = vadd.f32 %v831_v26, %v819_v31  ;;  %v821_v36 = vmul.f32 %v8555_v32, %v815_v21  ;;  %v8855_v21 = vld [vmem:[#allocation7 + $0x24c] ss:$16 sps:$4 sm:$0xff]   ;;  %v8868_v32 = vld [vmem:[#allocation7 + $0x2e8] ss:$16 sps:$4 sm:$0xff]  }
 0x228   : > { %vm838_vm6 = vcmp.ge.f32.partialorder %v834_v33, 0.0  ;;  %v842_v37 = vmul.f32 0.01, %v834_v33  ;;  %v836_v38 = vadd.f32 %v827_v23, %v820_v34  ;;  %v8858_v23 = vld [vmem:[#allocation7 + $0x26c] ss:$16 sps:$4 sm:$0xff]  }
 0x229   : > { %vm839_vm7 = vcmp.ge.f32.partialorder %v835_v35, 0.0  ;;  %v843_v39 = vmul.f32 0.01, %v835_v35  ;;  %v837_v40 = vadd.f32 %v831_v26, %v821_v36  ;;  %v8859_v26 = vld [vmem:[#allocation7 + $0x288] ss:$16 sps:$4 sm:$0xff]  }
 0x22a   : > { %v846_v41 = vsel %vm838_vm6, %v834_v33, %v842_v37  ;;  %vm840_vm8 = vcmp.ge.f32.partialorder %v836_v38, 0.0  ;;  %v844_v42 = vmul.f32 0.01, %v836_v38  ;;  %v8867_v29 = vld [vmem:[#allocation7 + $0x2cc] ss:$16 sps:$4 sm:$0xff]   ;;  %vm2932_vm6 = vcmask 1044484  }
 0x22b   : > { %v852_v43 = vrot.slane %v846_v41, 1  ;;  %v858_v44 = vrot.slane %v846_v41, 7  ;;  %v847_v45 = vsel %vm839_vm7, %v835_v35, %v843_v39  ;;  %vm841_vm9 = vcmp.ge.f32.partialorder %v837_v40, 0.0  ;;  %v8870_v31 = vld [vmem:[#allocation7 + $0x2ec] ss:$16 sps:$4 sm:$0xff]  }
 0x22c   : > { %v848_v46 = vsel %vm840_vm8, %v836_v38, %v844_v42  ;;  %v845_v47 = vmul.f32 0.01, %v837_v40  ;;  %v853_v48 = vrot.slane %v847_v45, 1  ;;  %v859_v49 = vrot.slane %v847_v45, 7  ;;  %v8873_v33 = vld [vmem:[#allocation7 + $0x30c] ss:$16 sps:$4 sm:$0xff]  }
 0x22d   : > { %v860_v50 = vrot.slane %v848_v46, 7  ;;  %v870_v51 = vrot.slane %v848_v46, 5  ;;  %v874_v52 = vsel %vm590_vm2, %v852_v43, %v858_v44  ;;  %v8871_v34 = vld [vmem:[#allocation7 + $0x308] ss:$16 sps:$4 sm:$0xff]   ;;  %v8876_v35 = vld [vmem:[#allocation7 + $0x32c] ss:$16 sps:$4 sm:$0xff]  }
 0x22e   : > { %v849_v53 = vsel %vm841_vm9, %v837_v40, %v845_v47  ;;  %v875_v59 = vsel %vm590_vm2, %v853_v48, %v859_v49  ;;  %v8874_v36 = vld [vmem:[#allocation7 + $0x328] ss:$16 sps:$4 sm:$0xff]   ;;  %v8879_v37 = vld [vmem:[#allocation7 + $0x34c] ss:$16 sps:$4 sm:$0xff]   ;;  %vm2934_vm7 = vcmask 1045509   ;;  %vm2936_vm8 = vcmask 1046534  }
 0x22f   : > { %v861_v54 = vsel %vm590_vm2, %v858_v44, %v860_v50  ;;  %v862_v55 = vrot.slane %v849_v53, 7  ;;  %v871_v56 = vrot.slane %v849_v53, 5  ;;  %v876_v57 = vsel %vm590_vm2, %v860_v50, %v870_v51  ;;  %v8877_v38 = vld [vmem:[#allocation7 + $0x348] ss:$16 sps:$4 sm:$0xff]   ;;  %v8882_v39 = vld [vmem:[#allocation7 + $0x36c] ss:$16 sps:$4 sm:$0xff]  }
 0x230   : > { %v10781_v58 = vpack.c.bf16 %v861_v54, %v874_v52  ;;  %v10786_v62 = vpack.c.bf16 %v876_v57, %v876_v57  ;;  %v8880_v40 = vld [vmem:[#allocation7 + $0x368] ss:$16 sps:$4 sm:$0xff]   ;;  %v8885_v41 = vld [vmem:[#allocation7 + $0x38c] ss:$16 sps:$4 sm:$0xff]   ;;  %v8895_v50 = vld [vmem:[#allocation7] ss:$16 sps:$4 sm:$0xff]  }
 0x231   : > { %v863_v60 = vsel %vm590_vm2, %v859_v49, %v862_v55  ;;  %v877_v61 = vsel %vm590_vm2, %v862_v55, %v871_v56  ;;  %v8883_v42 = vld [vmem:[#allocation7 + $0x388] ss:$16 sps:$4 sm:$0xff]   ;;  %v8888_v43 = vld [vmem:[#allocation7 + $0x3ac] ss:$16 sps:$4 sm:$0xff]   ;;  %v8897_v49 = vld [vmem:[#allocation7 + $0x4] ss:$16 sps:$4 sm:$0xff]  }
 0x232   : > { %v10788_v63 = vpack.c.bf16 %v863_v60, %v875_v59  ;;  %v10790_v0 = vpack.c.bf16 %v877_v61, %v877_v61  ;;  %v1014_v1 = vshll.u32 %v10781_v58, 16  ;;  %v1012_v5 = vshrl.u32 %v10781_v58, 16  ;;  %v8886_v44 = vld [vmem:[#allocation7 + $0x3a8] ss:$16 sps:$4 sm:$0xff]   ;;  %v8891_v45 = vld [vmem:[#allocation7 + $0x3cc] ss:$16 sps:$4 sm:$0xff]  }
 0x233   : > { %v1019_v6 = vshll.u32 %v10786_v62, 16  ;;  %v8889_v46 = vld [vmem:[#allocation7 + $0x3c8] ss:$16 sps:$4 sm:$0xff]   ;;  %v8894_v47 = vld [vmem:[#allocation7 + $0x3ec] ss:$16 sps:$4 sm:$0xff]   ;;  %vm2938_vm9 = vcmask 1047559  }
 0x234   : > { %v1026_v2 = vshll.u32 %v10788_v63, 16  ;;  %v1031_v3 = vshll.u32 %v10790_v0, 16  ;;  %v1016_v4 = vrot.slane %v1014_v1, 1  ;;  %v1024_v7 = vshrl.u32 %v10788_v63, 16  ;;  %v8892_v48 = vld [vmem:[#allocation7 + $0x3e8] ss:$16 sps:$4 sm:$0xff]  }
 0x235   : > { %v1021_v14 = vrot.slane %v1019_v6, 1  ;;  %v8900_v51 = vld [vmem:[#allocation7 + $0x24] ss:$16 sps:$4 sm:$0xff]   ;;  %v8898_v52 = vld [vmem:[#allocation7 + $0x20] ss:$16 sps:$4 sm:$0xff]  }
 0x236   : > { %v1028_v8 = vrot.slane %v1026_v2, 1  ;;  %v1017_v11 = vor.u32 %v1016_v4, %v1012_v5  ;;  %v1033_v13 = vrot.slane %v1031_v3, 1  ;;  %v8903_v53 = vld [vmem:[#allocation7 + $0x44] ss:$16 sps:$4 sm:$0xff]   ;;  %v8901_v54 = vld [vmem:[#allocation7 + $0x40] ss:$16 sps:$4 sm:$0xff]  }
 0x237   : > { %v8906_v55 = vld [vmem:[#allocation7 + $0x64] ss:$16 sps:$4 sm:$0xff]   ;;  %v8904_v56 = vld [vmem:[#allocation7 + $0x60] ss:$16 sps:$4 sm:$0xff]  }
 0x238   : > { %v1029_v12 = vor.u32 %v1028_v8, %v1024_v7  ;;  %v10800_v19 = vsel %vm606_vm4, %v1017_v11, %v1021_v14  ;;  %v8909_v57 = vld [vmem:[#allocation7 + $0x84] ss:$16 sps:$4 sm:$0xff]   ;;  %v8907_v59 = vld [vmem:[#allocation7 + $0x80] ss:$16 sps:$4 sm:$0xff]  }
 0x239   : > { %v8912_v60 = vld [vmem:[#allocation7 + $0xa4] ss:$16 sps:$4 sm:$0xff]   ;;  %v8910_v61 = vld [vmem:[#allocation7 + $0xa0] ss:$16 sps:$4 sm:$0xff]  }
 0x23a   : > { %v1034_v16 = vsel %vm606_vm4, %v1029_v12, %v1033_v13  ;;  %v8915_v1 = vld [vmem:[#allocation7 + $0xc4] ss:$16 sps:$4 sm:$0xff]   ;;  %v8913_v2 = vld [vmem:[#allocation7 + $0xc0] ss:$16 sps:$4 sm:$0xff]   ;;  %vm2928_vm4 = vcmask 1042434  }
 0x23b   : > { %1389 = vmatprep.mubr.bf16.mxu0 %v1034_v16  ;;  %v8918_v3 = vld [vmem:[#allocation7 + $0xe4] ss:$16 sps:$4 sm:$0xff]   ;;  %v8916_v4 = vld [vmem:[#allocation7 + $0xe0] ss:$16 sps:$4 sm:$0xff]  }
 0x23c   : > { %1390 = vmatmul.mubr.bf16.vlgmr.msra.gmra.mrb[4].mxu0 %v10800_v19  ;;  %v8921_v5 = vld [vmem:[#allocation7 + $0x104] ss:$16 sps:$4 sm:$0xff]   ;;  %v8919_v6 = vld [vmem:[#allocation7 + $0x100] ss:$16 sps:$4 sm:$0xff]  }
 0x23d   : > { %1401 = vmatpush1.bf16.msra.mxu0 %v8847_v9  ;;  %1432 = vmatprep.mubr.bf16.mxu0 %v1034_v16  ;;  %v8924_v7 = vld [vmem:[#allocation7 + $0x124] ss:$16 sps:$4 sm:$0xff]   ;;  %v8922_v8 = vld [vmem:[#allocation7 + $0x120] ss:$16 sps:$4 sm:$0xff]  }
 0x23e   : > { %1402 = vmatprep.subr.bf16.mxu0 %v8852_v17  ;;  %v8927_v9 = vld [vmem:[#allocation7 + $0x144] ss:$16 sps:$4 sm:$0xff]   ;;  %v8925_v11 = vld [vmem:[#allocation7 + $0x140] ss:$16 sps:$4 sm:$0xff]  }
 0x23f   : > { %v8930_v12 = vld [vmem:[#allocation7 + $0x164] ss:$16 sps:$4 sm:$0xff]   ;;  %v8928_v13 = vld [vmem:[#allocation7 + $0x160] ss:$16 sps:$4 sm:$0xff]  }
 0x240   : > { %v8933_v14 = vld [vmem:[#allocation7 + $0x184] ss:$16 sps:$4 sm:$0xff]   ;;  %v8931_v16 = vld [vmem:[#allocation7 + $0x180] ss:$16 sps:$4 sm:$0xff]  }
 0x241   : > { %1403 = vmatpush1.bf16.msra.mxu0 %v8850_v20  ;;  %v8936_v17 = vld [vmem:[#allocation7 + $0x1a4] ss:$16 sps:$4 sm:$0xff]  }
 0x242   : > { %1404 = vmatprep.subr.bf16.mxu0 %v8855_v21  ;;  %v8939_v20 = vld [vmem:[#allocation7 + $0x1c4] ss:$16 sps:$4 sm:$0xff]   ;;  %v8937_v21 = vld [vmem:[#allocation7 + $0x1c0] ss:$16 sps:$4 sm:$0xff]  }
 0x245   : > { %1405 = vmatpush1.bf16.msra.mxu0 %v8853_v22  ;;  %v8942_v22 = vld [vmem:[#allocation7 + $0x1e4] ss:$16 sps:$4 sm:$0xff]  }
 0x246   : > { %1406 = vmatprep.subr.bf16.mxu0 %v8858_v23  ;;  %v8940_v23 = vld [vmem:[#allocation7 + $0x1e0] ss:$16 sps:$4 sm:$0xff]  }
 0x249   : > { %1407 = vmatpush1.bf16.msra.mxu0 %v8856_v24  ;;  %v8945_v24 = vld [vmem:[#allocation7 + $0xc] ss:$16 sps:$4 sm:$0xff]  }
 0x24a   : > { %1408 = vmatprep.subr.bf16.mxu0 %v8861_v25  ;;  %v8943_v25 = vld [vmem:[#allocation7 + $0x8] ss:$16 sps:$4 sm:$0xff]  }
 0x24d   : > { %1409 = vmatpush1.bf16.msra.mxu0 %v8859_v26  ;;  %v8948_v26 = vld [vmem:[#allocation7 + $0x2c] ss:$16 sps:$4 sm:$0xff]  }
 0x24e   : > { %1410 = vmatprep.subr.bf16.mxu0 %v8864_v27  ;;  %v8946_v27 = vld [vmem:[#allocation7 + $0x28] ss:$16 sps:$4 sm:$0xff]  }
 0x251   : > { %1411 = vmatpush1.bf16.msra.mxu0 %v8862_v28  ;;  %v8951_v28 = vld [vmem:[#allocation7 + $0x4c] ss:$16 sps:$4 sm:$0xff]  }
 0x252   : > { %1412 = vmatprep.subr.bf16.mxu0 %v8867_v29  ;;  %v8949_v29 = vld [vmem:[#allocation7 + $0x48] ss:$16 sps:$4 sm:$0xff]  }
 0x255   : > { %1413 = vmatpush1.bf16.msra.mxu0 %v8865_v30  ;;  %v8954_v30 = vld [vmem:[#allocation7 + $0x6c] ss:$16 sps:$4 sm:$0xff]  }
 0x256   : > { %1414 = vmatprep.subr.bf16.mxu0 %v8870_v31  ;;  %v8952_v31 = vld [vmem:[#allocation7 + $0x68] ss:$16 sps:$4 sm:$0xff]  }
 0x259   : > { %1415 = vmatpush1.bf16.msra.mxu0 %v8868_v32  ;;  %v8957_v32 = vld [vmem:[#allocation7 + $0x8c] ss:$16 sps:$4 sm:$0xff]  }
 0x25a   : > { %1416 = vmatprep.subr.bf16.mxu0 %v8873_v33  ;;  %v8955_v33 = vld [vmem:[#allocation7 + $0x88] ss:$16 sps:$4 sm:$0xff]  }
 0x25d   : > { %1417 = vmatpush1.bf16.msra.mxu0 %v8871_v34  ;;  %v8960_v34 = vld [vmem:[#allocation7 + $0xac] ss:$16 sps:$4 sm:$0xff]  }
 0x25e   : > { %1418 = vmatprep.subr.bf16.mxu0 %v8876_v35  ;;  %v8958_v35 = vld [vmem:[#allocation7 + $0xa8] ss:$16 sps:$4 sm:$0xff]  }
 0x261   : > { %1419 = vmatpush1.bf16.msra.mxu0 %v8874_v36  ;;  %v8963_v36 = vld [vmem:[#allocation7 + $0xcc] ss:$16 sps:$4 sm:$0xff]  }
 0x262   : > { %1420 = vmatprep.subr.bf16.mxu0 %v8879_v37  ;;  %v8961_v37 = vld [vmem:[#allocation7 + $0xc8] ss:$16 sps:$4 sm:$0xff]  }
 0x265   : > { %1421 = vmatpush1.bf16.msra.mxu0 %v8877_v38  ;;  %v8966_v38 = vld [vmem:[#allocation7 + $0xec] ss:$16 sps:$4 sm:$0xff]  }
 0x266   : > { %1422 = vmatprep.subr.bf16.mxu0 %v8882_v39  ;;  %v8964_v39 = vld [vmem:[#allocation7 + $0xe8] ss:$16 sps:$4 sm:$0xff]  }
 0x269   : > { %1423 = vmatpush1.bf16.msra.mxu0 %v8880_v40  ;;  %v8969_v40 = vld [vmem:[#allocation7 + $0x10c] ss:$16 sps:$4 sm:$0xff]  }
 0x26a   : > { %1424 = vmatprep.subr.bf16.mxu0 %v8885_v41  ;;  %v8967_v41 = vld [vmem:[#allocation7 + $0x108] ss:$16 sps:$4 sm:$0xff]  }
 0x26d   : > { %1425 = vmatpush1.bf16.msra.mxu0 %v8883_v42  ;;  %v8972_v42 = vld [vmem:[#allocation7 + $0x12c] ss:$16 sps:$4 sm:$0xff]  }
 0x26e   : > { %1426 = vmatprep.subr.bf16.mxu0 %v8888_v43  ;;  %v8970_v43 = vld [vmem:[#allocation7 + $0x128] ss:$16 sps:$4 sm:$0xff]  }
 0x271   : > { %1427 = vmatpush1.bf16.msra.mxu0 %v8886_v44  ;;  %v8975_v44 = vld [vmem:[#allocation7 + $0x14c] ss:$16 sps:$4 sm:$0xff]  }
 0x272   : > { %1428 = vmatprep.subr.bf16.mxu0 %v8891_v45  ;;  %v8973_v45 = vld [vmem:[#allocation7 + $0x148] ss:$16 sps:$4 sm:$0xff]  }
 0x275   : > { %1429 = vmatpush1.bf16.msra.mxu0 %v8889_v46  ;;  %v8978_v46 = vld [vmem:[#allocation7 + $0x16c] ss:$16 sps:$4 sm:$0xff]  }
 0x276   : > { %1430 = vmatprep.subr.bf16.mxu0 %v8894_v47  ;;  %v8976_v47 = vld [vmem:[#allocation7 + $0x168] ss:$16 sps:$4 sm:$0xff]  }
 0x279   : > { %1431 = vmatpush1.bf16.msra.mxu0 %v8892_v48  ;;  %v8981_v48 = vld [vmem:[#allocation7 + $0x18c] ss:$16 sps:$4 sm:$0xff]  }
 0x27a   : > { %1763 = vmatprep.subr.bf16.mxu0 %v8897_v49  ;;  %v8979_v49 = vld [vmem:[#allocation7 + $0x188] ss:$16 sps:$4 sm:$0xff]  }
 0x27c   : > { %1433 = vmatmul.mubr.bf16.vlgmr.msra.gmra.mrb[8].mxu0 %v10800_v19  ;;  %v8934_v19 = vld [vmem:[#allocation7 + $0x1a0] ss:$16 sps:$4 sm:$0xff]  }
 0x27d   : > { %1764 = vmatpush1.bf16.msra.mxu0 %v8895_v50  ;;  %1795 = vmatprep.mubr.bf16.mxu0 %v10788_v63  ;;  %v8984_v50 = vld [vmem:[#allocation7 + $0x1ac] ss:$16 sps:$4 sm:$0xff]  }
 0x27e   : > { %1765 = vmatprep.subr.bf16.mxu0 %v8900_v51  ;;  %v8982_v51 = vld [vmem:[#allocation7 + $0x1a8] ss:$16 sps:$4 sm:$0xff]  }
 0x281   : > { %1766 = vmatpush1.bf16.msra.mxu0 %v8898_v52  ;;  %v8987_v52 = vld [vmem:[#allocation7 + $0x1cc] ss:$16 sps:$4 sm:$0xff]  }
 0x282   : > { %1767 = vmatprep.subr.bf16.mxu0 %v8903_v53  ;;  %v8985_v53 = vld [vmem:[#allocation7 + $0x1c8] ss:$16 sps:$4 sm:$0xff]  }
 0x285   : > { %1768 = vmatpush1.bf16.msra.mxu0 %v8901_v54  ;;  %v8990_v54 = vld [vmem:[#allocation7 + $0x1ec] ss:$16 sps:$4 sm:$0xff]  }
 0x286   : > { %1769 = vmatprep.subr.bf16.mxu0 %v8906_v55  ;;  %v8988_v55 = vld [vmem:[#allocation7 + $0x1e8] ss:$16 sps:$4 sm:$0xff]  }
 0x289   : > { %1770 = vmatpush1.bf16.msra.mxu0 %v8904_v56  ;;  %v8993_v56 = vld [vmem:[#allocation7 + $0x404] ss:$16 sps:$4 sm:$0xff]  }
 0x28a   : > { %1771 = vmatprep.subr.bf16.mxu0 %v8909_v57  ;;  %v1921_v57 = vrot.slane %v10788_v63, 1 }
 0x28d   : > { %1772 = vmatpush1.bf16.msra.mxu0 %v8907_v59  ;;  %v1922_v59 = vrot.slane %v10790_v0, 1  ;;  %v9000_v0 = vld [vmem:[#allocation7 + $0x460] ss:$16 sps:$4 sm:$0xff]  }
 0x28e   : > { %1773 = vmatprep.subr.bf16.mxu0 %v8912_v60  ;;  %v8991_v60 = vld [vmem:[#allocation7 + $0x400] ss:$16 sps:$4 sm:$0xff]  }
 0x291   : > { %1774 = vmatpush1.bf16.msra.mxu0 %v8910_v61  ;;  %v8996_v61 = vld [vmem:[#allocation7 + $0x424] ss:$16 sps:$4 sm:$0xff]  }
 0x292   : > { %1775 = vmatprep.subr.bf16.mxu0 %v8915_v1  ;;  %v10811_v1 = vsel %vm741_vm5, %v1921_v57, %v1922_v59  ;;  %v9077_v57 = vld [vmem:[#allocation7 + $0x58c] ss:$16 sps:$4 sm:$0xff]   ;;  %v9075_v59 = vld [vmem:[#allocation7 + $0x588] ss:$16 sps:$4 sm:$0xff]  }
 0x295   : > { %1776 = vmatpush1.bf16.msra.mxu0 %v8913_v2  ;;  %v8994_v2 = vld [vmem:[#allocation7 + $0x420] ss:$16 sps:$4 sm:$0xff]  }
 0x296   : > { %1777 = vmatprep.subr.bf16.mxu0 %v8918_v3  ;;  %v8999_v3 = vld [vmem:[#allocation7 + $0x444] ss:$16 sps:$4 sm:$0xff]  }
 0x299   : > { %1778 = vmatpush1.bf16.msra.mxu0 %v8916_v4  ;;  %v8997_v4 = vld [vmem:[#allocation7 + $0x440] ss:$16 sps:$4 sm:$0xff]  }
 0x29a   : > { %1779 = vmatprep.subr.bf16.mxu0 %v8921_v5  ;;  %v9005_v5 = vld [vmem:[#allocation7 + $0x484] ss:$16 sps:$4 sm:$0xff]  }
 0x29d   : > { %1780 = vmatpush1.bf16.msra.mxu0 %v8919_v6  ;;  %v9003_v6 = vld [vmem:[#allocation7 + $0x480] ss:$16 sps:$4 sm:$0xff]  }
 0x29e   : > { %1781 = vmatprep.subr.bf16.mxu0 %v8924_v7  ;;  %v9008_v7 = vld [vmem:[#allocation7 + $0x4a4] ss:$16 sps:$4 sm:$0xff]  }
 0x2a1   : > { %1782 = vmatpush1.bf16.msra.mxu0 %v8922_v8  ;;  %v9006_v8 = vld [vmem:[#allocation7 + $0x4a0] ss:$16 sps:$4 sm:$0xff]  }
 0x2a2   : > { %1783 = vmatprep.subr.bf16.mxu0 %v8927_v9  ;;  %v9011_v9 = vld [vmem:[#allocation7 + $0x4c4] ss:$16 sps:$4 sm:$0xff]  }
 0x2a5   : > { %1784 = vmatpush1.bf16.msra.mxu0 %v8925_v11  ;;  %v9009_v11 = vld [vmem:[#allocation7 + $0x4c0] ss:$16 sps:$4 sm:$0xff]  }
 0x2a6   : > { %1785 = vmatprep.subr.bf16.mxu0 %v8930_v12  ;;  %v9014_v12 = vld [vmem:[#allocation7 + $0x4e4] ss:$16 sps:$4 sm:$0xff]  }
 0x2a9   : > { %1786 = vmatpush1.bf16.msra.mxu0 %v8928_v13  ;;  %v9012_v13 = vld [vmem:[#allocation7 + $0x4e0] ss:$16 sps:$4 sm:$0xff]  }
 0x2aa   : > { %1787 = vmatprep.subr.bf16.mxu0 %v8933_v14  ;;  %v9017_v14 = vld [vmem:[#allocation7 + $0x504] ss:$16 sps:$4 sm:$0xff]  }
 0x2ad   : > { %1788 = vmatpush1.bf16.msra.mxu0 %v8931_v16  ;;  %v9015_v16 = vld [vmem:[#allocation7 + $0x500] ss:$16 sps:$4 sm:$0xff]  }
 0x2ae   : > { %1789 = vmatprep.subr.bf16.mxu0 %v8936_v17  ;;  %v9020_v17 = vld [vmem:[#allocation7 + $0x524] ss:$16 sps:$4 sm:$0xff]  }
 0x2b1   : > { %1790 = vmatpush1.bf16.msra.mxu0 %v8934_v19  ;;  %v9018_v19 = vld [vmem:[#allocation7 + $0x520] ss:$16 sps:$4 sm:$0xff]  }
 0x2b2   : > { %1791 = vmatprep.subr.bf16.mxu0 %v8939_v20  ;;  %v9023_v20 = vld [vmem:[#allocation7 + $0x544] ss:$16 sps:$4 sm:$0xff]  }
 0x2b5   : > { %1792 = vmatpush1.bf16.msra.mxu0 %v8937_v21  ;;  %v9021_v21 = vld [vmem:[#allocation7 + $0x540] ss:$16 sps:$4 sm:$0xff]  }
 0x2b6   : > { %1793 = vmatprep.subr.bf16.mxu0 %v8942_v22  ;;  %v9026_v22 = vld [vmem:[#allocation7 + $0x564] ss:$16 sps:$4 sm:$0xff]  }
 0x2b9   : > { %1794 = vmatpush1.bf16.msra.mxu0 %v8940_v23  ;;  %v9024_v23 = vld [vmem:[#allocation7 + $0x560] ss:$16 sps:$4 sm:$0xff]  }
 0x2ba   : > { %1806 = vmatprep.subr.bf16.mxu0 %v8945_v24  ;;  %v9029_v24 = vld [vmem:[#allocation7 + $0x584] ss:$16 sps:$4 sm:$0xff]  }
 0x2bc   : > { %1796 = vmatmul.mubr.bf16.vlgmr.msra.gmra.mrb[4].mxu0 %v10781_v58 }
 0x2bd   : > { %1807 = vmatpush1.bf16.msra.mxu0 %v8943_v25  ;;  %1838 = vmatprep.mubr.bf16.mxu0 %v10788_v63  ;;  %v9002_v63 = vld [vmem:[#allocation7 + $0x464] ss:$16 sps:$4 sm:$0xff]   ;;  %v9027_v25 = vld [vmem:[#allocation7 + $0x580] ss:$16 sps:$4 sm:$0xff]  }
 0x2be   : > { %1808 = vmatprep.subr.bf16.mxu0 %v8948_v26  ;;  %v9032_v26 = vld [vmem:[#allocation7 + $0x5a4] ss:$16 sps:$4 sm:$0xff]  }
 0x2c1   : > { %1809 = vmatpush1.bf16.msra.mxu0 %v8946_v27  ;;  %v9030_v27 = vld [vmem:[#allocation7 + $0x5a0] ss:$16 sps:$4 sm:$0xff]  }
 0x2c2   : > { %1810 = vmatprep.subr.bf16.mxu0 %v8951_v28  ;;  %v9035_v28 = vld [vmem:[#allocation7 + $0x5c4] ss:$16 sps:$4 sm:$0xff]  }
 0x2c5   : > { %1811 = vmatpush1.bf16.msra.mxu0 %v8949_v29  ;;  %v9033_v29 = vld [vmem:[#allocation7 + $0x5c0] ss:$16 sps:$4 sm:$0xff]  }
 0x2c6   : > { %1812 = vmatprep.subr.bf16.mxu0 %v8954_v30  ;;  %v9038_v30 = vld [vmem:[#allocation7 + $0x5e4] ss:$16 sps:$4 sm:$0xff]  }
 0x2c9   : > { %1813 = vmatpush1.bf16.msra.mxu0 %v8952_v31  ;;  %v9036_v31 = vld [vmem:[#allocation7 + $0x5e0] ss:$16 sps:$4 sm:$0xff]  }
 0x2ca   : > { %1814 = vmatprep.subr.bf16.mxu0 %v8957_v32  ;;  %v9041_v32 = vld [vmem:[#allocation7 + $0x40c] ss:$16 sps:$4 sm:$0xff]  }
 0x2cd   : > { %1815 = vmatpush1.bf16.msra.mxu0 %v8955_v33  ;;  %v1918_v33 = vrot.slane %v10781_v58, 1 }
 0x2ce   : > { %1816 = vmatprep.subr.bf16.mxu0 %v8960_v34  ;;  %v1919_v34 = vrot.slane %v10786_v62, 1  ;;  %v9053_v62 = vld [vmem:[#allocation7 + $0x48c] ss:$16 sps:$4 sm:$0xff]  }
 0x2d1   : > { %1817 = vmatpush1.bf16.msra.mxu0 %v8958_v35  ;;  %v9039_v35 = vld [vmem:[#allocation7 + $0x408] ss:$16 sps:$4 sm:$0xff]  }
 0x2d2   : > { %1818 = vmatprep.subr.bf16.mxu0 %v8963_v36  ;;  %v9044_v36 = vld [vmem:[#allocation7 + $0x42c] ss:$16 sps:$4 sm:$0xff]  }
 0x2d5   : > { %1819 = vmatpush1.bf16.msra.mxu0 %v8961_v37  ;;  %v1920_v37 = vsel %vm741_vm5, %v1918_v33, %v1919_v34  ;;  %v9126_v33 = vld [vmem:[#allocation11 + $0x4c8] ss:$16 sps:$4 sm:$0xff]   ;;  %vm2930_vm5 = vcmask 1043459  }
 0x2d6   : > { %1820 = vmatprep.subr.bf16.mxu0 %v8966_v38  ;;  %v9042_v38 = vld [vmem:[#allocation7 + $0x428] ss:$16 sps:$4 sm:$0xff]   ;;  %v10818_v34 = vld [vmem:[#allocation8] sm:$0xf] }
 0x2d9   : > { %1821 = vmatpush1.bf16.msra.mxu0 %v8964_v39  ;;  %v9047_v39 = vld [vmem:[#allocation7 + $0x44c] ss:$16 sps:$4 sm:$0xff]  }
 0x2da   : > { %1822 = vmatprep.subr.bf16.mxu0 %v8969_v40  ;;  %v9045_v40 = vld [vmem:[#allocation7 + $0x448] ss:$16 sps:$4 sm:$0xff]  }
 0x2dd   : > { %1823 = vmatpush1.bf16.msra.mxu0 %v8967_v41  ;;  %v9050_v41 = vld [vmem:[#allocation7 + $0x46c] ss:$16 sps:$4 sm:$0xff]  }
 0x2de   : > { %1824 = vmatprep.subr.bf16.mxu0 %v8972_v42  ;;  %v9051_v42 = vld [vmem:[#allocation7 + $0x488] ss:$16 sps:$4 sm:$0xff]  }
 0x2e1   : > { %1825 = vmatpush1.bf16.msra.mxu0 %v8970_v43  ;;  %v9056_v43 = vld [vmem:[#allocation7 + $0x4ac] ss:$16 sps:$4 sm:$0xff]  }
 0x2e2   : > { %1826 = vmatprep.subr.bf16.mxu0 %v8975_v44  ;;  %v9054_v44 = vld [vmem:[#allocation7 + $0x4a8] ss:$16 sps:$4 sm:$0xff]  }
 0x2e5   : > { %1827 = vmatpush1.bf16.msra.mxu0 %v8973_v45  ;;  %v9059_v45 = vld [vmem:[#allocation7 + $0x4cc] ss:$16 sps:$4 sm:$0xff]  }
 0x2e6   : > { %1828 = vmatprep.subr.bf16.mxu0 %v8978_v46  ;;  %v9057_v46 = vld [vmem:[#allocation7 + $0x4c8] ss:$16 sps:$4 sm:$0xff]  }
 0x2e9   : > { %1829 = vmatpush1.bf16.msra.mxu0 %v8976_v47  ;;  %v9062_v47 = vld [vmem:[#allocation7 + $0x4ec] ss:$16 sps:$4 sm:$0xff]  }
 0x2ea   : > { %1830 = vmatprep.subr.bf16.mxu0 %v8981_v48  ;;  %v9060_v48 = vld [vmem:[#allocation7 + $0x4e8] ss:$16 sps:$4 sm:$0xff]  }
 0x2ed   : > { %1831 = vmatpush1.bf16.msra.mxu0 %v8979_v49  ;;  %v9065_v49 = vld [vmem:[#allocation7 + $0x50c] ss:$16 sps:$4 sm:$0xff]  }
 0x2ee   : > { %1832 = vmatprep.subr.bf16.mxu0 %v8984_v50  ;;  %v9063_v50 = vld [vmem:[#allocation7 + $0x508] ss:$16 sps:$4 sm:$0xff]  }
 0x2f1   : > { %1833 = vmatpush1.bf16.msra.mxu0 %v8982_v51  ;;  %v9068_v51 = vld [vmem:[#allocation7 + $0x52c] ss:$16 sps:$4 sm:$0xff]  }
 0x2f2   : > { %1834 = vmatprep.subr.bf16.mxu0 %v8987_v52  ;;  %v9066_v52 = vld [vmem:[#allocation7 + $0x528] ss:$16 sps:$4 sm:$0xff]  }
 0x2f5   : > { %1835 = vmatpush1.bf16.msra.mxu0 %v8985_v53  ;;  %v9071_v53 = vld [vmem:[#allocation7 + $0x54c] ss:$16 sps:$4 sm:$0xff]  }
 0x2f6   : > { %1836 = vmatprep.subr.bf16.mxu0 %v8990_v54  ;;  %v9069_v54 = vld [vmem:[#allocation7 + $0x548] ss:$16 sps:$4 sm:$0xff]  }
 0x2f9   : > { %1837 = vmatpush1.bf16.msra.mxu0 %v8988_v55  ;;  %v9074_v55 = vld [vmem:[#allocation7 + $0x56c] ss:$16 sps:$4 sm:$0xff]  }
 0x2fa   : > { %2246 = vmatprep.subr.bf16.mxu0 %v8993_v56  ;;  %v9072_v56 = vld [vmem:[#allocation7 + $0x568] ss:$16 sps:$4 sm:$0xff]  }
 0x2fc   : > { %1839 = vmatmul.mubr.bf16.vlgmr.msra.gmra.mrb[8].mxu0 %v10781_v58  ;;  %v9048_v58 = vld [vmem:[#allocation7 + $0x468] ss:$16 sps:$4 sm:$0xff]  }
 0x2fd   : > { %2247 = vmatpush1.bf16.msra.mxu0 %v8991_v60  ;;  %2278 = vmatprep.mubr.bf16.mxu0 %v10811_v1  ;;  %v9080_v60 = vld [vmem:[#allocation7 + $0x5ac] ss:$16 sps:$4 sm:$0xff]  }
 0x2fe   : > { %2248 = vmatprep.subr.bf16.mxu0 %v8996_v61  ;;  %v9078_v61 = vld [vmem:[#allocation7 + $0x5a8] ss:$16 sps:$4 sm:$0xff]  }
 0x301   : > { %2249 = vmatpush1.bf16.msra.mxu0 %v8994_v2  ;;  %v9081_v2 = vld [vmem:[#allocation7 + $0x5c8] ss:$16 sps:$4 sm:$0xff]  }
 0x302   : > { %2250 = vmatprep.subr.bf16.mxu0 %v8999_v3  ;;  %v9086_v3 = vld [vmem:[#allocation7 + $0x5ec] ss:$16 sps:$4 sm:$0xff]  }
 0x305   : > { %2251 = vmatpush1.bf16.msra.mxu0 %v8997_v4  ;;  %v9084_v4 = vld [vmem:[#allocation7 + $0x5e8] ss:$16 sps:$4 sm:$0xff]  }
 0x306   : > { %2252 = vmatprep.subr.bf16.mxu0 %v9002_v63  ;;  %v9087_v63 = vld [vmem:[#allocation11 + $0x400] ss:$16 sps:$4 sm:$0xff]  }
 0x309   : > { %2253 = vmatpush1.bf16.msra.mxu0 %v9000_v0  ;;  %v9089_v0 = vld [vmem:[#allocation11 + $0x404] ss:$16 sps:$4 sm:$0xff]  }
 0x30a   : > { %2254 = vmatprep.subr.bf16.mxu0 %v9005_v5  ;;  %v9090_v5 = vld [vmem:[#allocation11 + $0x408] ss:$16 sps:$4 sm:$0xff]   ;;  %3907 = vmatprep.subr.bf16.mxu1 %v9089_v0 }
 0x30b   : > { %3908 = vmatpush1.bf16.msra.mxu1 %v9087_v63 }
 0x30d   : > { %2255 = vmatpush1.bf16.msra.mxu0 %v9003_v6  ;;  %v9092_v6 = vld [vmem:[#allocation11 + $0x40c] ss:$16 sps:$4 sm:$0xff]  }
 0x30e   : > { %2256 = vmatprep.subr.bf16.mxu0 %v9008_v7  ;;  %v9095_v7 = vld [vmem:[#allocation11 + $0x424] ss:$16 sps:$4 sm:$0xff]  }
 0x30f   : > { %3909 = vmatprep.subr.bf16.mxu1 %v9095_v7 }
 0x311   : > { %2257 = vmatpush1.bf16.msra.mxu0 %v9006_v8  ;;  %v9098_v8 = vld [vmem:[#allocation11 + $0x42c] ss:$16 sps:$4 sm:$0xff]  }
 0x312   : > { %2258 = vmatprep.subr.bf16.mxu0 %v9011_v9  ;;  %v9093_v9 = vld [vmem:[#allocation11 + $0x420] ss:$16 sps:$4 sm:$0xff]  }
 0x313   : > { %3910 = vmatpush1.bf16.msra.mxu1 %v9093_v9 }
 0x315   : > { %2259 = vmatpush1.bf16.msra.mxu0 %v9009_v11  ;;  %v9096_v11 = vld [vmem:[#allocation11 + $0x428] ss:$16 sps:$4 sm:$0xff]  }
 0x316   : > { %2260 = vmatprep.subr.bf16.mxu0 %v9014_v12  ;;  %v9101_v12 = vld [vmem:[#allocation11 + $0x444] ss:$16 sps:$4 sm:$0xff]  }
 0x317   : > { %3911 = vmatprep.subr.bf16.mxu1 %v9101_v12  ;;  %v9150_v12 = vld [vmem:[#allocation11 + $0x548] ss:$16 sps:$4 sm:$0xff]  }
 0x319   : > { %2261 = vmatpush1.bf16.msra.mxu0 %v9012_v13  ;;  %v9104_v13 = vld [vmem:[#allocation11 + $0x44c] ss:$16 sps:$4 sm:$0xff]  }
 0x31a   : > { %2262 = vmatprep.subr.bf16.mxu0 %v9017_v14  ;;  %v9099_v14 = vld [vmem:[#allocation11 + $0x440] ss:$16 sps:$4 sm:$0xff]  }
 0x31b   : > { %3912 = vmatpush1.bf16.msra.mxu1 %v9099_v14 }
 0x31d   : > { %2263 = vmatpush1.bf16.msra.mxu0 %v9015_v16  ;;  %v9102_v16 = vld [vmem:[#allocation11 + $0x448] ss:$16 sps:$4 sm:$0xff]  }
 0x31e   : > { %2264 = vmatprep.subr.bf16.mxu0 %v9020_v17  ;;  %v9107_v17 = vld [vmem:[#allocation11 + $0x464] ss:$16 sps:$4 sm:$0xff]  }
 0x31f   : > { %3913 = vmatprep.subr.bf16.mxu1 %v9107_v17 }
 0x321   : > { %2265 = vmatpush1.bf16.msra.mxu0 %v9018_v19  ;;  %v9110_v19 = vld [vmem:[#allocation11 + $0x46c] ss:$16 sps:$4 sm:$0xff]  }
 0x322   : > { %2266 = vmatprep.subr.bf16.mxu0 %v9023_v20  ;;  %v9105_v20 = vld [vmem:[#allocation11 + $0x460] ss:$16 sps:$4 sm:$0xff]  }
 0x323   : > { %3914 = vmatpush1.bf16.msra.mxu1 %v9105_v20  ;;  %v9158_v20 = vld [vmem:[#allocation11 + $0x56c] ss:$16 sps:$4 sm:$0xff]  }
 0x325   : > { %2267 = vmatpush1.bf16.msra.mxu0 %v9021_v21  ;;  %v9108_v21 = vld [vmem:[#allocation11 + $0x468] ss:$16 sps:$4 sm:$0xff]  }
 0x326   : > { %2268 = vmatprep.subr.bf16.mxu0 %v9026_v22  ;;  %v9113_v22 = vld [vmem:[#allocation11 + $0x484] ss:$16 sps:$4 sm:$0xff]  }
 0x327   : > { %3915 = vmatprep.subr.bf16.mxu1 %v9113_v22  ;;  %v9156_v22 = vld [vmem:[#allocation11 + $0x568] ss:$16 sps:$4 sm:$0xff]  }
 0x329   : > { %2269 = vmatpush1.bf16.msra.mxu0 %v9024_v23  ;;  %v9116_v23 = vld [vmem:[#allocation11 + $0x48c] ss:$16 sps:$4 sm:$0xff]  }
 0x32a   : > { %2270 = vmatprep.subr.bf16.mxu0 %v9029_v24  ;;  %v9111_v24 = vld [vmem:[#allocation11 + $0x480] ss:$16 sps:$4 sm:$0xff]  }
 0x32b   : > { %3916 = vmatpush1.bf16.msra.mxu1 %v9111_v24  ;;  %v9164_v24 = vld [vmem:[#allocation11 + $0x58c] ss:$16 sps:$4 sm:$0xff]  }
 0x32d   : > { %2271 = vmatpush1.bf16.msra.mxu0 %v9027_v25  ;;  %v9114_v25 = vld [vmem:[#allocation11 + $0x488] ss:$16 sps:$4 sm:$0xff]  }
 0x32e   : > { %2272 = vmatprep.subr.bf16.mxu0 %v9032_v26  ;;  %v9119_v26 = vld [vmem:[#allocation11 + $0x4a4] ss:$16 sps:$4 sm:$0xff]  }
 0x32f   : > { %3917 = vmatprep.subr.bf16.mxu1 %v9119_v26  ;;  %v9162_v26 = vld [vmem:[#allocation11 + $0x588] ss:$16 sps:$4 sm:$0xff]  }
 0x331   : > { %2273 = vmatpush1.bf16.msra.mxu0 %v9030_v27  ;;  %v9122_v27 = vld [vmem:[#allocation11 + $0x4ac] ss:$16 sps:$4 sm:$0xff]  }
 0x332   : > { %2274 = vmatprep.subr.bf16.mxu0 %v9035_v28  ;;  %v9117_v28 = vld [vmem:[#allocation11 + $0x4a0] ss:$16 sps:$4 sm:$0xff]  }
 0x333   : > { %3918 = vmatpush1.bf16.msra.mxu1 %v9117_v28  ;;  %v9170_v28 = vld [vmem:[#allocation11 + $0x5ac] ss:$16 sps:$4 sm:$0xff]  }
 0x335   : > { %2275 = vmatpush1.bf16.msra.mxu0 %v9033_v29  ;;  %v9120_v29 = vld [vmem:[#allocation11 + $0x4a8] ss:$16 sps:$4 sm:$0xff]  }
 0x336   : > { %2276 = vmatprep.subr.bf16.mxu0 %v9038_v30  ;;  %v9125_v30 = vld [vmem:[#allocation11 + $0x4c4] ss:$16 sps:$4 sm:$0xff]  }
 0x337   : > { %3919 = vmatprep.subr.bf16.mxu1 %v9125_v30  ;;  %v9168_v30 = vld [vmem:[#allocation11 + $0x5a8] ss:$16 sps:$4 sm:$0xff]  }
 0x339   : > { %2277 = vmatpush1.bf16.msra.mxu0 %v9036_v31  ;;  %v9128_v31 = vld [vmem:[#allocation11 + $0x4cc] ss:$16 sps:$4 sm:$0xff]  }
 0x33a   : > { %2289 = vmatprep.subr.bf16.mxu0 %v9041_v32  ;;  %v9123_v32 = vld [vmem:[#allocation11 + $0x4c0] ss:$16 sps:$4 sm:$0xff]  }
 0x33b   : > { %3920 = vmatpush1.bf16.msra.mxu1 %v9123_v32  ;;  %v9176_v32 = vld [vmem:[#allocation11 + $0x5cc] ss:$16 sps:$4 sm:$0xff]  }
 0x33c   : > { %2279 = vmatmul.mubr.bf16.vlgmr.msra.gmra.mrb[4].mxu0 %v1920_v37 }
 0x33d   : > { %2290 = vmatpush1.bf16.msra.mxu0 %v9039_v35  ;;  %2321 = vmatprep.mubr.bf16.mxu0 %v10811_v1  ;;  %v9083_v1 = vld [vmem:[#allocation7 + $0x5cc] ss:$16 sps:$4 sm:$0xff]   ;;  %v10820_v35 = vld [vmem:[#allocation10] sm:$0xf] }
 0x33e   : > { %2291 = vmatprep.subr.bf16.mxu0 %v9044_v36  ;;  %v9131_v36 = vld [vmem:[#allocation11 + $0x4e4] ss:$16 sps:$4 sm:$0xff]  }
 0x33f   : > { %3921 = vmatprep.subr.bf16.mxu1 %v9131_v36  ;;  %v9174_v36 = vld [vmem:[#allocation11 + $0x5c8] ss:$16 sps:$4 sm:$0xff]  }
 0x341   : > { %2292 = vmatpush1.bf16.msra.mxu0 %v9042_v38  ;;  %v2345_v38 = vrot.slane %v10818_v34, %v10769_v15 }
 0x342   : > { %2293 = vmatprep.subr.bf16.mxu0 %v9047_v39  ;;  %v9129_v39 = vld [vmem:[#allocation11 + $0x4e0] ss:$16 sps:$4 sm:$0xff]  }
 0x343   : > { %3922 = vmatpush1.bf16.msra.mxu1 %v9129_v39  ;;  %v9177_v39 = vld [vmem:[#allocation11 + $0x5e0] ss:$16 sps:$4 sm:$0xff]  }
 0x345   : > { %2294 = vmatpush1.bf16.msra.mxu0 %v9045_v40  ;;  %v9132_v40 = vld [vmem:[#allocation11 + $0x4e8] ss:$16 sps:$4 sm:$0xff]  }
 0x346   : > { %2295 = vmatprep.subr.bf16.mxu0 %v9050_v41  ;;  %v2349_v41 = vrot.slane %v10818_v34, %v10772_v18 }
 0x349   : > { %2296 = vmatpush1.bf16.msra.mxu0 %v9048_v58  ;;  %v2375_v58 = vrot.slane %v10820_v35, %v10769_v15 }
 0x34a   : > { %2297 = vmatprep.subr.bf16.mxu0 %v9053_v62 }
 0x34d   : > { %2298 = vmatpush1.bf16.msra.mxu0 %v9051_v42  ;;  %v2379_v42 = vrot.slane %v10820_v35, %v10772_v18 }
 0x34e   : > { %2299 = vmatprep.subr.bf16.mxu0 %v9056_v43  ;;  %v9137_v43 = vld [vmem:[#allocation11 + $0x504] ss:$16 sps:$4 sm:$0xff]  }
 0x34f   : > { %3923 = vmatprep.subr.bf16.mxu1 %v9137_v43 }
 0x351   : > { %2300 = vmatpush1.bf16.msra.mxu0 %v9054_v44  ;;  %v9140_v44 = vld [vmem:[#allocation11 + $0x50c] ss:$16 sps:$4 sm:$0xff]  }
 0x352   : > { %2301 = vmatprep.subr.bf16.mxu0 %v9059_v45 }
 0x355   : > { %2302 = vmatpush1.bf16.msra.mxu0 %v9057_v46 }
 0x356   : > { %2303 = vmatprep.subr.bf16.mxu0 %v9062_v47  ;;  %v9135_v47 = vld [vmem:[#allocation11 + $0x500] ss:$16 sps:$4 sm:$0xff]  }
 0x357   : > { %3924 = vmatpush1.bf16.msra.mxu1 %v9135_v47 }
 0x359   : > { %2304 = vmatpush1.bf16.msra.mxu0 %v9060_v48  ;;  %v9138_v48 = vld [vmem:[#allocation11 + $0x508] ss:$16 sps:$4 sm:$0xff]  }
 0x35a   : > { %2305 = vmatprep.subr.bf16.mxu0 %v9065_v49 }
 0x35d   : > { %2306 = vmatpush1.bf16.msra.mxu0 %v9063_v50 }
 0x35e   : > { %2307 = vmatprep.subr.bf16.mxu0 %v9068_v51 }
 0x361   : > { %2308 = vmatpush1.bf16.msra.mxu0 %v9066_v52 }
 0x362   : > { %2309 = vmatprep.subr.bf16.mxu0 %v9071_v53 }
 0x365   : > { %2310 = vmatpush1.bf16.msra.mxu0 %v9069_v54 }
 0x366   : > { %2311 = vmatprep.subr.bf16.mxu0 %v9074_v55 }
 0x369   : > { %2312 = vmatpush1.bf16.msra.mxu0 %v9072_v56  ;;  %v9143_v56 = vld [vmem:[#allocation11 + $0x524] ss:$16 sps:$4 sm:$0xff]  }
 0x36a   : > { %2313 = vmatprep.subr.bf16.mxu0 %v9077_v57  ;;  %v9146_v57 = vld [vmem:[#allocation11 + $0x52c] ss:$16 sps:$4 sm:$0xff]   ;;  %3925 = vmatprep.subr.bf16.mxu1 %v9143_v56 }
 0x36d   : > { %2314 = vmatpush1.bf16.msra.mxu0 %v9075_v59 }
 0x36e   : > { %2315 = vmatprep.subr.bf16.mxu0 %v9080_v60 }
 0x371   : > { %2316 = vmatpush1.bf16.msra.mxu0 %v9078_v61  ;;  %v9141_v61 = vld [vmem:[#allocation11 + $0x520] ss:$16 sps:$4 sm:$0xff]  }
 0x372   : > { %2317 = vmatprep.subr.bf16.mxu0 %v9083_v1  ;;  %3926 = vmatpush1.bf16.msra.mxu1 %v9141_v61 }
 0x375   : > { %2318 = vmatpush1.bf16.msra.mxu0 %v9081_v2 }
 0x376   : > { %2319 = vmatprep.subr.bf16.mxu0 %v9086_v3  ;;  %v9144_v3 = vld [vmem:[#allocation11 + $0x528] ss:$16 sps:$4 sm:$0xff]  }
 0x379   : > { %2320 = vmatpush1.bf16.msra.mxu0 %v9084_v4 }
 0x37a   : > { %3989 = vmatprep.subr.bf16.mxu0 %v9092_v6  ;;  %v9149_v6 = vld [vmem:[#allocation11 + $0x544] ss:$16 sps:$4 sm:$0xff]  }
 0x37b   : > { %3927 = vmatprep.subr.bf16.mxu1 %v9149_v6 }
 0x37c   : > { %2322 = vmatmul.mubr.bf16.vlgmr.msra.gmra.mrb[8].mxu0 %v1920_v37  ;;  %v9134_v37 = vld [vmem:[#allocation11 + $0x4ec] ss:$16 sps:$4 sm:$0xff]  }
 0x37d   : > { %3990 = vmatpush1.bf16.msra.mxu0 %v9090_v5 }
 0x37e   : > { %3991 = vmatprep.subr.bf16.mxu0 %v9098_v8 }
 0x381   : > { %3992 = vmatpush1.bf16.msra.mxu0 %v9096_v11  ;;  %v9147_v11 = vld [vmem:[#allocation11 + $0x540] ss:$16 sps:$4 sm:$0xff]  }
 0x382   : > { %3993 = vmatprep.subr.bf16.mxu0 %v9104_v13  ;;  %v9152_v13 = vld [vmem:[#allocation11 + $0x54c] ss:$16 sps:$4 sm:$0xff]   ;;  %3928 = vmatpush1.bf16.msra.mxu1 %v9147_v11 }
 0x385   : > { %3994 = vmatpush1.bf16.msra.mxu0 %v9102_v16 }
 0x386   : > { %3995 = vmatprep.subr.bf16.mxu0 %v9110_v19  ;;  %v9155_v19 = vld [vmem:[#allocation11 + $0x564] ss:$16 sps:$4 sm:$0xff]  }
 0x387   : > { %3929 = vmatprep.subr.bf16.mxu1 %v9155_v19 }
 0x389   : > { %3996 = vmatpush1.bf16.msra.mxu0 %v9108_v21  ;;  %v9153_v21 = vld [vmem:[#allocation11 + $0x560] ss:$16 sps:$4 sm:$0xff]  }
 0x38a   : > { %3997 = vmatprep.subr.bf16.mxu0 %v9116_v23  ;;  %3930 = vmatpush1.bf16.msra.mxu1 %v9153_v21  ;;  %v9161_v23 = vld [vmem:[#allocation11 + $0x584] ss:$16 sps:$4 sm:$0xff]  }
 0x38b   : > { %3931 = vmatprep.subr.bf16.mxu1 %v9161_v23 }
 0x38d   : > { %3998 = vmatpush1.bf16.msra.mxu0 %v9114_v25  ;;  %v9159_v25 = vld [vmem:[#allocation11 + $0x580] ss:$16 sps:$4 sm:$0xff]  }
 0x38e   : > { %3999 = vmatprep.subr.bf16.mxu0 %v9122_v27  ;;  %v9167_v27 = vld [vmem:[#allocation11 + $0x5a4] ss:$16 sps:$4 sm:$0xff]   ;;  %3932 = vmatpush1.bf16.msra.mxu1 %v9159_v25 }
 0x38f   : > { %3933 = vmatprep.subr.bf16.mxu1 %v9167_v27 }
 0x391   : > { %4000 = vmatpush1.bf16.msra.mxu0 %v9120_v29  ;;  %v9165_v29 = vld [vmem:[#allocation11 + $0x5a0] ss:$16 sps:$4 sm:$0xff]  }
 0x392   : > { %4001 = vmatprep.subr.bf16.mxu0 %v9128_v31  ;;  %v9173_v31 = vld [vmem:[#allocation11 + $0x5c4] ss:$16 sps:$4 sm:$0xff]   ;;  %3934 = vmatpush1.bf16.msra.mxu1 %v9165_v29 }
 0x393   : > { %3935 = vmatprep.subr.bf16.mxu1 %v9173_v31 }
 0x395   : > { %4002 = vmatpush1.bf16.msra.mxu0 %v9126_v33  ;;  %v9171_v33 = vld [vmem:[#allocation11 + $0x5c0] ss:$16 sps:$4 sm:$0xff]  }
 0x396   : > { %4003 = vmatprep.subr.bf16.mxu0 %v9134_v37  ;;  %v9179_v37 = vld [vmem:[#allocation11 + $0x5e4] ss:$16 sps:$4 sm:$0xff]   ;;  %3936 = vmatpush1.bf16.msra.mxu1 %v9171_v33 }
 0x397   : > { %3937 = vmatprep.subr.bf16.mxu1 %v9179_v37 }
 0x399   : > { %4004 = vmatpush1.bf16.msra.mxu0 %v9132_v40  ;;  %v9180_v40 = vld [vmem:[#allocation11 + $0x5e8] ss:$16 sps:$4 sm:$0xff]  }
 0x39a   : > { %4005 = vmatprep.subr.bf16.mxu0 %v9140_v44  ;;  %3938 = vmatpush1.bf16.msra.mxu1 %v9177_v39  ;;  %v10364_v44 = vmov 1983009808  }
 0x39d   : > { %4006 = vmatpush1.bf16.msra.mxu0 %v9138_v48 }
 0x39e   : > { %4007 = vmatprep.subr.bf16.mxu0 %v9146_v57 }
 0x3a1   : > { %4008 = vmatpush1.bf16.msra.mxu0 %v9144_v3 }
 0x3a2   : > { %4009 = vmatprep.subr.bf16.mxu0 %v9152_v13 }
 0x3a5   : > { %4010 = vmatpush1.bf16.msra.mxu0 %v9150_v12 }
 0x3a6   : > { %4011 = vmatprep.subr.bf16.mxu0 %v9158_v20 }
 0x3a9   : > { %4012 = vmatpush1.bf16.msra.mxu0 %v9156_v22 }
 0x3aa   : > { %4013 = vmatprep.subr.bf16.mxu0 %v9164_v24 }
 0x3ad   : > { %4014 = vmatpush1.bf16.msra.mxu0 %v9162_v26 }
 0x3ae   : > { %4015 = vmatprep.subr.bf16.mxu0 %v9170_v28 }
 0x3b1   : > { %4016 = vmatpush1.bf16.msra.mxu0 %v9168_v30 }
 0x3b2   : > { %4017 = vmatprep.subr.bf16.mxu0 %v9176_v32 }
 0x3b5   : > { %4018 = vmatpush1.bf16.msra.mxu0 %v9174_v36 }
 0x40f   : > { %v2280_v62 = vpop.f32.mrb[4].mxu0 }
 0x410   : > { %v2362_v45 = vmul.f32 %v2345_v38, %v2280_v62  ;;  %v2282_v46 = vpop.f32.mrb[5].mxu0  ;;  %v10847_v62 = vsub.s32 2, %v10766_v10 }
 0x411   : > { %v2363_v49 = vmul.f32 %v2349_v41, %v2282_v46  ;;  %v2284_v50 = vpop.f32.mrb[6].mxu0 }
 0x412   : > { %v2392_v51 = vadd.f32 %v2375_v58, %v2362_v45  ;;  %v2366_v52 = vmul.f32 %v2345_v38, %v2284_v50  ;;  %v2286_v53 = vpop.f32.mrb[7].mxu0  ;;  %v9182_v38 = vld [vmem:[#allocation11 + $0x5ec] ss:$16 sps:$4 sm:$0xff]   ;;  %v2353_v43 = vrot.slane %v10818_v34, %v10847_v62  ;;  %v2437_v45 = vunpack.c.l.s4 %v10364_v44 }
 0x413   : > { %v2393_v54 = vadd.f32 %v2379_v42, %v2363_v49  ;;  %v2367_v55 = vmul.f32 %v2349_v41, %v2286_v53  ;;  %4019 = vmatprep.subr.bf16.mxu0 %v9182_v38  ;;  %v9185_v41 = vld [vmem:[#allocation11 + $0x604] ss:$16 sps:$4 sm:$0xff]   ;;  %v2383_v47 = vrot.slane %v10820_v35, %v10847_v62 }
 0x414   : > { %vm2400_vm10 = vcmp.ge.f32.partialorder %v2392_v51, 0.0  ;;  %v2408_v59 = vmul.f32 0.01, %v2392_v51  ;;  %v2396_v60 = vadd.f32 %v2375_v58, %v2366_v52  ;;  %v9188_v58 = vld [vmem:[#allocation11 + $0x60c] ss:$16 sps:$4 sm:$0xff]   ;;  %4020 = vmatpush1.bf16.msra.mxu0 %v9180_v40  ;;  %3948 = vmatprep.subr.bf16.mxu1 %v9185_v41  ;;  %v2438_v52 = vunpack.c.0.s8 %v2437_v45 }
 0x415   : > { %vm2401_vm11 = vcmp.ge.f32.partialorder %v2393_v54, 0.0  ;;  %v2409_v1 = vmul.f32 0.01, %v2393_v54  ;;  %v2397_v2 = vadd.f32 %v2379_v42, %v2367_v55  ;;  %4030 = vmatprep.subr.bf16.mxu0 %v9188_v58  ;;  %v10850_v42 = vsub.s32 3, %v10766_v10 }
 0x416   : > { %v10830_v4 = vsel %vm2400_vm10, %v2392_v51, %v2408_v59  ;;  %vm2404_vm12 = vcmp.ge.f32.partialorder %v2396_v60, 0.0  ;;  %v2412_v63 = vmul.f32 0.01, %v2396_v60 }
 0x417   : > { %v10832_v0 = vsel %vm2401_vm11, %v2393_v54, %v2409_v1  ;;  %vm2405_vm13 = vcmp.ge.f32.partialorder %v2397_v2, 0.0  ;;  %v2413_v5 = vmul.f32 0.01, %v2397_v2  ;;  %v2357_v46 = vrot.slane %v10818_v34, %v10850_v42 }
 0x418   : > { %v2432_v7 = vcombine.low %v10830_v4, %v10832_v0  ;;  %v2433_v8 = vcombine.high %v10830_v4, %v10832_v0  ;;  %v10838_v9 = vsel %vm2404_vm12, %v2396_v60, %v2412_v63  ;;  %v2387_v49 = vrot.slane %v10820_v35, %v10850_v42 }
 0x419   : > { %v10840_v14 = vsel %vm2405_vm13, %v2397_v2, %v2413_v5  ;;  %v10861_v1 = vsub.s32 %v2438_v52, %v10766_v10 }
 0x41a   : > { %v2468_v16 = vcombine.low %v10838_v9, %v10840_v14  ;;  %v2469_v17 = vcombine.high %v10838_v9, %v10840_v14 }
 0x41b   : > { %v2442_v19 = vrot.slane %v2432_v7, %v10861_v1  ;;  %v2449_v10 = vrot.slane %v2433_v8, %v10861_v1 }
 0x41c   : > { %v10885_v7 = vrot.slane %v2468_v16, %v10861_v1  ;;  %v10899_v16 = vrot.slane %v2469_v17, %v10861_v1 }
 0x44f   : > { %v2323_v48 = vpop.f32.mrb[8].mxu0 }
 0x450   : > { %v2364_v50 = vmul.f32 %v2353_v43, %v2323_v48  ;;  %v2325_v51 = vpop.f32.mrb[9].mxu0 }
 0x451   : > { %v2365_v53 = vmul.f32 %v2357_v46, %v2325_v51  ;;  %v2327_v54 = vpop.f32.mrb[10].mxu0 }
 0x452   : > { %v2394_v55 = vadd.f32 %v2383_v47, %v2364_v50  ;;  %v2368_v56 = vmul.f32 %v2353_v43, %v2327_v54  ;;  %v2329_v57 = vpop.f32.mrb[11].mxu0 }
 0x453   : > { %v2395_v59 = vadd.f32 %v2387_v49, %v2365_v53  ;;  %v2369_v60 = vmul.f32 %v2357_v46, %v2329_v57 }
 0x454   : > { %vm2402_vm14 = vcmp.ge.f32.partialorder %v2394_v55, 0.0  ;;  %v2410_v61 = vmul.f32 0.01, %v2394_v55  ;;  %v2398_v34 = vadd.f32 %v2383_v47, %v2368_v56 }
 0x455   : > { %vm2403_vm15 = vcmp.ge.f32.partialorder %v2395_v59, 0.0  ;;  %v2411_v2 = vmul.f32 0.01, %v2395_v59  ;;  %v2399_v3 = vadd.f32 %v2387_v49, %v2369_v60 }
 0x456   : > { %v2418_v35 = vsel %vm2402_vm14, %v2394_v55, %v2410_v61  ;;  %vm2406_vm1 = vcmp.ge.f32.partialorder %v2398_v34, 0.0  ;;  %v2414_v63 = vmul.f32 0.01, %v2398_v34 }
 0x457   : > { %v2419_v5 = vsel %vm2403_vm15, %v2395_v59, %v2411_v2  ;;  %vm2407_vm3 = vcmp.ge.f32.partialorder %v2399_v3, 0.0  ;;  %v2415_v6 = vmul.f32 0.01, %v2399_v3 }
 0x458   : > { %v2434_v11 = vcombine.low %v2418_v35, %v2419_v5  ;;  %v2435_v12 = vcombine.high %v2418_v35, %v2419_v5  ;;  %v10863_v13 = vsel %vm2406_vm1, %v2398_v34, %v2414_v63 }
 0x459   : > { %v10873_v20 = vsel %vm2407_vm3, %v2399_v3, %v2415_v6 }
 0x45a   : > { %v2456_v21 = vrot.slane %v2434_v11, %v10861_v1  ;;  %v2463_v22 = vrot.slane %v2435_v12, %v10861_v1  ;;  %v2470_v23 = vcombine.low %v10863_v13, %v10873_v20  ;;  %v2471_v24 = vcombine.high %v10863_v13, %v10873_v20 }
 0x45c   : > { %v2464_v4 = vcombine.low %v2442_v19, %v2456_v21  ;;  %v2465_v0 = vcombine.high %v2442_v19, %v2456_v21  ;;  %v2466_v8 = vcombine.low %v2449_v10, %v2463_v22  ;;  %v2467_v25 = vcombine.high %v2449_v10, %v2463_v22 }
 0x45d   : > { %v7961_v26 = vcombine.low %v2456_v21, %v2456_v21  ;;  %v7962_v27 = vcombine.high %v2456_v21, %v2456_v21  ;;  %v7963_v28 = vcombine.low %v2463_v22, %v2463_v22  ;;  %v7964_v29 = vcombine.high %v2463_v22, %v2463_v22 }
 0x45e   : > { %v2511_v30 = vrot.slane %v2464_v4, %v10861_v1  ;;  %v2528_v31 = vrot.slane %v2465_v0, %v10861_v1  ;;  %v10890_v32 = vrot.slane %v2466_v8, %v10861_v1  ;;  %v10893_v33 = vrot.slane %v2467_v25, %v10861_v1 }
 0x45f   : > { %v2518_v36 = vrot.slane %v7961_v26, %v10861_v1  ;;  %v2535_v37 = vrot.slane %v7962_v27, %v10861_v1  ;;  %v10904_v38 = vrot.slane %v7963_v28, %v10861_v1  ;;  %v10909_v58 = vrot.slane %v7964_v29, %v10861_v1 }
 0x460   : > { %v2519_v39 = vcombine.high %v2511_v30, %v2511_v30  ;;  %v2536_v40 = vcombine.high %v2528_v31, %v2528_v31  ;;  %v2553_v41 = vcombine.high %v10890_v32, %v10890_v32  ;;  %v2570_v14 = vcombine.high %v10893_v33, %v10893_v33 }
 0x461   : > { %v2520_v43 = vcombine.high %v2518_v36, %v2518_v36  ;;  %v2537_v44 = vcombine.high %v2535_v37, %v2535_v37  ;;  %v2554_v9 = vcombine.high %v10904_v38, %v10904_v38  ;;  %v2672_v17 = vsel %vm628_vm0, %v2511_v30, -inf }
 0x462   : > { %v2679_v45 = vsel %vm628_vm0, %v2519_v39, -inf  ;;  %v2686_v46 = vsel %vm628_vm0, %v2518_v36, -inf  ;;  %v2700_v47 = vsel %vm628_vm0, %v2528_v31, -inf  ;;  %v2673_v48 = vrot.slane %v2672_v17, 4 }
 0x463   : > { %v2680_v49 = vrot.slane %v2679_v45, 4  ;;  %v2687_v50 = vrot.slane %v2686_v46, 4  ;;  %v2693_v51 = vsel %vm628_vm0, %v2520_v43, -inf  ;;  %v2701_v53 = vrot.slane %v2700_v47, 4 }
 0x464   : > { %v2694_v52 = vrot.slane %v2693_v51, 4  ;;  %v2707_v54 = vsel %vm628_vm0, %v2536_v40, -inf  ;;  %v2714_v55 = vsel %vm628_vm0, %v2535_v37, -inf  ;;  %v2674_v56 = vmax.f32 %v2672_v17, %v2673_v48 }
 0x465   : > { %v2681_v57 = vmax.f32 %v2679_v45, %v2680_v49  ;;  %v2688_v59 = vmax.f32 %v2686_v46, %v2687_v50  ;;  %v2708_v60 = vrot.slane %v2707_v54, 4  ;;  %v2702_v34 = vmax.f32 %v2700_v47, %v2701_v53 }
 0x466   : > { %v2695_v61 = vmax.f32 %v2693_v51, %v2694_v52  ;;  %v2715_v2 = vrot.slane %v2714_v55, 4  ;;  %v2721_v3 = vsel %vm628_vm0, %v2537_v44, -inf  ;;  %v2675_v35 = vrot.slane %v2674_v56, 2 }
 0x467   : > { %v2682_v63 = vrot.slane %v2681_v57, 2  ;;  %v2689_v5 = vrot.slane %v2688_v59, 2  ;;  %v10923_v6 = vmax.f32 %v2707_v54, %v2708_v60  ;;  %v2703_v12 = vrot.slane %v2702_v34, 2 }
 0x468   : > { %v2696_v11 = vrot.slane %v2695_v61, 2  ;;  %v2716_v19 = vmax.f32 %v2714_v55, %v2715_v2  ;;  %v2722_v10 = vrot.slane %v2721_v3, 4  ;;  %v2571_v21 = vcombine.high %v10909_v58, %v10909_v58 }
 0x469   : > { %v2676_v22 = vmax.f32 %v2674_v56, %v2675_v35  ;;  %v2683_v4 = vmax.f32 %v2681_v57, %v2682_v63  ;;  %v2690_v0 = vmax.f32 %v2688_v59, %v2689_v5  ;;  %v2704_v25 = vmax.f32 %v2702_v34, %v2703_v12 }
 0x46a   : > { %v10927_v8 = vmax.f32 %v2695_v61, %v2696_v11  ;;  %v2717_v26 = vrot.slane %v2716_v19, 2  ;;  %v10929_v27 = vmax.f32 %v2721_v3, %v2722_v10  ;;  %v2728_v31 = vsel %vm628_vm0, %v10890_v32, -inf }
 0x46b   : > { %v2677_v28 = vrot.slane %v2676_v22, 1  ;;  %v2684_v29 = vrot.slane %v2683_v4, 1  ;;  %v2691_v30 = vrot.slane %v2690_v0, 1  ;;  %v2705_v37 = vrot.slane %v2704_v25, 1 }
 0x46c   : > { %v2698_v36 = vrot.slane %v10927_v8, 1  ;;  %v2710_v39 = vrot.slane %v10923_v6, 2  ;;  %v2718_v40 = vmax.f32 %v2716_v19, %v2717_v26  ;;  %v2724_v17 = vrot.slane %v10929_v27, 2 }
 0x46d   : > { %v2678_v43 = vmax.f32 %v2676_v22, %v2677_v28  ;;  %v10935_v44 = vmax.f32 %v2683_v4, %v2684_v29  ;;  %v2729_v45 = vrot.slane %v2728_v31, 4  ;;  %v2692_v46 = vmax.f32 %v2690_v0, %v2691_v30 }
 0x46e   : > { %v10938_v47 = vmax.f32 %v2704_v25, %v2705_v37  ;;  %v2719_v48 = vrot.slane %v2718_v40, 1  ;;  %v2735_v49 = vsel %vm628_vm0, %v2553_v41, -inf  ;;  %v2742_v51 = vsel %vm628_vm0, %v10904_v38, -inf }
 0x46f   : > { %v2730_v32 = vmax.f32 %v2728_v31, %v2729_v45  ;;  %v2736_v50 = vrot.slane %v2735_v49, 4  ;;  %v2749_v52 = vsel %vm628_vm0, %v2554_v9, -inf  ;;  %v2743_v54 = vrot.slane %v2742_v51, 4 }
 0x470   : > { %v10944_v53 = vmax.f32 %v2718_v40, %v2719_v48  ;;  %v2750_v55 = vrot.slane %v2749_v52, 4  ;;  %v2756_v56 = vsel %vm628_vm0, %v10893_v33, -inf  ;;  %v2763_v41 = vsel %vm628_vm0, %v2570_v14, -inf }
 0x471   : > { %v2731_v57 = vrot.slane %v2730_v32, 2  ;;  %v2737_v59 = vmax.f32 %v2735_v49, %v2736_v50  ;;  %v2757_v60 = vrot.slane %v2756_v56, 4  ;;  %v2744_v61 = vmax.f32 %v2742_v51, %v2743_v54 }
 0x472   : > { %v2751_v38 = vmax.f32 %v2749_v52, %v2750_v55  ;;  %v2764_v34 = vrot.slane %v2763_v41, 4  ;;  %v2770_v9 = vsel %vm628_vm0, %v10909_v58, -inf  ;;  %v2777_v19 = vsel %vm628_vm0, %v2571_v21, -inf }
 0x473   : > { %v2732_v2 = vmax.f32 %v2730_v32, %v2731_v57  ;;  %v2738_v3 = vrot.slane %v2737_v59, 2  ;;  %v2758_v35 = vmax.f32 %v2756_v56, %v2757_v60  ;;  %v2771_v63 = vrot.slane %v2770_v9, 4 }
 0x474   : > { %v2745_v5 = vrot.slane %v2744_v61, 2  ;;  %v2752_v11 = vrot.slane %v2751_v38, 2  ;;  %v2765_v12 = vmax.f32 %v2763_v41, %v2764_v34  ;;  %v2778_v26 = vrot.slane %v2777_v19, 4 }
 0x475   : > { %v2733_v10 = vrot.slane %v2732_v2, 1  ;;  %v2739_v33 = vmax.f32 %v2737_v59, %v2738_v3  ;;  %v2759_v22 = vrot.slane %v2758_v35, 2  ;;  %v2772_v14 = vmax.f32 %v2770_v9, %v2771_v63 }
 0x476   : > { %v2746_v4 = vmax.f32 %v2744_v61, %v2745_v5  ;;  %v2753_v0 = vmax.f32 %v2751_v38, %v2752_v11  ;;  %v2766_v25 = vrot.slane %v2765_v12, 2  ;;  %v2779_v45 = vmax.f32 %v2777_v19, %v2778_v26 }
 0x477   : > { %v2734_v28 = vmax.f32 %v2732_v2, %v2733_v10  ;;  %v2740_v58 = vrot.slane %v2739_v33, 1  ;;  %v2760_v29 = vmax.f32 %v2758_v35, %v2759_v22  ;;  %v2773_v30 = vrot.slane %v2772_v14, 2 }
 0x478   : > { %v2747_v31 = vrot.slane %v2746_v4, 1  ;;  %v2754_v37 = vrot.slane %v2753_v0, 1  ;;  %v2767_v40 = vmax.f32 %v2765_v12, %v2766_v25  ;;  %v10956_v48 = vmax.f32 %v10927_v8, %v2698_v36 }
 0x479   : > { %v2761_v21 = vrot.slane %v2760_v29, 1  ;;  %v2774_v49 = vmax.f32 %v2772_v14, %v2773_v30  ;;  %v2929_v32 = vsel %vm2928_vm4, %v10938_v47, %v2678_v43  ;;  %v10960_v50 = vmax.f32 %v2739_v33, %v2740_v58 }
 0x47a   : > { %v2748_v51 = vmax.f32 %v2746_v4, %v2747_v31  ;;  %v2768_v52 = vrot.slane %v2767_v40, 1  ;;  %v2780_v54 = vrot.slane %v2779_v45, 2  ;;  %v2931_v57 = vsel %vm2930_vm5, %v2734_v28, %v2929_v32 }
 0x47b   : > { %v2762_v55 = vmax.f32 %v2760_v29, %v2761_v21  ;;  %v2775_v56 = vrot.slane %v2774_v49, 1  ;;  %v2946_v59 = vsel %vm2928_vm4, %v10944_v53, %v2692_v46  ;;  %v10965_v60 = vmax.f32 %v2753_v0, %v2754_v37 }
 0x47c   : > { %v2781_v8 = vmax.f32 %v2779_v45, %v2780_v54  ;;  %v2947_v36 = vsel %vm2930_vm5, %v2748_v51, %v2946_v59  ;;  %v2492_v43 = vrot.slane %v2470_v23, %v10861_v1  ;;  %v10972_v41 = vmax.f32 %v2767_v40, %v2768_v52 }
 0x47d   : > { %v2776_v61 = vmax.f32 %v2774_v49, %v2775_v56  ;;  %v10975_v38 = vsel %vm2932_vm6, %v2762_v55, %v2931_v57  ;;  %v2499_v46 = vrot.slane %v2471_v24, %v10861_v1  ;;  %v10994_v20 = vmax.f32 %v10923_v6, %v2710_v39 }
 0x47e   : > { %v2782_v34 = vrot.slane %v2781_v8, 1  ;;  %v2500_v9 = vcombine.low %v10885_v7, %v2492_v43  ;;  %v2501_v2 = vcombine.high %v10885_v7, %v2492_v43  ;;  %v7965_v3 = vcombine.low %v2492_v43, %v2492_v43 }
 0x47f   : > { %v10984_v35 = vsel %vm2932_vm6, %v2776_v61, %v2947_v36  ;;  %v2502_v23 = vcombine.low %v10899_v16, %v2499_v46  ;;  %v2503_v63 = vcombine.high %v10899_v16, %v2499_v46  ;;  %v7966_v5 = vcombine.high %v2492_v43, %v2492_v43 }
 0x480   : > { %v2579_v11 = vrot.slane %v2500_v9, %v10861_v1  ;;  %v2586_v12 = vrot.slane %v7965_v3, %v10861_v1  ;;  %v2596_v13 = vrot.slane %v2501_v2, %v10861_v1  ;;  %v7967_v7 = vcombine.low %v2499_v46, %v2499_v46 }
 0x481   : > { %v2603_v24 = vrot.slane %v7966_v5, %v10861_v1  ;;  %v10998_v19 = vrot.slane %v2502_v23, %v10861_v1  ;;  %v7968_v10 = vcombine.high %v2499_v46, %v2499_v46  ;;  %v11001_v14 = vrot.slane %v2503_v63, %v10861_v1 }
 0x482   : > { %v2587_v16 = vcombine.high %v2579_v11, %v2579_v11  ;;  %v2588_v33 = vcombine.high %v2586_v12, %v2586_v12  ;;  %v2604_v22 = vcombine.high %v2596_v13, %v2596_v13  ;;  %v11003_v4 = vmax.f32 %v2781_v8, %v2782_v34 }
 0x483   : > { %v2605_v0 = vcombine.high %v2603_v24, %v2603_v24  ;;  %v11006_v25 = vrot.slane %v7967_v7, %v10861_v1  ;;  %v2621_v6 = vcombine.high %v10998_v19, %v10998_v19  ;;  %v11011_v39 = vrot.slane %v7968_v10, %v10861_v1 }
 0x484   : > { %v2784_v26 = vsel %vm628_vm0, %v2579_v11, -inf  ;;  %v2791_v28 = vsel %vm628_vm0, %v2587_v16, -inf  ;;  %v2798_v58 = vsel %vm628_vm0, %v2586_v12, -inf  ;;  %v2638_v30 = vcombine.high %v11001_v14, %v11001_v14 }
 0x485   : > { %v2622_v29 = vcombine.high %v11006_v25, %v11006_v25  ;;  %v2785_v31 = vrot.slane %v2784_v26, 4  ;;  %v2792_v37 = vrot.slane %v2791_v28, 4  ;;  %v2799_v40 = vrot.slane %v2798_v58, 4 }
 0x486   : > { %v2805_v45 = vsel %vm628_vm0, %v2588_v33, -inf  ;;  %v2812_v21 = vsel %vm628_vm0, %v2596_v13, -inf  ;;  %v2819_v49 = vsel %vm628_vm0, %v2604_v22, -inf  ;;  %v2826_v57 = vsel %vm628_vm0, %v2603_v24, -inf }
 0x487   : > { %v2786_v32 = vmax.f32 %v2784_v26, %v2785_v31  ;;  %v2793_v51 = vmax.f32 %v2791_v28, %v2792_v37  ;;  %v2806_v52 = vrot.slane %v2805_v45, 4  ;;  %v2813_v54 = vrot.slane %v2812_v21, 4 }
 0x488   : > { %v2800_v55 = vmax.f32 %v2798_v58, %v2799_v40  ;;  %v2820_v56 = vrot.slane %v2819_v49, 4  ;;  %v2833_v59 = vsel %vm628_vm0, %v2605_v0, -inf  ;;  %v2827_v9 = vrot.slane %v2826_v57, 4 }
 0x489   : > { %v2787_v8 = vrot.slane %v2786_v32, 2  ;;  %v2794_v36 = vrot.slane %v2793_v51, 2  ;;  %v2807_v43 = vmax.f32 %v2805_v45, %v2806_v52  ;;  %v2814_v61 = vmax.f32 %v2812_v21, %v2813_v54 }
 0x48a   : > { %v2801_v46 = vrot.slane %v2800_v55, 2  ;;  %v2821_v34 = vmax.f32 %v2819_v49, %v2820_v56  ;;  %v2834_v2 = vrot.slane %v2833_v59, 4  ;;  %v2828_v13 = vmax.f32 %v2826_v57, %v2827_v9 }
 0x48b   : > { %v2788_v3 = vmax.f32 %v2786_v32, %v2787_v8  ;;  %v2795_v23 = vmax.f32 %v2793_v51, %v2794_v36  ;;  %v2808_v63 = vrot.slane %v2807_v43, 2  ;;  %v2815_v5 = vrot.slane %v2814_v61, 2 }
 0x48c   : > { %v2802_v11 = vmax.f32 %v2800_v55, %v2801_v46  ;;  %v2822_v12 = vrot.slane %v2821_v34, 2  ;;  %v2835_v7 = vmax.f32 %v2833_v59, %v2834_v2  ;;  %v2829_v26 = vrot.slane %v2828_v13, 2 }
 0x48d   : > { %v2789_v10 = vrot.slane %v2788_v3, 1  ;;  %v2796_v24 = vrot.slane %v2795_v23, 1  ;;  %v2809_v16 = vmax.f32 %v2807_v43, %v2808_v63  ;;  %v2816_v33 = vmax.f32 %v2814_v61, %v2815_v5 }
 0x48e   : > { %v2803_v22 = vrot.slane %v2802_v11, 1  ;;  %v2823_v0 = vmax.f32 %v2821_v34, %v2822_v12  ;;  %v2836_v28 = vrot.slane %v2835_v7, 2  ;;  %v2639_v58 = vcombine.high %v11011_v39, %v11011_v39 }
 0x48f   : > { %v11027_v31 = vmax.f32 %v2788_v3, %v2789_v10  ;;  %v2810_v37 = vrot.slane %v2809_v16, 1  ;;  %v2817_v40 = vrot.slane %v2816_v33, 1  ;;  %v11029_v45 = vmax.f32 %v2795_v23, %v2796_v24 }
 0x490   : > { %v11031_v21 = vmax.f32 %v2802_v11, %v2803_v22  ;;  %v2830_v49 = vmax.f32 %v2828_v13, %v2829_v26  ;;  %v11033_v32 = vmax.f32 %v2835_v7, %v2836_v28  ;;  %v2824_v52 = vrot.slane %v2823_v0, 1 }
 0x491   : > { %v11035_v51 = vmax.f32 %v2809_v16, %v2810_v37  ;;  %v2840_v54 = vsel %vm628_vm0, %v10998_v19, -inf  ;;  %v2847_v55 = vsel %vm628_vm0, %v2621_v6, -inf  ;;  %v2818_v56 = vmax.f32 %v2816_v33, %v2817_v40 }
 0x492   : > { %v2831_v57 = vrot.slane %v2830_v49, 1  ;;  %v2841_v59 = vrot.slane %v2840_v54, 4  ;;  %v2848_v8 = vrot.slane %v2847_v55, 4  ;;  %v2854_v36 = vsel %vm628_vm0, %v11006_v25, -inf }
 0x493   : > { %v2861_v43 = vsel %vm628_vm0, %v2622_v29, -inf  ;;  %v2868_v61 = vsel %vm628_vm0, %v11001_v14, -inf  ;;  %v2875_v46 = vsel %vm628_vm0, %v2638_v30, -inf  ;;  %v2838_v34 = vrot.slane %v11033_v32, 1 }
 0x494   : > { %v2842_v19 = vmax.f32 %v2840_v54, %v2841_v59  ;;  %v2849_v9 = vmax.f32 %v2847_v55, %v2848_v8  ;;  %v2855_v6 = vrot.slane %v2854_v36, 4  ;;  %v2862_v2 = vrot.slane %v2861_v43, 4 }
 0x495   : > { %v2869_v3 = vrot.slane %v2868_v61, 4  ;;  %v2876_v23 = vrot.slane %v2875_v46, 4  ;;  %v2882_v63 = vsel %vm628_vm0, %v11011_v39, -inf  ;;  %v2889_v13 = vsel %vm628_vm0, %v2639_v58, -inf }
 0x496   : > { %v2843_v25 = vrot.slane %v2842_v19, 2  ;;  %v2850_v29 = vrot.slane %v2849_v9, 2  ;;  %v2856_v5 = vmax.f32 %v2854_v36, %v2855_v6  ;;  %v2883_v11 = vrot.slane %v2882_v63, 4 }
 0x497   : > { %v2863_v14 = vmax.f32 %v2861_v43, %v2862_v2  ;;  %v2870_v30 = vmax.f32 %v2868_v61, %v2869_v3  ;;  %v2877_v12 = vmax.f32 %v2875_v46, %v2876_v23  ;;  %v2890_v16 = vrot.slane %v2889_v13, 4 }
 0x498   : > { %v2844_v7 = vmax.f32 %v2842_v19, %v2843_v25  ;;  %v2857_v10 = vrot.slane %v2856_v5, 2  ;;  %v2884_v24 = vmax.f32 %v2882_v63, %v2883_v11  ;;  %v2832_v33 = vmax.f32 %v2830_v49, %v2831_v57 }
 0x499   : > { %v2871_v22 = vrot.slane %v2870_v30, 2  ;;  %v2878_v26 = vrot.slane %v2877_v12, 2  ;;  %v2712_v39 = vrot.slane %v10994_v20, 1  ;;  %v2891_v54 = vmax.f32 %v2889_v13, %v2890_v16 }
 0x49a   : > { %v2845_v28 = vrot.slane %v2844_v7, 1  ;;  %v2858_v37 = vmax.f32 %v2856_v5, %v2857_v10  ;;  %v2885_v40 = vrot.slane %v2884_v24, 2  ;;  %v2864_v55 = vrot.slane %v2863_v14, 2 }
 0x49b   : > { %v2872_v59 = vmax.f32 %v2870_v30, %v2871_v22  ;;  %v2713_v8 = vmax.f32 %v10994_v20, %v2712_v39  ;;  %v2851_v36 = vmax.f32 %v2849_v9, %v2850_v29  ;;  %v2825_v46 = vmax.f32 %v2823_v0, %v2824_v52 }
 0x49c   : > { %v2846_v43 = vmax.f32 %v2844_v7, %v2845_v28  ;;  %v2859_v58 = vrot.slane %v2858_v37, 1  ;;  %v2886_v61 = vmax.f32 %v2884_v24, %v2885_v40  ;;  %v2879_v49 = vmax.f32 %v2877_v12, %v2878_v26 }
 0x49d   : > { %v2873_v19 = vrot.slane %v2872_v59, 1  ;;  %v2852_v6 = vrot.slane %v2851_v36, 1  ;;  %v2940_v57 = vsel %vm2928_vm4, %v2713_v8, %v10935_v44  ;;  %v2892_v3 = vrot.slane %v2891_v54, 2 }
 0x49e   : > { %v2887_v2 = vrot.slane %v2886_v61, 1  ;;  %v2941_v23 = vsel %vm2930_vm5, %v10960_v50, %v2940_v57  ;;  %v2935_v20 = vsel %vm2934_vm7, %v11027_v31, %v10975_v38  ;;  %v2880_v25 = vrot.slane %v2879_v49, 1 }
 0x49f   : > { %v2874_v9 = vmax.f32 %v2872_v59, %v2873_v19  ;;  %v2853_v63 = vmax.f32 %v2851_v36, %v2852_v6  ;;  %v2942_v0 = vsel %vm2932_vm6, %v10972_v41, %v2941_v23  ;;  %v2860_v52 = vmax.f32 %v2858_v37, %v2859_v58  ;;  %v9183_v58 = vld [vmem:[#allocation11 + $0x600] ss:$16 sps:$4 sm:$0xff]   ;;  %v9191_v6 = vld [vmem:[#allocation11 + $0x624] ss:$16 sps:$4 sm:$0xff]  }
 0x4a0   : > { %v2943_v29 = vsel %vm2934_vm7, %v11029_v45, %v2942_v0  ;;  %v2937_v44 = vsel %vm2936_vm8, %v2818_v56, %v2935_v20  ;;  %v2725_v50 = vmax.f32 %v10929_v27, %v2724_v17  ;;  %v2881_v5 = vmax.f32 %v2879_v49, %v2880_v25  ;;  %v9194_v49 = vld [vmem:[#allocation11 + $0x62c] ss:$16 sps:$4 sm:$0xff]   ;;  %v9197_v20 = vld [vmem:[#allocation11 + $0x644] ss:$16 sps:$4 sm:$0xff]   ;;  %v9195_v0 = vld [vmem:[#allocation11 + $0x640] ss:$16 sps:$4 sm:$0xff]  }
 0x4a1   : > { %v2944_v11 = vsel %vm2936_vm8, %v2825_v46, %v2943_v29  ;;  %v2939_v38 = vsel %vm2938_vm9, %v2846_v43, %v2937_v44  ;;  %v2970_v31 = vsel %vm590_vm2, %v2874_v9, %v2846_v43  ;;  %v2888_v30 = vmax.f32 %v2886_v61, %v2887_v2  ;;  %v9189_v2 = vld [vmem:[#allocation11 + $0x620] ss:$16 sps:$4 sm:$0xff]   ;;  %v9200_v9 = vld [vmem:[#allocation11 + $0x64c] ss:$16 sps:$4 sm:$0xff]   ;;  %v9203_v44 = vld [vmem:[#allocation11 + $0x664] ss:$16 sps:$4 sm:$0xff]  }
 0x4a2   : > { %v2945_v41 = vsel %vm2938_vm9, %v2853_v63, %v2944_v11  ;;  %v2966_v12 = vsel %vm590_vm2, %v10938_v47, %v2939_v38  ;;  %v2726_v45 = vrot.slane %v2725_v50, 1  ;;  %v2971_v13 = vsel %vm590_vm2, %v2881_v5, %v2853_v63  ;;  %v9201_v5 = vld [vmem:[#allocation11 + $0x660] ss:$16 sps:$4 sm:$0xff]   ;;  %v9204_v11 = vld [vmem:[#allocation11 + $0x668] ss:$16 sps:$4 sm:$0xff]  }
 0x4a3   : > { %v2967_v56 = vsel %vm590_vm2, %v2713_v8, %v2945_v41  ;;  %v11075_v7 = vpack.c.bf16 %v2970_v31, %v2966_v12  ;;  %v2865_v27 = vmax.f32 %v2863_v14, %v2864_v55  ;;  %v2893_v24 = vmax.f32 %v2891_v54, %v2892_v3  ;;  %v9192_v3 = vld [vmem:[#allocation11 + $0x628] ss:$16 sps:$4 sm:$0xff]   ;;  %v9209_v38 = vld [vmem:[#allocation11 + $0x684] ss:$16 sps:$4 sm:$0xff]   ;;  %v9212_v31 = vld [vmem:[#allocation11 + $0x68c] ss:$16 sps:$4 sm:$0xff]  }
 0x4a4   : > { %v11077_v17 = vpack.c.bf16 %v2971_v13, %v2967_v56  ;;  %v2727_v10 = vmax.f32 %v2725_v50, %v2726_v45  ;;  %v2949_v16 = vsel %vm2934_vm7, %v11031_v21, %v10984_v35  ;;  %v2839_v47 = vmax.f32 %v11033_v32, %v2838_v34  ;;  %v9206_v50 = vld [vmem:[#allocation11 + $0x66c] ss:$16 sps:$4 sm:$0xff]   ;;  %v9210_v41 = vld [vmem:[#allocation11 + $0x688] ss:$16 sps:$4 sm:$0xff]   ;;  %v9215_v12 = vld [vmem:[#allocation11 + $0x6a4] ss:$16 sps:$4 sm:$0xff]  }
 0x4a5   : > { %v3238_v22 = vshll.u32 %v11075_v7, 16  ;;  %v2866_v26 = vrot.slane %v2865_v27, 1  ;;  %v2950_v39 = vsel %vm2936_vm8, %v2832_v33, %v2949_v16  ;;  %v2894_v37 = vrot.slane %v2893_v24, 1  ;;  %v9218_v45 = vld [vmem:[#allocation11 + $0x6ac] ss:$16 sps:$4 sm:$0xff]  }
 0x4a6   : > { %v3243_v28 = vshrl.u32 %v11077_v17, 16  ;;  %v3245_v14 = vshll.u32 %v11077_v17, 16  ;;  %v2952_v40 = vsel %vm2928_vm4, %v2727_v10, %v10956_v48  ;;  %v2951_v21 = vsel %vm2938_vm9, %v2860_v52, %v2950_v39  ;;  %v9213_v56 = vld [vmem:[#allocation11 + $0x6a0] ss:$16 sps:$4 sm:$0xff]   ;;  %v9216_v13 = vld [vmem:[#allocation11 + $0x6a8] ss:$16 sps:$4 sm:$0xff]  }
 0x4a7   : > { %v3240_v54 = vrot.slane %v3238_v22, 1  ;;  %v2867_v55 = vmax.f32 %v2865_v27, %v2866_v26  ;;  %v2953_v35 = vsel %vm2930_vm5, %v10965_v60, %v2952_v40  ;;  %v2895_v32 = vmax.f32 %v2893_v24, %v2894_v37  ;;  %v9186_v60 = vld [vmem:[#allocation11 + $0x608] ss:$16 sps:$4 sm:$0xff]   ;;  %v9221_v27 = vld [vmem:[#allocation11 + $0x6c4] ss:$16 sps:$4 sm:$0xff]  }
 0x4a8   : > { %v3247_v59 = vrot.slane %v3245_v14, 1  ;;  %v2954_v34 = vsel %vm2932_vm6, %v11003_v4, %v2953_v35  ;;  %v2968_v33 = vsel %vm590_vm2, %v10944_v53, %v2951_v21  ;;  %v3236_v8 = vshrl.u32 %v11075_v7, 16  ;;  %v9219_v24 = vld [vmem:[#allocation11 + $0x6c0] ss:$16 sps:$4 sm:$0xff]   ;;  %v9222_v16 = vld [vmem:[#allocation11 + $0x6c8] ss:$16 sps:$4 sm:$0xff]  }
 0x4a9   : > { %v2955_v48 = vsel %vm2934_vm7, %v11035_v51, %v2954_v34  ;;  %v2972_v36 = vsel %vm590_vm2, %v2888_v30, %v2860_v52  ;;  %v2973_v51 = vsel %vm590_vm2, %v2895_v32, %v2867_v55  ;;  %v9198_v52 = vld [vmem:[#allocation11 + $0x648] ss:$16 sps:$4 sm:$0xff]   ;;  %v9207_v30 = vld [vmem:[#allocation11 + $0x680] ss:$16 sps:$4 sm:$0xff]   ;;  %v9227_v22 = vld [vmem:[#allocation11 + $0x6e4] ss:$16 sps:$4 sm:$0xff]  }
 0x4aa   : > { %v3248_v43 = vor.u32 %v3247_v59, %v3243_v28  ;;  %v2956_v61 = vsel %vm2936_vm8, %v2839_v47, %v2955_v48  ;;  %v11103_v46 = vpack.c.bf16 %v2972_v36, %v2968_v33  ;;  %v3241_v19 = vor.u32 %v3240_v54, %v3236_v8  ;;  %v9230_v47 = vld [vmem:[#allocation11 + $0x6ec] ss:$16 sps:$4 sm:$0xff]   ;;  %v9225_v26 = vld [vmem:[#allocation11 + $0x6e0] ss:$16 sps:$4 sm:$0xff]   ;;  %v9228_v39 = vld [vmem:[#allocation11 + $0x6e8] ss:$16 sps:$4 sm:$0xff]  }
 0x4ab   : > { %v2957_v4 = vsel %vm2938_vm9, %v2867_v55, %v2956_v61  ;;  %v9233_v28 = vld [vmem:[#allocation11 + $0x704] ss:$16 sps:$4 sm:$0xff]   ;;  %v9236_v14 = vld [vmem:[#allocation11 + $0x70c] ss:$16 sps:$4 sm:$0xff]   ;;  %v9231_v37 = vld [vmem:[#allocation11 + $0x700] ss:$16 sps:$4 sm:$0xff]  }
 0x4ac   : > { %3939 = vmatprep.mubr.bf16.mxu1 %v3248_v43  ;;  %4021 = vmatprep.mubr.bf16.mxu0 %v3248_v43  ;;  %v2969_v53 = vsel %vm590_vm2, %v2727_v10, %v2957_v4  ;;  %v9224_v10 = vld [vmem:[#allocation11 + $0x6cc] ss:$16 sps:$4 sm:$0xff]   ;;  %v9234_v40 = vld [vmem:[#allocation11 + $0x708] ss:$16 sps:$4 sm:$0xff]   ;;  %v9239_v54 = vld [vmem:[#allocation11 + $0x724] ss:$16 sps:$4 sm:$0xff]  }
 0x4ad   : > { %3940 = vmatmul.mubr.bf16.vlgmr.msra.gmra.mrb[4].mxu1 %v3241_v19  ;;  %4022 = vmatmul.mubr.bf16.vlgmr.msra.gmra.mrb[12].mxu0 %v3241_v19  ;;  %v11108_v57 = vpack.c.bf16 %v2973_v51, %v2969_v53  ;;  %v9242_v55 = vld [vmem:[#allocation11 + $0x72c] ss:$16 sps:$4 sm:$0xff]   ;;  %v9237_v35 = vld [vmem:[#allocation11 + $0x720] ss:$16 sps:$4 sm:$0xff]   ;;  %v9240_v21 = vld [vmem:[#allocation11 + $0x728] ss:$16 sps:$4 sm:$0xff]  }
 0x4ae   : > { %3949 = vmatpush1.bf16.msra.mxu1 %v9183_v58  ;;  %4031 = vmatpush1.bf16.msra.mxu0 %v9186_v60  ;;  %v9245_v59 = vld [vmem:[#allocation11 + $0x744] ss:$16 sps:$4 sm:$0xff]   ;;  %v9248_v32 = vld [vmem:[#allocation11 + $0x74c] ss:$16 sps:$4 sm:$0xff]   ;;  %v9243_v34 = vld [vmem:[#allocation11 + $0x740] ss:$16 sps:$4 sm:$0xff]  }
 0x4af   : > { %v3259_v23 = vshll.u32 %v11108_v57, 16  ;;  %3950 = vmatprep.subr.bf16.mxu1 %v9191_v6  ;;  %4032 = vmatprep.subr.bf16.mxu0 %v9194_v49  ;;  %v3257_v63 = vshrl.u32 %v11108_v57, 16  ;;  %v9246_v33 = vld [vmem:[#allocation11 + $0x748] ss:$16 sps:$4 sm:$0xff]   ;;  %v9251_v8 = vld [vmem:[#allocation11 + $0x764] ss:$16 sps:$4 sm:$0xff]  }
 0x4b0   : > { %v9254_v48 = vld [vmem:[#allocation11 + $0x76c] ss:$16 sps:$4 sm:$0xff]   ;;  %v9249_v36 = vld [vmem:[#allocation11 + $0x760] ss:$16 sps:$4 sm:$0xff]   ;;  %v9252_v43 = vld [vmem:[#allocation11 + $0x768] ss:$16 sps:$4 sm:$0xff]  }
 0x4b1   : > { %v3261_v25 = vrot.slane %v3259_v23, 1  ;;  %v9257_v58 = vld [vmem:[#allocation11 + $0x784] ss:$16 sps:$4 sm:$0xff]   ;;  %v9260_v60 = vld [vmem:[#allocation11 + $0x78c] ss:$16 sps:$4 sm:$0xff]  }
 0x4b2   : > { %3951 = vmatpush1.bf16.msra.mxu1 %v9189_v2  ;;  %4033 = vmatpush1.bf16.msra.mxu0 %v9192_v3  ;;  %v9255_v61 = vld [vmem:[#allocation11 + $0x780] ss:$16 sps:$4 sm:$0xff]   ;;  %v9258_v19 = vld [vmem:[#allocation11 + $0x788] ss:$16 sps:$4 sm:$0xff]   ;;  %v9263_v4 = vld [vmem:[#allocation11 + $0x7a4] ss:$16 sps:$4 sm:$0xff]  }
 0x4b3   : > { %v3262_v29 = vor.u32 %v3261_v25, %v3257_v63  ;;  %3952 = vmatprep.subr.bf16.mxu1 %v9197_v20  ;;  %4034 = vmatprep.subr.bf16.mxu0 %v9200_v9  ;;  %v9266_v6 = vld [vmem:[#allocation11 + $0x7ac] ss:$16 sps:$4 sm:$0xff]   ;;  %v9261_v49 = vld [vmem:[#allocation11 + $0x7a0] ss:$16 sps:$4 sm:$0xff]   ;;  %v9264_v53 = vld [vmem:[#allocation11 + $0x7a8] ss:$16 sps:$4 sm:$0xff]  }
 0x4b4   : > { %v9269_v51 = vld [vmem:[#allocation11 + $0x7c4] ss:$16 sps:$4 sm:$0xff]   ;;  %v9272_v2 = vld [vmem:[#allocation11 + $0x7cc] ss:$16 sps:$4 sm:$0xff]   ;;  %v9267_v3 = vld [vmem:[#allocation11 + $0x7c0] ss:$16 sps:$4 sm:$0xff]  }
 0x4b5   : > { %3980 = vmatprep.mubr.bf16.mxu1 %v3262_v29  ;;  %4062 = vmatprep.mubr.bf16.mxu0 %v3262_v29  ;;  %v9270_v23 = vld [vmem:[#allocation11 + $0x7c8] ss:$16 sps:$4 sm:$0xff]   ;;  %v9275_v20 = vld [vmem:[#allocation11 + $0x7e4] ss:$16 sps:$4 sm:$0xff]   ;;  %v9278_v9 = vld [vmem:[#allocation11 + $0x7ec] ss:$16 sps:$4 sm:$0xff]  }
 0x4b6   : > { %3953 = vmatpush1.bf16.msra.mxu1 %v9195_v0  ;;  %4035 = vmatpush1.bf16.msra.mxu0 %v9198_v52  ;;  %v3252_v63 = vshll.u32 %v11103_v46, 16  ;;  %v9273_v25 = vld [vmem:[#allocation11 + $0x7e0] ss:$16 sps:$4 sm:$0xff]   ;;  %v9276_v0 = vld [vmem:[#allocation11 + $0x7e8] ss:$16 sps:$4 sm:$0xff]  }
 0x4b7   : > { %3954 = vmatprep.subr.bf16.mxu1 %v9203_v44  ;;  %4036 = vmatprep.subr.bf16.mxu0 %v9206_v50  ;;  %v9281_v29 = vld [vmem:[#allocation11 + $0x4] ss:$16 sps:$4 sm:$0xff]   ;;  %v9284_v44 = vld [vmem:[#allocation11 + $0xc] ss:$16 sps:$4 sm:$0xff]   ;;  %v3250_v50 = vshrl.u32 %v11103_v46, 16 }
 0x4b8   : > { %v3254_v52 = vrot.slane %v3252_v63, 1  ;;  %v9356_v63 = vld [vmem:[#allocation11 + $0x18c] ss:$16 sps:$4 sm:$0xff]  }
 0x4ba   : > { %3955 = vmatpush1.bf16.msra.mxu1 %v9201_v5  ;;  %4037 = vmatpush1.bf16.msra.mxu0 %v9204_v11  ;;  %v9279_v5 = vld [vmem:[#allocation11] ss:$16 sps:$4 sm:$0xff]   ;;  %v3255_v11 = vor.u32 %v3254_v52, %v3250_v50  ;;  %v9359_v52 = vld [vmem:[#allocation11 + $0x1a4] ss:$16 sps:$4 sm:$0xff]   ;;  %v9360_v50 = vld [vmem:[#allocation11 + $0x1a8] ss:$16 sps:$4 sm:$0xff]  }
 0x4bb   : > { %3956 = vmatprep.subr.bf16.mxu1 %v9209_v38  ;;  %4038 = vmatprep.subr.bf16.mxu0 %v9212_v31  ;;  %v9282_v38 = vld [vmem:[#allocation11 + $0x8] ss:$16 sps:$4 sm:$0xff]   ;;  %v9287_v31 = vld [vmem:[#allocation11 + $0x24] ss:$16 sps:$4 sm:$0xff]  }
 0x4be   : > { %3957 = vmatpush1.bf16.msra.mxu1 %v9207_v30  ;;  %4039 = vmatpush1.bf16.msra.mxu0 %v9210_v41  ;;  %v9290_v30 = vld [vmem:[#allocation11 + $0x2c] ss:$16 sps:$4 sm:$0xff]   ;;  %v9285_v41 = vld [vmem:[#allocation11 + $0x20] ss:$16 sps:$4 sm:$0xff]  }
 0x4bf   : > { %3958 = vmatprep.subr.bf16.mxu1 %v9215_v12  ;;  %4040 = vmatprep.subr.bf16.mxu0 %v9218_v45  ;;  %v9288_v12 = vld [vmem:[#allocation11 + $0x28] ss:$16 sps:$4 sm:$0xff]   ;;  %v9293_v45 = vld [vmem:[#allocation11 + $0x44] ss:$16 sps:$4 sm:$0xff]  }
 0x4c2   : > { %3959 = vmatpush1.bf16.msra.mxu1 %v9213_v56  ;;  %4041 = vmatpush1.bf16.msra.mxu0 %v9216_v13  ;;  %v9296_v56 = vld [vmem:[#allocation11 + $0x4c] ss:$16 sps:$4 sm:$0xff]   ;;  %v9291_v13 = vld [vmem:[#allocation11 + $0x40] ss:$16 sps:$4 sm:$0xff]  }
 0x4c3   : > { %3960 = vmatprep.subr.bf16.mxu1 %v9221_v27  ;;  %4042 = vmatprep.subr.bf16.mxu0 %v9224_v10  ;;  %v9294_v27 = vld [vmem:[#allocation11 + $0x48] ss:$16 sps:$4 sm:$0xff]   ;;  %v9299_v10 = vld [vmem:[#allocation11 + $0x64] ss:$16 sps:$4 sm:$0xff]  }
 0x4c6   : > { %3961 = vmatpush1.bf16.msra.mxu1 %v9219_v24  ;;  %4043 = vmatpush1.bf16.msra.mxu0 %v9222_v16  ;;  %v9302_v24 = vld [vmem:[#allocation11 + $0x6c] ss:$16 sps:$4 sm:$0xff]   ;;  %v9297_v16 = vld [vmem:[#allocation11 + $0x60] ss:$16 sps:$4 sm:$0xff]  }
 0x4c7   : > { %3962 = vmatprep.subr.bf16.mxu1 %v9227_v22  ;;  %4044 = vmatprep.subr.bf16.mxu0 %v9230_v47  ;;  %v9300_v22 = vld [vmem:[#allocation11 + $0x68] ss:$16 sps:$4 sm:$0xff]   ;;  %v9305_v47 = vld [vmem:[#allocation11 + $0x84] ss:$16 sps:$4 sm:$0xff]  }
 0x4ca   : > { %3963 = vmatpush1.bf16.msra.mxu1 %v9225_v26  ;;  %4045 = vmatpush1.bf16.msra.mxu0 %v9228_v39  ;;  %v9308_v26 = vld [vmem:[#allocation11 + $0x8c] ss:$16 sps:$4 sm:$0xff]   ;;  %v9303_v39 = vld [vmem:[#allocation11 + $0x80] ss:$16 sps:$4 sm:$0xff]  }
 0x4cb   : > { %3964 = vmatprep.subr.bf16.mxu1 %v9233_v28  ;;  %4046 = vmatprep.subr.bf16.mxu0 %v9236_v14  ;;  %v9306_v28 = vld [vmem:[#allocation11 + $0x88] ss:$16 sps:$4 sm:$0xff]   ;;  %v9311_v14 = vld [vmem:[#allocation11 + $0xa4] ss:$16 sps:$4 sm:$0xff]  }
 0x4ce   : > { %3965 = vmatpush1.bf16.msra.mxu1 %v9231_v37  ;;  %4047 = vmatpush1.bf16.msra.mxu0 %v9234_v40  ;;  %v9314_v37 = vld [vmem:[#allocation11 + $0xac] ss:$16 sps:$4 sm:$0xff]   ;;  %v9309_v40 = vld [vmem:[#allocation11 + $0xa0] ss:$16 sps:$4 sm:$0xff]  }
 0x4cf   : > { %3966 = vmatprep.subr.bf16.mxu1 %v9239_v54  ;;  %4048 = vmatprep.subr.bf16.mxu0 %v9242_v55  ;;  %v9312_v54 = vld [vmem:[#allocation11 + $0xa8] ss:$16 sps:$4 sm:$0xff]   ;;  %v9317_v55 = vld [vmem:[#allocation11 + $0xc4] ss:$16 sps:$4 sm:$0xff]  }
 0x4d2   : > { %3967 = vmatpush1.bf16.msra.mxu1 %v9237_v35  ;;  %4049 = vmatpush1.bf16.msra.mxu0 %v9240_v21  ;;  %v9320_v35 = vld [vmem:[#allocation11 + $0xcc] ss:$16 sps:$4 sm:$0xff]   ;;  %v9315_v21 = vld [vmem:[#allocation11 + $0xc0] ss:$16 sps:$4 sm:$0xff]  }
 0x4d3   : > { %3968 = vmatprep.subr.bf16.mxu1 %v9245_v59  ;;  %4050 = vmatprep.subr.bf16.mxu0 %v9248_v32  ;;  %v9318_v59 = vld [vmem:[#allocation11 + $0xc8] ss:$16 sps:$4 sm:$0xff]   ;;  %v9323_v32 = vld [vmem:[#allocation11 + $0xe4] ss:$16 sps:$4 sm:$0xff]  }
 0x4d6   : > { %3969 = vmatpush1.bf16.msra.mxu1 %v9243_v34  ;;  %4051 = vmatpush1.bf16.msra.mxu0 %v9246_v33  ;;  %v9326_v34 = vld [vmem:[#allocation11 + $0xec] ss:$16 sps:$4 sm:$0xff]   ;;  %v9321_v33 = vld [vmem:[#allocation11 + $0xe0] ss:$16 sps:$4 sm:$0xff]  }
 0x4d7   : > { %3970 = vmatprep.subr.bf16.mxu1 %v9251_v8  ;;  %4052 = vmatprep.subr.bf16.mxu0 %v9254_v48  ;;  %v9324_v8 = vld [vmem:[#allocation11 + $0xe8] ss:$16 sps:$4 sm:$0xff]   ;;  %v9329_v48 = vld [vmem:[#allocation11 + $0x104] ss:$16 sps:$4 sm:$0xff]  }
 0x4da   : > { %3971 = vmatpush1.bf16.msra.mxu1 %v9249_v36  ;;  %4053 = vmatpush1.bf16.msra.mxu0 %v9252_v43  ;;  %v9332_v36 = vld [vmem:[#allocation11 + $0x10c] ss:$16 sps:$4 sm:$0xff]   ;;  %v9327_v43 = vld [vmem:[#allocation11 + $0x100] ss:$16 sps:$4 sm:$0xff]  }
 0x4db   : > { %3972 = vmatprep.subr.bf16.mxu1 %v9257_v58  ;;  %4054 = vmatprep.subr.bf16.mxu0 %v9260_v60  ;;  %v9330_v58 = vld [vmem:[#allocation11 + $0x108] ss:$16 sps:$4 sm:$0xff]   ;;  %v9335_v60 = vld [vmem:[#allocation11 + $0x124] ss:$16 sps:$4 sm:$0xff]  }
 0x4de   : > { %3973 = vmatpush1.bf16.msra.mxu1 %v9255_v61  ;;  %4055 = vmatpush1.bf16.msra.mxu0 %v9258_v19  ;;  %v9338_v61 = vld [vmem:[#allocation11 + $0x12c] ss:$16 sps:$4 sm:$0xff]   ;;  %v9333_v19 = vld [vmem:[#allocation11 + $0x120] ss:$16 sps:$4 sm:$0xff]  }
 0x4df   : > { %3974 = vmatprep.subr.bf16.mxu1 %v9263_v4  ;;  %4056 = vmatprep.subr.bf16.mxu0 %v9266_v6  ;;  %v9336_v4 = vld [vmem:[#allocation11 + $0x128] ss:$16 sps:$4 sm:$0xff]   ;;  %v9341_v6 = vld [vmem:[#allocation11 + $0x144] ss:$16 sps:$4 sm:$0xff]  }
 0x4e2   : > { %3975 = vmatpush1.bf16.msra.mxu1 %v9261_v49  ;;  %4057 = vmatpush1.bf16.msra.mxu0 %v9264_v53  ;;  %v9344_v49 = vld [vmem:[#allocation11 + $0x14c] ss:$16 sps:$4 sm:$0xff]   ;;  %v9339_v53 = vld [vmem:[#allocation11 + $0x140] ss:$16 sps:$4 sm:$0xff]  }
 0x4e3   : > { %3976 = vmatprep.subr.bf16.mxu1 %v9269_v51  ;;  %4058 = vmatprep.subr.bf16.mxu0 %v9272_v2  ;;  %v9342_v51 = vld [vmem:[#allocation11 + $0x148] ss:$16 sps:$4 sm:$0xff]   ;;  %v9347_v2 = vld [vmem:[#allocation11 + $0x164] ss:$16 sps:$4 sm:$0xff]  }
 0x4e6   : > { %3977 = vmatpush1.bf16.msra.mxu1 %v9267_v3  ;;  %4059 = vmatpush1.bf16.msra.mxu0 %v9270_v23  ;;  %v9350_v3 = vld [vmem:[#allocation11 + $0x16c] ss:$16 sps:$4 sm:$0xff]   ;;  %v9345_v23 = vld [vmem:[#allocation11 + $0x160] ss:$16 sps:$4 sm:$0xff]  }
 0x4e7   : > { %3978 = vmatprep.subr.bf16.mxu1 %v9275_v20  ;;  %4060 = vmatprep.subr.bf16.mxu0 %v9278_v9  ;;  %v9348_v20 = vld [vmem:[#allocation11 + $0x168] ss:$16 sps:$4 sm:$0xff]   ;;  %v9353_v9 = vld [vmem:[#allocation11 + $0x184] ss:$16 sps:$4 sm:$0xff]  }
 0x4ea   : > { %3979 = vmatpush1.bf16.msra.mxu1 %v9273_v25  ;;  %4061 = vmatpush1.bf16.msra.mxu0 %v9276_v0  ;;  %v9351_v25 = vld [vmem:[#allocation11 + $0x180] ss:$16 sps:$4 sm:$0xff]   ;;  %v9354_v0 = vld [vmem:[#allocation11 + $0x188] ss:$16 sps:$4 sm:$0xff]  }
 0x4eb   : > { %4711 = vmatprep.subr.bf16.mxu1 %v9281_v29  ;;  %4793 = vmatprep.subr.bf16.mxu0 %v9284_v44  ;;  %v9362_v29 = vld [vmem:[#allocation11 + $0x1ac] ss:$16 sps:$4 sm:$0xff]   ;;  %v9357_v44 = vld [vmem:[#allocation11 + $0x1a0] ss:$16 sps:$4 sm:$0xff]  }
 0x4ed   : > { %3981 = vmatmul.mubr.bf16.vlgmr.msra.gmra.mrb[4].mxu1 %v3255_v11  ;;  %4063 = vmatmul.mubr.bf16.vlgmr.msra.gmra.mrb[12].mxu0 %v3255_v11  ;;  %v9368_v11 = vld [vmem:[#allocation11 + $0x1cc] ss:$16 sps:$4 sm:$0xff]  }
 0x4ee   : > { %4712 = vmatpush1.bf16.msra.mxu1 %v9279_v5  ;;  %4743 = vmatprep.mubr.bf16.mxu1 %v11077_v17  ;;  %v9365_v5 = vld [vmem:[#allocation11 + $0x1c4] ss:$16 sps:$4 sm:$0xff]  }
 0x4ef   : > { %4794 = vmatpush1.bf16.msra.mxu0 %v9282_v38  ;;  %4825 = vmatprep.mubr.bf16.mxu0 %v11077_v17  ;;  %v9363_v38 = vld [vmem:[#allocation11 + $0x1c0] ss:$16 sps:$4 sm:$0xff]  }
 0x4f0   : > { %4713 = vmatprep.subr.bf16.mxu1 %v9287_v31  ;;  %4795 = vmatprep.subr.bf16.mxu0 %v9290_v30  ;;  %v9366_v31 = vld [vmem:[#allocation11 + $0x1c8] ss:$16 sps:$4 sm:$0xff]   ;;  %v9371_v30 = vld [vmem:[#allocation11 + $0x1e4] ss:$16 sps:$4 sm:$0xff]  }
 0x4f2   : > { %4714 = vmatpush1.bf16.msra.mxu1 %v9285_v41  ;;  %v9374_v41 = vld [vmem:[#allocation11 + $0x1ec] ss:$16 sps:$4 sm:$0xff]  }
 0x4f3   : > { %4796 = vmatpush1.bf16.msra.mxu0 %v9288_v12  ;;  %4715 = vmatprep.subr.bf16.mxu1 %v9293_v45  ;;  %v9369_v12 = vld [vmem:[#allocation11 + $0x1e0] ss:$16 sps:$4 sm:$0xff]   ;;  %v9372_v45 = vld [vmem:[#allocation11 + $0x1e8] ss:$16 sps:$4 sm:$0xff]  }
 0x4f4   : > { %4797 = vmatprep.subr.bf16.mxu0 %v9296_v56  ;;  %v9377_v56 = vld [vmem:[#allocation11 + $0x204] ss:$16 sps:$4 sm:$0xff]  }
 0x4f6   : > { %4716 = vmatpush1.bf16.msra.mxu1 %v9291_v13  ;;  %v9380_v13 = vld [vmem:[#allocation11 + $0x20c] ss:$16 sps:$4 sm:$0xff]  }
 0x4f7   : > { %4798 = vmatpush1.bf16.msra.mxu0 %v9294_v27  ;;  %4717 = vmatprep.subr.bf16.mxu1 %v9299_v10  ;;  %v9375_v27 = vld [vmem:[#allocation11 + $0x200] ss:$16 sps:$4 sm:$0xff]   ;;  %v9378_v10 = vld [vmem:[#allocation11 + $0x208] ss:$16 sps:$4 sm:$0xff]  }
 0x4f8   : > { %4799 = vmatprep.subr.bf16.mxu0 %v9302_v24  ;;  %v9383_v24 = vld [vmem:[#allocation11 + $0x224] ss:$16 sps:$4 sm:$0xff]  }
 0x4fa   : > { %4718 = vmatpush1.bf16.msra.mxu1 %v9297_v16  ;;  %v9386_v16 = vld [vmem:[#allocation11 + $0x22c] ss:$16 sps:$4 sm:$0xff]  }
 0x4fb   : > { %4800 = vmatpush1.bf16.msra.mxu0 %v9300_v22  ;;  %4719 = vmatprep.subr.bf16.mxu1 %v9305_v47  ;;  %v9381_v22 = vld [vmem:[#allocation11 + $0x220] ss:$16 sps:$4 sm:$0xff]   ;;  %v9384_v47 = vld [vmem:[#allocation11 + $0x228] ss:$16 sps:$4 sm:$0xff]  }
 0x4fc   : > { %4801 = vmatprep.subr.bf16.mxu0 %v9308_v26  ;;  %v9389_v26 = vld [vmem:[#allocation11 + $0x244] ss:$16 sps:$4 sm:$0xff]  }
 0x4fe   : > { %4720 = vmatpush1.bf16.msra.mxu1 %v9303_v39  ;;  %v9392_v39 = vld [vmem:[#allocation11 + $0x24c] ss:$16 sps:$4 sm:$0xff]  }
 0x4ff   : > { %4802 = vmatpush1.bf16.msra.mxu0 %v9306_v28  ;;  %4721 = vmatprep.subr.bf16.mxu1 %v9311_v14  ;;  %v9387_v28 = vld [vmem:[#allocation11 + $0x240] ss:$16 sps:$4 sm:$0xff]   ;;  %v9390_v14 = vld [vmem:[#allocation11 + $0x248] ss:$16 sps:$4 sm:$0xff]  }
 0x500   : > { %4803 = vmatprep.subr.bf16.mxu0 %v9314_v37  ;;  %v9395_v37 = vld [vmem:[#allocation11 + $0x264] ss:$16 sps:$4 sm:$0xff]  }
 0x502   : > { %4722 = vmatpush1.bf16.msra.mxu1 %v9309_v40  ;;  %v9398_v40 = vld [vmem:[#allocation11 + $0x26c] ss:$16 sps:$4 sm:$0xff]  }
 0x503   : > { %4804 = vmatpush1.bf16.msra.mxu0 %v9312_v54  ;;  %4723 = vmatprep.subr.bf16.mxu1 %v9317_v55  ;;  %v9393_v54 = vld [vmem:[#allocation11 + $0x260] ss:$16 sps:$4 sm:$0xff]   ;;  %v9396_v55 = vld [vmem:[#allocation11 + $0x268] ss:$16 sps:$4 sm:$0xff]  }
 0x504   : > { %4805 = vmatprep.subr.bf16.mxu0 %v9320_v35  ;;  %v9401_v35 = vld [vmem:[#allocation11 + $0x284] ss:$16 sps:$4 sm:$0xff]  }
 0x506   : > { %4724 = vmatpush1.bf16.msra.mxu1 %v9315_v21  ;;  %v9404_v21 = vld [vmem:[#allocation11 + $0x28c] ss:$16 sps:$4 sm:$0xff]  }
 0x507   : > { %4806 = vmatpush1.bf16.msra.mxu0 %v9318_v59  ;;  %4725 = vmatprep.subr.bf16.mxu1 %v9323_v32  ;;  %v9399_v59 = vld [vmem:[#allocation11 + $0x280] ss:$16 sps:$4 sm:$0xff]   ;;  %v9402_v32 = vld [vmem:[#allocation11 + $0x288] ss:$16 sps:$4 sm:$0xff]  }
 0x508   : > { %4807 = vmatprep.subr.bf16.mxu0 %v9326_v34  ;;  %v9407_v34 = vld [vmem:[#allocation11 + $0x2a4] ss:$16 sps:$4 sm:$0xff]  }
 0x50a   : > { %4726 = vmatpush1.bf16.msra.mxu1 %v9321_v33  ;;  %v9410_v33 = vld [vmem:[#allocation11 + $0x2ac] ss:$16 sps:$4 sm:$0xff]  }
 0x50b   : > { %4808 = vmatpush1.bf16.msra.mxu0 %v9324_v8  ;;  %4727 = vmatprep.subr.bf16.mxu1 %v9329_v48  ;;  %v9405_v8 = vld [vmem:[#allocation11 + $0x2a0] ss:$16 sps:$4 sm:$0xff]   ;;  %v9408_v48 = vld [vmem:[#allocation11 + $0x2a8] ss:$16 sps:$4 sm:$0xff]  }
 0x50c   : > { %4809 = vmatprep.subr.bf16.mxu0 %v9332_v36  ;;  %v9413_v36 = vld [vmem:[#allocation11 + $0x2c4] ss:$16 sps:$4 sm:$0xff]  }
 0x50e   : > { %4728 = vmatpush1.bf16.msra.mxu1 %v9327_v43  ;;  %v9416_v43 = vld [vmem:[#allocation11 + $0x2cc] ss:$16 sps:$4 sm:$0xff]  }
 0x50f   : > { %4810 = vmatpush1.bf16.msra.mxu0 %v9330_v58  ;;  %4729 = vmatprep.subr.bf16.mxu1 %v9335_v60  ;;  %v9411_v58 = vld [vmem:[#allocation11 + $0x2c0] ss:$16 sps:$4 sm:$0xff]   ;;  %v9414_v60 = vld [vmem:[#allocation11 + $0x2c8] ss:$16 sps:$4 sm:$0xff]  }
 0x510   : > { %4811 = vmatprep.subr.bf16.mxu0 %v9338_v61  ;;  %v9419_v61 = vld [vmem:[#allocation11 + $0x2e4] ss:$16 sps:$4 sm:$0xff]  }
 0x512   : > { %4730 = vmatpush1.bf16.msra.mxu1 %v9333_v19  ;;  %v9422_v19 = vld [vmem:[#allocation11 + $0x2ec] ss:$16 sps:$4 sm:$0xff]  }
 0x513   : > { %4812 = vmatpush1.bf16.msra.mxu0 %v9336_v4  ;;  %4731 = vmatprep.subr.bf16.mxu1 %v9341_v6  ;;  %v9417_v4 = vld [vmem:[#allocation11 + $0x2e0] ss:$16 sps:$4 sm:$0xff]   ;;  %v9420_v6 = vld [vmem:[#allocation11 + $0x2e8] ss:$16 sps:$4 sm:$0xff]  }
 0x514   : > { %4813 = vmatprep.subr.bf16.mxu0 %v9344_v49  ;;  %v9425_v49 = vld [vmem:[#allocation11 + $0x304] ss:$16 sps:$4 sm:$0xff]  }
 0x516   : > { %4732 = vmatpush1.bf16.msra.mxu1 %v9339_v53  ;;  %v9428_v53 = vld [vmem:[#allocation11 + $0x30c] ss:$16 sps:$4 sm:$0xff]  }
 0x517   : > { %4814 = vmatpush1.bf16.msra.mxu0 %v9342_v51  ;;  %4733 = vmatprep.subr.bf16.mxu1 %v9347_v2  ;;  %v9423_v51 = vld [vmem:[#allocation11 + $0x300] ss:$16 sps:$4 sm:$0xff]   ;;  %v9426_v2 = vld [vmem:[#allocation11 + $0x308] ss:$16 sps:$4 sm:$0xff]  }
 0x518   : > { %4815 = vmatprep.subr.bf16.mxu0 %v9350_v3  ;;  %v9431_v3 = vld [vmem:[#allocation11 + $0x324] ss:$16 sps:$4 sm:$0xff]  }
 0x51a   : > { %4734 = vmatpush1.bf16.msra.mxu1 %v9345_v23  ;;  %v9434_v23 = vld [vmem:[#allocation11 + $0x32c] ss:$16 sps:$4 sm:$0xff]  }
 0x51b   : > { %4816 = vmatpush1.bf16.msra.mxu0 %v9348_v20  ;;  %4735 = vmatprep.subr.bf16.mxu1 %v9353_v9  ;;  %v9429_v20 = vld [vmem:[#allocation11 + $0x320] ss:$16 sps:$4 sm:$0xff]   ;;  %v9432_v9 = vld [vmem:[#allocation11 + $0x328] ss:$16 sps:$4 sm:$0xff]  }
 0x51c   : > { %4817 = vmatprep.subr.bf16.mxu0 %v9356_v63  ;;  %v9437_v63 = vld [vmem:[#allocation11 + $0x344] ss:$16 sps:$4 sm:$0xff]  }
 0x51e   : > { %4736 = vmatpush1.bf16.msra.mxu1 %v9351_v25  ;;  %v9440_v25 = vld [vmem:[#allocation11 + $0x34c] ss:$16 sps:$4 sm:$0xff]  }
 0x51f   : > { %4818 = vmatpush1.bf16.msra.mxu0 %v9354_v0  ;;  %4737 = vmatprep.subr.bf16.mxu1 %v9359_v52  ;;  %v9435_v0 = vld [vmem:[#allocation11 + $0x340] ss:$16 sps:$4 sm:$0xff]   ;;  %v9438_v52 = vld [vmem:[#allocation11 + $0x348] ss:$16 sps:$4 sm:$0xff]  }
 0x520   : > { %4819 = vmatprep.subr.bf16.mxu0 %v9362_v29  ;;  %v9443_v29 = vld [vmem:[#allocation11 + $0x364] ss:$16 sps:$4 sm:$0xff]  }
 0x522   : > { %4738 = vmatpush1.bf16.msra.mxu1 %v9357_v44  ;;  %v9446_v44 = vld [vmem:[#allocation11 + $0x36c] ss:$16 sps:$4 sm:$0xff]  }
 0x523   : > { %4820 = vmatpush1.bf16.msra.mxu0 %v9360_v50  ;;  %4739 = vmatprep.subr.bf16.mxu1 %v9365_v5  ;;  %v9441_v50 = vld [vmem:[#allocation11 + $0x360] ss:$16 sps:$4 sm:$0xff]   ;;  %v9444_v5 = vld [vmem:[#allocation11 + $0x368] ss:$16 sps:$4 sm:$0xff]  }
 0x524   : > { %4821 = vmatprep.subr.bf16.mxu0 %v9368_v11  ;;  %v9449_v11 = vld [vmem:[#allocation11 + $0x384] ss:$16 sps:$4 sm:$0xff]  }
 0x526   : > { %4740 = vmatpush1.bf16.msra.mxu1 %v9363_v38  ;;  %v9452_v38 = vld [vmem:[#allocation11 + $0x38c] ss:$16 sps:$4 sm:$0xff]  }
 0x527   : > { %4822 = vmatpush1.bf16.msra.mxu0 %v9366_v31  ;;  %4741 = vmatprep.subr.bf16.mxu1 %v9371_v30  ;;  %v9447_v31 = vld [vmem:[#allocation11 + $0x380] ss:$16 sps:$4 sm:$0xff]   ;;  %v9450_v30 = vld [vmem:[#allocation11 + $0x388] ss:$16 sps:$4 sm:$0xff]  }
 0x528   : > { %4823 = vmatprep.subr.bf16.mxu0 %v9374_v41  ;;  %v9455_v41 = vld [vmem:[#allocation11 + $0x3a4] ss:$16 sps:$4 sm:$0xff]  }
 0x52a   : > { %4742 = vmatpush1.bf16.msra.mxu1 %v9369_v12  ;;  %v9458_v12 = vld [vmem:[#allocation11 + $0x3ac] ss:$16 sps:$4 sm:$0xff]  }
 0x52b   : > { %4824 = vmatpush1.bf16.msra.mxu0 %v9372_v45  ;;  %4752 = vmatprep.subr.bf16.mxu1 %v9377_v56  ;;  %v9453_v45 = vld [vmem:[#allocation11 + $0x3a0] ss:$16 sps:$4 sm:$0xff]   ;;  %v9456_v56 = vld [vmem:[#allocation11 + $0x3a8] ss:$16 sps:$4 sm:$0xff]  }
 0x52c   : > { %4834 = vmatprep.subr.bf16.mxu0 %v9380_v13  ;;  %v9461_v13 = vld [vmem:[#allocation11 + $0x3c4] ss:$16 sps:$4 sm:$0xff]  }
 0x52d   : > { %4744 = vmatmul.mubr.bf16.vlgmr.msra.gmra.mrb[4].mxu1 %v11075_v7 }
 0x52e   : > { %4826 = vmatmul.mubr.bf16.vlgmr.msra.gmra.mrb[12].mxu0 %v11075_v7  ;;  %4753 = vmatpush1.bf16.msra.mxu1 %v9375_v27  ;;  %v9464_v27 = vld [vmem:[#allocation11 + $0x3cc] ss:$16 sps:$4 sm:$0xff]  }
 0x52f   : > { %4784 = vmatprep.mubr.bf16.mxu1 %v11108_v57  ;;  %4835 = vmatpush1.bf16.msra.mxu0 %v9378_v10  ;;  %v9459_v10 = vld [vmem:[#allocation11 + $0x3c0] ss:$16 sps:$4 sm:$0xff]  }
 0x530   : > { %4866 = vmatprep.mubr.bf16.mxu0 %v11108_v57  ;;  %4754 = vmatprep.subr.bf16.mxu1 %v9383_v24  ;;  %v9462_v24 = vld [vmem:[#allocation11 + $0x3c8] ss:$16 sps:$4 sm:$0xff]  }
 0x531   : > { %4836 = vmatprep.subr.bf16.mxu0 %v9386_v16  ;;  %v9467_v16 = vld [vmem:[#allocation11 + $0x3e4] ss:$16 sps:$4 sm:$0xff]  }
 0x532   : > { %4755 = vmatpush1.bf16.msra.mxu1 %v9381_v22  ;;  %v9470_v22 = vld [vmem:[#allocation11 + $0x3ec] ss:$16 sps:$4 sm:$0xff]  }
 0x533   : > { %4837 = vmatpush1.bf16.msra.mxu0 %v9384_v47  ;;  %4756 = vmatprep.subr.bf16.mxu1 %v9389_v26  ;;  %v9465_v47 = vld [vmem:[#allocation11 + $0x3e0] ss:$16 sps:$4 sm:$0xff]   ;;  %v9468_v26 = vld [vmem:[#allocation11 + $0x3e8] ss:$16 sps:$4 sm:$0xff]  }
 0x534   : > { %4838 = vmatprep.subr.bf16.mxu0 %v9392_v39  ;;  %v9473_v39 = vld [vmem:[#allocation11 + $0x804] ss:$16 sps:$4 sm:$0xff]  }
 0x536   : > { %4757 = vmatpush1.bf16.msra.mxu1 %v9387_v28  ;;  %v9476_v28 = vld [vmem:[#allocation11 + $0x80c] ss:$16 sps:$4 sm:$0xff]  }
 0x537   : > { %4839 = vmatpush1.bf16.msra.mxu0 %v9390_v14  ;;  %4758 = vmatprep.subr.bf16.mxu1 %v9395_v37  ;;  %v9471_v14 = vld [vmem:[#allocation11 + $0x800] ss:$16 sps:$4 sm:$0xff]   ;;  %v9474_v37 = vld [vmem:[#allocation11 + $0x808] ss:$16 sps:$4 sm:$0xff]  }
 0x538   : > { %4840 = vmatprep.subr.bf16.mxu0 %v9398_v40  ;;  %v9479_v40 = vld [vmem:[#allocation11 + $0x824] ss:$16 sps:$4 sm:$0xff]  }
 0x53a   : > { %4759 = vmatpush1.bf16.msra.mxu1 %v9393_v54  ;;  %v5009_v54 = vrot.slane %v11077_v17, 1  ;;  %v9494_v17 = vld [vmem:[#allocation11 + $0x86c] ss:$16 sps:$4 sm:$0xff]  }
 0x53b   : > { %4841 = vmatpush1.bf16.msra.mxu0 %v9396_v55  ;;  %4760 = vmatprep.subr.bf16.mxu1 %v9401_v35  ;;  %v9482_v55 = vld [vmem:[#allocation11 + $0x82c] ss:$16 sps:$4 sm:$0xff]   ;;  %v9477_v35 = vld [vmem:[#allocation11 + $0x820] ss:$16 sps:$4 sm:$0xff]  }
 0x53c   : > { %4842 = vmatprep.subr.bf16.mxu0 %v9404_v21  ;;  %v9480_v21 = vld [vmem:[#allocation11 + $0x828] ss:$16 sps:$4 sm:$0xff]  }
 0x53e   : > { %4761 = vmatpush1.bf16.msra.mxu1 %v9399_v59  ;;  %v9485_v59 = vld [vmem:[#allocation11 + $0x844] ss:$16 sps:$4 sm:$0xff]  }
 0x53f   : > { %4843 = vmatpush1.bf16.msra.mxu0 %v9402_v32  ;;  %4762 = vmatprep.subr.bf16.mxu1 %v9407_v34  ;;  %v9488_v32 = vld [vmem:[#allocation11 + $0x84c] ss:$16 sps:$4 sm:$0xff]   ;;  %v9483_v34 = vld [vmem:[#allocation11 + $0x840] ss:$16 sps:$4 sm:$0xff]  }
 0x540   : > { %4844 = vmatprep.subr.bf16.mxu0 %v9410_v33  ;;  %v9486_v33 = vld [vmem:[#allocation11 + $0x848] ss:$16 sps:$4 sm:$0xff]  }
 0x542   : > { %4763 = vmatpush1.bf16.msra.mxu1 %v9405_v8  ;;  %v9491_v8 = vld [vmem:[#allocation11 + $0x864] ss:$16 sps:$4 sm:$0xff]  }
 0x543   : > { %4845 = vmatpush1.bf16.msra.mxu0 %v9408_v48  ;;  %4764 = vmatprep.subr.bf16.mxu1 %v9413_v36  ;;  %v9489_v48 = vld [vmem:[#allocation11 + $0x860] ss:$16 sps:$4 sm:$0xff]   ;;  %v9492_v36 = vld [vmem:[#allocation11 + $0x868] ss:$16 sps:$4 sm:$0xff]  }
 0x544   : > { %4846 = vmatprep.subr.bf16.mxu0 %v9416_v43  ;;  %v9497_v43 = vld [vmem:[#allocation11 + $0x884] ss:$16 sps:$4 sm:$0xff]  }
 0x546   : > { %4765 = vmatpush1.bf16.msra.mxu1 %v9411_v58  ;;  %v9500_v58 = vld [vmem:[#allocation11 + $0x88c] ss:$16 sps:$4 sm:$0xff]  }
 0x547   : > { %4847 = vmatpush1.bf16.msra.mxu0 %v9414_v60  ;;  %4766 = vmatprep.subr.bf16.mxu1 %v9419_v61  ;;  %v9495_v60 = vld [vmem:[#allocation11 + $0x880] ss:$16 sps:$4 sm:$0xff]   ;;  %v9498_v61 = vld [vmem:[#allocation11 + $0x888] ss:$16 sps:$4 sm:$0xff]  }
 0x548   : > { %4848 = vmatprep.subr.bf16.mxu0 %v9422_v19  ;;  %v9503_v19 = vld [vmem:[#allocation11 + $0x8a4] ss:$16 sps:$4 sm:$0xff]  }
 0x54a   : > { %4767 = vmatpush1.bf16.msra.mxu1 %v9417_v4  ;;  %v9506_v4 = vld [vmem:[#allocation11 + $0x8ac] ss:$16 sps:$4 sm:$0xff]  }
 0x54b   : > { %4849 = vmatpush1.bf16.msra.mxu0 %v9420_v6  ;;  %4768 = vmatprep.subr.bf16.mxu1 %v9425_v49  ;;  %v9501_v6 = vld [vmem:[#allocation11 + $0x8a0] ss:$16 sps:$4 sm:$0xff]   ;;  %v9504_v49 = vld [vmem:[#allocation11 + $0x8a8] ss:$16 sps:$4 sm:$0xff]  }
 0x54c   : > { %4850 = vmatprep.subr.bf16.mxu0 %v9428_v53  ;;  %v9509_v53 = vld [vmem:[#allocation11 + $0x8c4] ss:$16 sps:$4 sm:$0xff]  }
 0x54e   : > { %4769 = vmatpush1.bf16.msra.mxu1 %v9423_v51  ;;  %v9512_v51 = vld [vmem:[#allocation11 + $0x8cc] ss:$16 sps:$4 sm:$0xff]  }
 0x54f   : > { %4851 = vmatpush1.bf16.msra.mxu0 %v9426_v2  ;;  %4770 = vmatprep.subr.bf16.mxu1 %v9431_v3  ;;  %v9507_v2 = vld [vmem:[#allocation11 + $0x8c0] ss:$16 sps:$4 sm:$0xff]   ;;  %v9510_v3 = vld [vmem:[#allocation11 + $0x8c8] ss:$16 sps:$4 sm:$0xff]  }
 0x550   : > { %4852 = vmatprep.subr.bf16.mxu0 %v9434_v23  ;;  %v9515_v23 = vld [vmem:[#allocation11 + $0x8e4] ss:$16 sps:$4 sm:$0xff]  }
 0x552   : > { %4771 = vmatpush1.bf16.msra.mxu1 %v9429_v20  ;;  %v9518_v20 = vld [vmem:[#allocation11 + $0x8ec] ss:$16 sps:$4 sm:$0xff]  }
 0x553   : > { %4853 = vmatpush1.bf16.msra.mxu0 %v9432_v9  ;;  %4772 = vmatprep.subr.bf16.mxu1 %v9437_v63  ;;  %v9513_v9 = vld [vmem:[#allocation11 + $0x8e0] ss:$16 sps:$4 sm:$0xff]   ;;  %v9516_v63 = vld [vmem:[#allocation11 + $0x8e8] ss:$16 sps:$4 sm:$0xff]  }
 0x554   : > { %4854 = vmatprep.subr.bf16.mxu0 %v9440_v25  ;;  %v9521_v25 = vld [vmem:[#allocation11 + $0x904] ss:$16 sps:$4 sm:$0xff]  }
 0x556   : > { %4773 = vmatpush1.bf16.msra.mxu1 %v9435_v0  ;;  %v9524_v0 = vld [vmem:[#allocation11 + $0x90c] ss:$16 sps:$4 sm:$0xff]  }
 0x557   : > { %4855 = vmatpush1.bf16.msra.mxu0 %v9438_v52  ;;  %4774 = vmatprep.subr.bf16.mxu1 %v9443_v29  ;;  %v9519_v52 = vld [vmem:[#allocation11 + $0x900] ss:$16 sps:$4 sm:$0xff]   ;;  %v9522_v29 = vld [vmem:[#allocation11 + $0x908] ss:$16 sps:$4 sm:$0xff]  }
 0x558   : > { %4856 = vmatprep.subr.bf16.mxu0 %v9446_v44  ;;  %v9527_v44 = vld [vmem:[#allocation11 + $0x924] ss:$16 sps:$4 sm:$0xff]  }
 0x55a   : > { %4775 = vmatpush1.bf16.msra.mxu1 %v9441_v50  ;;  %v9530_v50 = vld [vmem:[#allocation11 + $0x92c] ss:$16 sps:$4 sm:$0xff]  }
 0x55b   : > { %4857 = vmatpush1.bf16.msra.mxu0 %v9444_v5  ;;  %4776 = vmatprep.subr.bf16.mxu1 %v9449_v11  ;;  %v9525_v5 = vld [vmem:[#allocation11 + $0x920] ss:$16 sps:$4 sm:$0xff]   ;;  %v9528_v11 = vld [vmem:[#allocation11 + $0x928] ss:$16 sps:$4 sm:$0xff]  }
 0x55c   : > { %4858 = vmatprep.subr.bf16.mxu0 %v9452_v38  ;;  %v9533_v38 = vld [vmem:[#allocation11 + $0x944] ss:$16 sps:$4 sm:$0xff]  }
 0x55e   : > { %4777 = vmatpush1.bf16.msra.mxu1 %v9447_v31  ;;  %v9536_v31 = vld [vmem:[#allocation11 + $0x94c] ss:$16 sps:$4 sm:$0xff]  }
 0x55f   : > { %4859 = vmatpush1.bf16.msra.mxu0 %v9450_v30  ;;  %4778 = vmatprep.subr.bf16.mxu1 %v9455_v41  ;;  %v9531_v30 = vld [vmem:[#allocation11 + $0x940] ss:$16 sps:$4 sm:$0xff]   ;;  %v9534_v41 = vld [vmem:[#allocation11 + $0x948] ss:$16 sps:$4 sm:$0xff]  }
 0x560   : > { %4860 = vmatprep.subr.bf16.mxu0 %v9458_v12  ;;  %v9539_v12 = vld [vmem:[#allocation11 + $0x964] ss:$16 sps:$4 sm:$0xff]  }
 0x562   : > { %4779 = vmatpush1.bf16.msra.mxu1 %v9453_v45  ;;  %v9542_v45 = vld [vmem:[#allocation11 + $0x96c] ss:$16 sps:$4 sm:$0xff]  }
 0x563   : > { %4861 = vmatpush1.bf16.msra.mxu0 %v9456_v56  ;;  %4780 = vmatprep.subr.bf16.mxu1 %v9461_v13  ;;  %v9537_v56 = vld [vmem:[#allocation11 + $0x960] ss:$16 sps:$4 sm:$0xff]   ;;  %v9540_v13 = vld [vmem:[#allocation11 + $0x968] ss:$16 sps:$4 sm:$0xff]  }
 0x564   : > { %4862 = vmatprep.subr.bf16.mxu0 %v9464_v27  ;;  %v9545_v27 = vld [vmem:[#allocation11 + $0x984] ss:$16 sps:$4 sm:$0xff]  }
 0x566   : > { %4781 = vmatpush1.bf16.msra.mxu1 %v9459_v10  ;;  %v9548_v10 = vld [vmem:[#allocation11 + $0x98c] ss:$16 sps:$4 sm:$0xff]  }
 0x567   : > { %4863 = vmatpush1.bf16.msra.mxu0 %v9462_v24  ;;  %4782 = vmatprep.subr.bf16.mxu1 %v9467_v16  ;;  %v9543_v24 = vld [vmem:[#allocation11 + $0x980] ss:$16 sps:$4 sm:$0xff]   ;;  %v9546_v16 = vld [vmem:[#allocation11 + $0x988] ss:$16 sps:$4 sm:$0xff]  }
 0x568   : > { %4864 = vmatprep.subr.bf16.mxu0 %v9470_v22  ;;  %v9551_v22 = vld [vmem:[#allocation11 + $0x9a4] ss:$16 sps:$4 sm:$0xff]  }
 0x56a   : > { %4783 = vmatpush1.bf16.msra.mxu1 %v9465_v47  ;;  %v9554_v47 = vld [vmem:[#allocation11 + $0x9ac] ss:$16 sps:$4 sm:$0xff]  }
 0x56b   : > { %4865 = vmatpush1.bf16.msra.mxu0 %v9468_v26  ;;  %5656 = vmatprep.subr.bf16.mxu1 %v9473_v39  ;;  %v9549_v26 = vld [vmem:[#allocation11 + $0x9a0] ss:$16 sps:$4 sm:$0xff]   ;;  %v9552_v39 = vld [vmem:[#allocation11 + $0x9a8] ss:$16 sps:$4 sm:$0xff]  }
 0x56c   : > { %5738 = vmatprep.subr.bf16.mxu0 %v9476_v28  ;;  %v9557_v28 = vld [vmem:[#allocation11 + $0x9c4] ss:$16 sps:$4 sm:$0xff]  }
 0x56d   : > { %4785 = vmatmul.mubr.bf16.vlgmr.msra.gmra.mrb[4].mxu1 %v11103_v46 }
 0x56e   : > { %4867 = vmatmul.mubr.bf16.vlgmr.msra.gmra.mrb[12].mxu0 %v11103_v46  ;;  %5657 = vmatpush1.bf16.msra.mxu1 %v9471_v14  ;;  %v9560_v14 = vld [vmem:[#allocation11 + $0x9cc] ss:$16 sps:$4 sm:$0xff]  }
 0x56f   : > { %5688 = vmatprep.mubr.bf16.mxu1 %v5009_v54  ;;  %5739 = vmatpush1.bf16.msra.mxu0 %v9474_v37  ;;  %v9555_v37 = vld [vmem:[#allocation11 + $0x9c0] ss:$16 sps:$4 sm:$0xff]  }
 0x570   : > { %5770 = vmatprep.mubr.bf16.mxu0 %v5009_v54  ;;  %5658 = vmatprep.subr.bf16.mxu1 %v9479_v40  ;;  %v9558_v40 = vld [vmem:[#allocation11 + $0x9c8] ss:$16 sps:$4 sm:$0xff]   ;;  %v9563_v54 = vld [vmem:[#allocation11 + $0x9e4] ss:$16 sps:$4 sm:$0xff]  }
 0x571   : > { %5740 = vmatprep.subr.bf16.mxu0 %v9482_v55  ;;  %v9566_v55 = vld [vmem:[#allocation11 + $0x9ec] ss:$16 sps:$4 sm:$0xff]  }
 0x572   : > { %5659 = vmatpush1.bf16.msra.mxu1 %v9477_v35  ;;  %v9561_v35 = vld [vmem:[#allocation11 + $0x9e0] ss:$16 sps:$4 sm:$0xff]  }
 0x573   : > { %5741 = vmatpush1.bf16.msra.mxu0 %v9480_v21  ;;  %5660 = vmatprep.subr.bf16.mxu1 %v9485_v59  ;;  %v9564_v21 = vld [vmem:[#allocation11 + $0x9e8] ss:$16 sps:$4 sm:$0xff]   ;;  %v9569_v59 = vld [vmem:[#allocation11 + $0xa04] ss:$16 sps:$4 sm:$0xff]  }
 0x574   : > { %5742 = vmatprep.subr.bf16.mxu0 %v9488_v32  ;;  %v9572_v32 = vld [vmem:[#allocation11 + $0xa0c] ss:$16 sps:$4 sm:$0xff]  }
 0x576   : > { %5661 = vmatpush1.bf16.msra.mxu1 %v9483_v34  ;;  %v9567_v34 = vld [vmem:[#allocation11 + $0xa00] ss:$16 sps:$4 sm:$0xff]  }
 0x577   : > { %5743 = vmatpush1.bf16.msra.mxu0 %v9486_v33  ;;  %5662 = vmatprep.subr.bf16.mxu1 %v9491_v8  ;;  %v5008_v33 = vrot.slane %v11075_v7, 1  ;;  %v9570_v8 = vld [vmem:[#allocation11 + $0xa08] ss:$16 sps:$4 sm:$0xff]   ;;  %v9579_v7 = vld [vmem:[#allocation11 + $0xa40] ss:$16 sps:$4 sm:$0xff]  }
 0x578   : > { %5744 = vmatprep.subr.bf16.mxu0 %v9494_v17  ;;  %v9575_v17 = vld [vmem:[#allocation11 + $0xa24] ss:$16 sps:$4 sm:$0xff]  }
 0x57a   : > { %5663 = vmatpush1.bf16.msra.mxu1 %v9489_v48  ;;  %v5011_v48 = vrot.slane %v11108_v57, 1  ;;  %v9590_v57 = vld [vmem:[#allocation11 + $0xa6c] ss:$16 sps:$4 sm:$0xff]  }
 0x57b   : > { %5745 = vmatpush1.bf16.msra.mxu0 %v9492_v36  ;;  %5664 = vmatprep.subr.bf16.mxu1 %v9497_v43  ;;  %v9578_v36 = vld [vmem:[#allocation11 + $0xa2c] ss:$16 sps:$4 sm:$0xff]   ;;  %v9573_v43 = vld [vmem:[#allocation11 + $0xa20] ss:$16 sps:$4 sm:$0xff]  }
 0x57c   : > { %5746 = vmatprep.subr.bf16.mxu0 %v9500_v58  ;;  %v9576_v58 = vld [vmem:[#allocation11 + $0xa28] ss:$16 sps:$4 sm:$0xff]  }
 0x57e   : > { %5665 = vmatpush1.bf16.msra.mxu1 %v9495_v60  ;;  %v9581_v60 = vld [vmem:[#allocation11 + $0xa44] ss:$16 sps:$4 sm:$0xff]  }
 0x57f   : > { %5747 = vmatpush1.bf16.msra.mxu0 %v9498_v61  ;;  %5666 = vmatprep.subr.bf16.mxu1 %v9503_v19  ;;  %v9584_v61 = vld [vmem:[#allocation11 + $0xa4c] ss:$16 sps:$4 sm:$0xff]   ;;  %v9582_v19 = vld [vmem:[#allocation11 + $0xa48] ss:$16 sps:$4 sm:$0xff]  }
 0x580   : > { %5748 = vmatprep.subr.bf16.mxu0 %v9506_v4  ;;  %v9587_v4 = vld [vmem:[#allocation11 + $0xa64] ss:$16 sps:$4 sm:$0xff]  }
 0x582   : > { %5667 = vmatpush1.bf16.msra.mxu1 %v9501_v6  ;;  %v9585_v6 = vld [vmem:[#allocation11 + $0xa60] ss:$16 sps:$4 sm:$0xff]  }
 0x583   : > { %5749 = vmatpush1.bf16.msra.mxu0 %v9504_v49  ;;  %5668 = vmatprep.subr.bf16.mxu1 %v9509_v53  ;;  %v9588_v49 = vld [vmem:[#allocation11 + $0xa68] ss:$16 sps:$4 sm:$0xff]   ;;  %v9593_v53 = vld [vmem:[#allocation11 + $0xa84] ss:$16 sps:$4 sm:$0xff]  }
 0x584   : > { %5750 = vmatprep.subr.bf16.mxu0 %v9512_v51  ;;  %v9596_v51 = vld [vmem:[#allocation11 + $0xa8c] ss:$16 sps:$4 sm:$0xff]  }
 0x586   : > { %5669 = vmatpush1.bf16.msra.mxu1 %v9507_v2  ;;  %v9591_v2 = vld [vmem:[#allocation11 + $0xa80] ss:$16 sps:$4 sm:$0xff]  }
 0x587   : > { %5751 = vmatpush1.bf16.msra.mxu0 %v9510_v3  ;;  %5670 = vmatprep.subr.bf16.mxu1 %v9515_v23  ;;  %v9594_v3 = vld [vmem:[#allocation11 + $0xa88] ss:$16 sps:$4 sm:$0xff]   ;;  %v9599_v23 = vld [vmem:[#allocation11 + $0xaa4] ss:$16 sps:$4 sm:$0xff]  }
 0x588   : > { %5752 = vmatprep.subr.bf16.mxu0 %v9518_v20  ;;  %v9602_v20 = vld [vmem:[#allocation11 + $0xaac] ss:$16 sps:$4 sm:$0xff]  }
 0x58a   : > { %5671 = vmatpush1.bf16.msra.mxu1 %v9513_v9  ;;  %v9597_v9 = vld [vmem:[#allocation11 + $0xaa0] ss:$16 sps:$4 sm:$0xff]  }
 0x58b   : > { %5753 = vmatpush1.bf16.msra.mxu0 %v9516_v63  ;;  %5672 = vmatprep.subr.bf16.mxu1 %v9521_v25  ;;  %v9600_v63 = vld [vmem:[#allocation11 + $0xaa8] ss:$16 sps:$4 sm:$0xff]   ;;  %v9605_v25 = vld [vmem:[#allocation11 + $0xac4] ss:$16 sps:$4 sm:$0xff]  }
 0x58c   : > { %5754 = vmatprep.subr.bf16.mxu0 %v9524_v0  ;;  %v9608_v0 = vld [vmem:[#allocation11 + $0xacc] ss:$16 sps:$4 sm:$0xff]  }
 0x58e   : > { %5673 = vmatpush1.bf16.msra.mxu1 %v9519_v52  ;;  %v9603_v52 = vld [vmem:[#allocation11 + $0xac0] ss:$16 sps:$4 sm:$0xff]  }
 0x58f   : > { %5755 = vmatpush1.bf16.msra.mxu0 %v9522_v29  ;;  %5674 = vmatprep.subr.bf16.mxu1 %v9527_v44  ;;  %v9606_v29 = vld [vmem:[#allocation11 + $0xac8] ss:$16 sps:$4 sm:$0xff]   ;;  %v9611_v44 = vld [vmem:[#allocation11 + $0xae4] ss:$16 sps:$4 sm:$0xff]  }
 0x590   : > { %5756 = vmatprep.subr.bf16.mxu0 %v9530_v50  ;;  %v9614_v50 = vld [vmem:[#allocation11 + $0xaec] ss:$16 sps:$4 sm:$0xff]  }
 0x592   : > { %5675 = vmatpush1.bf16.msra.mxu1 %v9525_v5  ;;  %v9609_v5 = vld [vmem:[#allocation11 + $0xae0] ss:$16 sps:$4 sm:$0xff]  }
 0x593   : > { %5757 = vmatpush1.bf16.msra.mxu0 %v9528_v11  ;;  %5676 = vmatprep.subr.bf16.mxu1 %v9533_v38  ;;  %v9612_v11 = vld [vmem:[#allocation11 + $0xae8] ss:$16 sps:$4 sm:$0xff]   ;;  %v9617_v38 = vld [vmem:[#allocation11 + $0xb04] ss:$16 sps:$4 sm:$0xff]  }
 0x594   : > { %5758 = vmatprep.subr.bf16.mxu0 %v9536_v31  ;;  %v9620_v31 = vld [vmem:[#allocation11 + $0xb0c] ss:$16 sps:$4 sm:$0xff]  }
 0x596   : > { %5677 = vmatpush1.bf16.msra.mxu1 %v9531_v30  ;;  %v9615_v30 = vld [vmem:[#allocation11 + $0xb00] ss:$16 sps:$4 sm:$0xff]  }
 0x597   : > { %5759 = vmatpush1.bf16.msra.mxu0 %v9534_v41  ;;  %5678 = vmatprep.subr.bf16.mxu1 %v9539_v12  ;;  %v9618_v41 = vld [vmem:[#allocation11 + $0xb08] ss:$16 sps:$4 sm:$0xff]   ;;  %v9623_v12 = vld [vmem:[#allocation11 + $0xb24] ss:$16 sps:$4 sm:$0xff]  }
 0x598   : > { %5760 = vmatprep.subr.bf16.mxu0 %v9542_v45  ;;  %v9626_v45 = vld [vmem:[#allocation11 + $0xb2c] ss:$16 sps:$4 sm:$0xff]  }
 0x59a   : > { %5679 = vmatpush1.bf16.msra.mxu1 %v9537_v56  ;;  %v9621_v56 = vld [vmem:[#allocation11 + $0xb20] ss:$16 sps:$4 sm:$0xff]  }
 0x59b   : > { %5761 = vmatpush1.bf16.msra.mxu0 %v9540_v13  ;;  %5680 = vmatprep.subr.bf16.mxu1 %v9545_v27  ;;  %v9624_v13 = vld [vmem:[#allocation11 + $0xb28] ss:$16 sps:$4 sm:$0xff]   ;;  %v9629_v27 = vld [vmem:[#allocation11 + $0xb44] ss:$16 sps:$4 sm:$0xff]  }
 0x59c   : > { %5762 = vmatprep.subr.bf16.mxu0 %v9548_v10  ;;  %v9632_v10 = vld [vmem:[#allocation11 + $0xb4c] ss:$16 sps:$4 sm:$0xff]  }
 0x59e   : > { %5681 = vmatpush1.bf16.msra.mxu1 %v9543_v24  ;;  %v9627_v24 = vld [vmem:[#allocation11 + $0xb40] ss:$16 sps:$4 sm:$0xff]  }
 0x59f   : > { %5763 = vmatpush1.bf16.msra.mxu0 %v9546_v16  ;;  %5682 = vmatprep.subr.bf16.mxu1 %v9551_v22  ;;  %v9630_v16 = vld [vmem:[#allocation11 + $0xb48] ss:$16 sps:$4 sm:$0xff]   ;;  %v9635_v22 = vld [vmem:[#allocation11 + $0xb64] ss:$16 sps:$4 sm:$0xff]  }
 0x5a0   : > { %5764 = vmatprep.subr.bf16.mxu0 %v9554_v47  ;;  %v9638_v47 = vld [vmem:[#allocation11 + $0xb6c] ss:$16 sps:$4 sm:$0xff]  }
 0x5a2   : > { %5683 = vmatpush1.bf16.msra.mxu1 %v9549_v26  ;;  %v9633_v26 = vld [vmem:[#allocation11 + $0xb60] ss:$16 sps:$4 sm:$0xff]  }
 0x5a3   : > { %5765 = vmatpush1.bf16.msra.mxu0 %v9552_v39  ;;  %5684 = vmatprep.subr.bf16.mxu1 %v9557_v28  ;;  %v9636_v39 = vld [vmem:[#allocation11 + $0xb68] ss:$16 sps:$4 sm:$0xff]   ;;  %v9641_v28 = vld [vmem:[#allocation11 + $0xb84] ss:$16 sps:$4 sm:$0xff]  }
 0x5a4   : > { %5766 = vmatprep.subr.bf16.mxu0 %v9560_v14  ;;  %v9644_v14 = vld [vmem:[#allocation11 + $0xb8c] ss:$16 sps:$4 sm:$0xff]  }
 0x5a6   : > { %5685 = vmatpush1.bf16.msra.mxu1 %v9555_v37  ;;  %v9639_v37 = vld [vmem:[#allocation11 + $0xb80] ss:$16 sps:$4 sm:$0xff]  }
 0x5a7   : > { %5767 = vmatpush1.bf16.msra.mxu0 %v9558_v40  ;;  %5686 = vmatprep.subr.bf16.mxu1 %v9563_v54  ;;  %v9642_v40 = vld [vmem:[#allocation11 + $0xb88] ss:$16 sps:$4 sm:$0xff]   ;;  %v9647_v54 = vld [vmem:[#allocation11 + $0xba4] ss:$16 sps:$4 sm:$0xff]  }
 0x5a8   : > { %5768 = vmatprep.subr.bf16.mxu0 %v9566_v55  ;;  %v9650_v55 = vld [vmem:[#allocation11 + $0xbac] ss:$16 sps:$4 sm:$0xff]  }
 0x5aa   : > { %5687 = vmatpush1.bf16.msra.mxu1 %v9561_v35  ;;  %v9645_v35 = vld [vmem:[#allocation11 + $0xba0] ss:$16 sps:$4 sm:$0xff]  }
 0x5ab   : > { %5769 = vmatpush1.bf16.msra.mxu0 %v9564_v21  ;;  %5697 = vmatprep.subr.bf16.mxu1 %v9569_v59  ;;  %v9648_v21 = vld [vmem:[#allocation11 + $0xba8] ss:$16 sps:$4 sm:$0xff]   ;;  %v9653_v59 = vld [vmem:[#allocation11 + $0xbc4] ss:$16 sps:$4 sm:$0xff]  }
 0x5ac   : > { %5779 = vmatprep.subr.bf16.mxu0 %v9572_v32  ;;  %v9656_v32 = vld [vmem:[#allocation11 + $0xbcc] ss:$16 sps:$4 sm:$0xff]  }
 0x5ad   : > { %5689 = vmatmul.mubr.bf16.vlgmr.msra.gmra.mrb[4].mxu1 %v5008_v33 }
 0x5ae   : > { %5771 = vmatmul.mubr.bf16.vlgmr.msra.gmra.mrb[12].mxu0 %v5008_v33  ;;  %5698 = vmatpush1.bf16.msra.mxu1 %v9567_v34  ;;  %v9651_v34 = vld [vmem:[#allocation11 + $0xbc0] ss:$16 sps:$4 sm:$0xff]   ;;  %v9654_v33 = vld [vmem:[#allocation11 + $0xbc8] ss:$16 sps:$4 sm:$0xff]  }
 0x5af   : > { %5729 = vmatprep.mubr.bf16.mxu1 %v5011_v48  ;;  %5780 = vmatpush1.bf16.msra.mxu0 %v9570_v8  ;;  %v9659_v8 = vld [vmem:[#allocation11 + $0xbe4] ss:$16 sps:$4 sm:$0xff]  }
 0x5b0   : > { %5811 = vmatprep.mubr.bf16.mxu0 %v5011_v48  ;;  %5699 = vmatprep.subr.bf16.mxu1 %v9575_v17  ;;  %v9662_v17 = vld [vmem:[#allocation11 + $0xbec] ss:$16 sps:$4 sm:$0xff]   ;;  %v9657_v48 = vld [vmem:[#allocation11 + $0xbe0] ss:$16 sps:$4 sm:$0xff]  }
 0x5b1   : > { %5781 = vmatprep.subr.bf16.mxu0 %v9578_v36  ;;  %v9660_v36 = vld [vmem:[#allocation11 + $0xbe8] ss:$16 sps:$4 sm:$0xff]  }
 0x5b2   : > { %5700 = vmatpush1.bf16.msra.mxu1 %v9573_v43  ;;  %v9665_v43 = vld [vmem:[#allocation16 + $0x204] ss:$8 sps:$4 sm:$0xff]  }
 0x5b3   : > { %5782 = vmatpush1.bf16.msra.mxu0 %v9576_v58  ;;  %5701 = vmatprep.subr.bf16.mxu1 %v9581_v60  ;;  %v9663_v58 = vld [vmem:[#allocation16 + $0x200] ss:$8 sps:$4 sm:$0xff]   ;;  %v5010_v60 = vrot.slane %v11103_v46, 1  ;;  %v9680_v46 = vld [vmem:[#allocation16 + $0x254] ss:$8 sps:$4 sm:$0xff]  }
 0x5b4   : > { %5783 = vmatprep.subr.bf16.mxu0 %v9584_v61  ;;  %v9668_v61 = vld [vmem:[#allocation16 + $0x214] ss:$8 sps:$4 sm:$0xff]  }
 0x5b6   : > { %5702 = vmatpush1.bf16.msra.mxu1 %v9579_v7  ;;  %v9666_v7 = vld [vmem:[#allocation16 + $0x210] ss:$8 sps:$4 sm:$0xff]  }
 0x5b7   : > { %5784 = vmatpush1.bf16.msra.mxu0 %v9582_v19  ;;  %5703 = vmatprep.subr.bf16.mxu1 %v9587_v4  ;;  %v9671_v19 = vld [vmem:[#allocation16 + $0x224] ss:$8 sps:$4 sm:$0xff]   ;;  %v9669_v4 = vld [vmem:[#allocation16 + $0x220] ss:$8 sps:$4 sm:$0xff]  }
 0x5b8   : > { %5785 = vmatprep.subr.bf16.mxu0 %v9590_v57  ;;  %v9674_v57 = vld [vmem:[#allocation16 + $0x234] ss:$8 sps:$4 sm:$0xff]  }
 0x5ba   : > { %5704 = vmatpush1.bf16.msra.mxu1 %v9585_v6  ;;  %v9672_v6 = vld [vmem:[#allocation16 + $0x230] ss:$8 sps:$4 sm:$0xff]  }
 0x5bb   : > { %5786 = vmatpush1.bf16.msra.mxu0 %v9588_v49  ;;  %5705 = vmatprep.subr.bf16.mxu1 %v9593_v53  ;;  %v9677_v49 = vld [vmem:[#allocation16 + $0x244] ss:$8 sps:$4 sm:$0xff]   ;;  %v9675_v53 = vld [vmem:[#allocation16 + $0x240] ss:$8 sps:$4 sm:$0xff]  }
 0x5bc   : > { %5787 = vmatprep.subr.bf16.mxu0 %v9596_v51  ;;  %v9678_v51 = vld [vmem:[#allocation16 + $0x250] ss:$8 sps:$4 sm:$0xff]  }
 0x5be   : > { %5706 = vmatpush1.bf16.msra.mxu1 %v9591_v2  ;;  %v9683_v2 = vld [vmem:[#allocation16 + $0x264] ss:$8 sps:$4 sm:$0xff]  }
 0x5bf   : > { %5788 = vmatpush1.bf16.msra.mxu0 %v9594_v3  ;;  %5707 = vmatprep.subr.bf16.mxu1 %v9599_v23  ;;  %v9681_v3 = vld [vmem:[#allocation16 + $0x260] ss:$8 sps:$4 sm:$0xff]   ;;  %v9686_v23 = vld [vmem:[#allocation16 + $0x274] ss:$8 sps:$4 sm:$0xff]  }
 0x5c0   : > { %5789 = vmatprep.subr.bf16.mxu0 %v9602_v20  ;;  %v9684_v20 = vld [vmem:[#allocation16 + $0x270] ss:$8 sps:$4 sm:$0xff]  }
 0x5c2   : > { %5708 = vmatpush1.bf16.msra.mxu1 %v9597_v9  ;;  %v9689_v9 = vld [vmem:[#allocation16 + $0x284] ss:$8 sps:$4 sm:$0xff]  }
 0x5c3   : > { %5790 = vmatpush1.bf16.msra.mxu0 %v9600_v63  ;;  %5709 = vmatprep.subr.bf16.mxu1 %v9605_v25  ;;  %v9687_v63 = vld [vmem:[#allocation16 + $0x280] ss:$8 sps:$4 sm:$0xff]   ;;  %v9692_v25 = vld [vmem:[#allocation16 + $0x294] ss:$8 sps:$4 sm:$0xff]  }
 0x5c4   : > { %5791 = vmatprep.subr.bf16.mxu0 %v9608_v0  ;;  %v9690_v0 = vld [vmem:[#allocation16 + $0x290] ss:$8 sps:$4 sm:$0xff]  }
 0x5c6   : > { %5710 = vmatpush1.bf16.msra.mxu1 %v9603_v52  ;;  %v9695_v52 = vld [vmem:[#allocation16 + $0x2a4] ss:$8 sps:$4 sm:$0xff]  }
 0x5c7   : > { %5792 = vmatpush1.bf16.msra.mxu0 %v9606_v29  ;;  %5711 = vmatprep.subr.bf16.mxu1 %v9611_v44  ;;  %v9693_v29 = vld [vmem:[#allocation16 + $0x2a0] ss:$8 sps:$4 sm:$0xff]   ;;  %v9698_v44 = vld [vmem:[#allocation16 + $0x2b4] ss:$8 sps:$4 sm:$0xff]  }
 0x5c8   : > { %5793 = vmatprep.subr.bf16.mxu0 %v9614_v50  ;;  %v9696_v50 = vld [vmem:[#allocation16 + $0x2b0] ss:$8 sps:$4 sm:$0xff]  }
 0x5ca   : > { %5712 = vmatpush1.bf16.msra.mxu1 %v9609_v5  ;;  %v9701_v5 = vld [vmem:[#allocation16 + $0x2c4] ss:$8 sps:$4 sm:$0xff]  }
 0x5cb   : > { %5794 = vmatpush1.bf16.msra.mxu0 %v9612_v11  ;;  %5713 = vmatprep.subr.bf16.mxu1 %v9617_v38  ;;  %v9699_v11 = vld [vmem:[#allocation16 + $0x2c0] ss:$8 sps:$4 sm:$0xff]   ;;  %v9704_v38 = vld [vmem:[#allocation16 + $0x2d4] ss:$8 sps:$4 sm:$0xff]  }
 0x5cc   : > { %5795 = vmatprep.subr.bf16.mxu0 %v9620_v31  ;;  %v9702_v31 = vld [vmem:[#allocation16 + $0x2d0] ss:$8 sps:$4 sm:$0xff]  }
 0x5ce   : > { %5714 = vmatpush1.bf16.msra.mxu1 %v9615_v30  ;;  %v9707_v30 = vld [vmem:[#allocation16 + $0x2e4] ss:$8 sps:$4 sm:$0xff]  }
 0x5cf   : > { %5796 = vmatpush1.bf16.msra.mxu0 %v9618_v41  ;;  %5715 = vmatprep.subr.bf16.mxu1 %v9623_v12  ;;  %v9705_v41 = vld [vmem:[#allocation16 + $0x2e0] ss:$8 sps:$4 sm:$0xff]   ;;  %v9710_v12 = vld [vmem:[#allocation16 + $0x2f4] ss:$8 sps:$4 sm:$0xff]  }
 0x5d0   : > { %5797 = vmatprep.subr.bf16.mxu0 %v9626_v45  ;;  %v9708_v45 = vld [vmem:[#allocation16 + $0x2f0] ss:$8 sps:$4 sm:$0xff]  }
 0x5d2   : > { %5716 = vmatpush1.bf16.msra.mxu1 %v9621_v56  ;;  %v9713_v56 = vld [vmem:[#allocation16 + $0x304] ss:$8 sps:$4 sm:$0xff]  }
 0x5d3   : > { %5798 = vmatpush1.bf16.msra.mxu0 %v9624_v13  ;;  %5717 = vmatprep.subr.bf16.mxu1 %v9629_v27  ;;  %v5824_v13 = vld [vmem:[#allocation13] sm:$0xf]  ;;  %v5850_v27 = vld [vmem:[#allocation14] sm:$0xf] }
 0x5d4   : > { %5799 = vmatprep.subr.bf16.mxu0 %v9632_v10  ;;  %v5829_v10 = vrot.slane %v5824_v13, %v10769_v15 }
 0x5d6   : > { %5718 = vmatpush1.bf16.msra.mxu1 %v9627_v24  ;;  %v5837_v24 = vrot.slane %v5824_v13, %v10847_v62 }
 0x5d7   : > { %5800 = vmatpush1.bf16.msra.mxu0 %v9630_v16  ;;  %5719 = vmatprep.subr.bf16.mxu1 %v9635_v22  ;;  %v5833_v16 = vrot.slane %v5824_v13, %v10772_v18  ;;  %v5855_v22 = vrot.slane %v5850_v27, %v10769_v15 }
 0x5d8   : > { %5801 = vmatprep.subr.bf16.mxu0 %v9638_v47  ;;  %v5841_v47 = vrot.slane %v5824_v13, %v10850_v42 }
 0x5da   : > { %5720 = vmatpush1.bf16.msra.mxu1 %v9633_v26 }
 0x5db   : > { %5802 = vmatpush1.bf16.msra.mxu0 %v9636_v39  ;;  %5721 = vmatprep.subr.bf16.mxu1 %v9641_v28  ;;  %v5863_v39 = vrot.slane %v5850_v27, %v10847_v62  ;;  %v5859_v28 = vrot.slane %v5850_v27, %v10772_v18 }
 0x5dc   : > { %5803 = vmatprep.subr.bf16.mxu0 %v9644_v14 }
 0x5de   : > { %5722 = vmatpush1.bf16.msra.mxu1 %v9639_v37 }
 0x5df   : > { %5804 = vmatpush1.bf16.msra.mxu0 %v9642_v40  ;;  %5723 = vmatprep.subr.bf16.mxu1 %v9647_v54  ;;  %v5867_v54 = vrot.slane %v5850_v27, %v10850_v42  ;;  %v9716_v27 = vld [vmem:[#allocation16 + $0x314] ss:$8 sps:$4 sm:$0xff]  }
 0x5e0   : > { %5805 = vmatprep.subr.bf16.mxu0 %v9650_v55 }
 0x5e2   : > { %5724 = vmatpush1.bf16.msra.mxu1 %v9645_v35 }
 0x5e3   : > { %5806 = vmatpush1.bf16.msra.mxu0 %v9648_v21  ;;  %5725 = vmatprep.subr.bf16.mxu1 %v9653_v59 }
 0x5e4   : > { %5807 = vmatprep.subr.bf16.mxu0 %v9656_v32 }
 0x5e6   : > { %5726 = vmatpush1.bf16.msra.mxu1 %v9651_v34 }
 0x5e7   : > { %5808 = vmatpush1.bf16.msra.mxu0 %v9654_v33  ;;  %5727 = vmatprep.subr.bf16.mxu1 %v9659_v8 }
 0x5e8   : > { %5809 = vmatprep.subr.bf16.mxu0 %v9662_v17 }
 0x5ea   : > { %5728 = vmatpush1.bf16.msra.mxu1 %v9657_v48 }
 0x5eb   : > { %5810 = vmatpush1.bf16.msra.mxu0 %v9660_v36  ;;  %6409 = vmatprep.subr.bf16.mxu1 %v9665_v43 }
 0x5ed   : > { %5730 = vmatmul.mubr.bf16.vlgmr.msra.gmra.mrb[4].mxu1 %v5010_v60 }
 0x5ee   : > { %5812 = vmatmul.mubr.bf16.vlgmr.msra.gmra.mrb[12].mxu0 %v5010_v60  ;;  %6410 = vmatpush1.bf16.msra.mxu1 %v9663_v58 }
 0x5ef   : > { %6411 = vmatprep.subr.bf16.mxu1 %v9668_v61 }
 0x5f2   : > { %6412 = vmatpush1.bf16.msra.mxu1 %v9666_v7 }
 0x5f3   : > { %6413 = vmatprep.subr.bf16.mxu1 %v9671_v19 }
 0x5f6   : > { %6414 = vmatpush1.bf16.msra.mxu1 %v9669_v4 }
 0x5f7   : > { %6415 = vmatprep.subr.bf16.mxu1 %v9674_v57 }
 0x5fa   : > { %6416 = vmatpush1.bf16.msra.mxu1 %v9672_v6 }
 0x5fb   : > { %6417 = vmatprep.subr.bf16.mxu1 %v9677_v49 }
 0x5fe   : > { %6418 = vmatpush1.bf16.msra.mxu1 %v9675_v53 }
 0x5ff   : > { %6419 = vmatprep.subr.bf16.mxu1 %v9680_v46 }
 0x602   : > { %6420 = vmatpush1.bf16.msra.mxu1 %v9678_v51 }
 0x603   : > { %6421 = vmatprep.subr.bf16.mxu1 %v9683_v2 }
 0x606   : > { %6422 = vmatpush1.bf16.msra.mxu1 %v9681_v3 }
 0x607   : > { %6423 = vmatprep.subr.bf16.mxu1 %v9686_v23 }
 0x60a   : > { %6424 = vmatpush1.bf16.msra.mxu1 %v9684_v20 }
 0x60b   : > { %6425 = vmatprep.subr.bf16.mxu1 %v9689_v9 }
 0x60e   : > { %6426 = vmatpush1.bf16.msra.mxu1 %v9687_v63 }
 0x60f   : > { %6427 = vmatprep.subr.bf16.mxu1 %v9692_v25 }
 0x612   : > { %6428 = vmatpush1.bf16.msra.mxu1 %v9690_v0 }
 0x613   : > { %6429 = vmatprep.subr.bf16.mxu1 %v9695_v52 }
 0x616   : > { %6430 = vmatpush1.bf16.msra.mxu1 %v9693_v29 }
 0x617   : > { %6431 = vmatprep.subr.bf16.mxu1 %v9698_v44 }
 0x61a   : > { %6432 = vmatpush1.bf16.msra.mxu1 %v9696_v50 }
 0x61b   : > { %6433 = vmatprep.subr.bf16.mxu1 %v9701_v5 }
 0x61e   : > { %6434 = vmatpush1.bf16.msra.mxu1 %v9699_v11 }
 0x61f   : > { %6435 = vmatprep.subr.bf16.mxu1 %v9704_v38 }
 0x622   : > { %6436 = vmatpush1.bf16.msra.mxu1 %v9702_v31 }
 0x623   : > { %6437 = vmatprep.subr.bf16.mxu1 %v9707_v30 }
 0x626   : > { %6438 = vmatpush1.bf16.msra.mxu1 %v9705_v41 }
 0x627   : > { %6439 = vmatprep.subr.bf16.mxu1 %v9710_v12  ;;  %v9711_v12 = vld [vmem:[#allocation16 + $0x300] ss:$8 sps:$4 sm:$0xff]  }
 0x62a   : > { %6440 = vmatpush1.bf16.msra.mxu1 %v9708_v45 }
 0x62b   : > { %6450 = vmatprep.subr.bf16.mxu1 %v9713_v56 }
 0x6c0   : > { %v5731_v26 = vpop.f32.mrb[4].mxu1 }
 0x6c1   : > { %v5846_v14 = vmul.f32 %v5829_v10, %v5731_v26  ;;  %v5813_v37 = vpop.f32.mrb[12].mxu0  ;;  %v5733_v40 = vpop.f32.mrb[5].mxu1  ;;  %v9720_v26 = vld [vmem:[#allocation16 + $0x330] ss:$8 sps:$4 sm:$0xff]  }
 0x6c2   : > { %v5848_v55 = vmul.f32 %v5837_v24, %v5813_v37  ;;  %v5847_v35 = vmul.f32 %v5833_v16, %v5733_v40  ;;  %v5815_v21 = vpop.f32.mrb[13].mxu0  ;;  %v5735_v59 = vpop.f32.mrb[6].mxu1  ;;  %v9714_v24 = vld [vmem:[#allocation16 + $0x310] ss:$8 sps:$4 sm:$0xff]   ;;  %v9719_v16 = vld [vmem:[#allocation16 + $0x324] ss:$8 sps:$4 sm:$0xff]  }
 0x6c3   : > { %v5872_v32 = vadd.f32 %v5855_v22, %v5846_v14  ;;  %v5849_v34 = vmul.f32 %v5841_v47, %v5815_v21  ;;  %v5817_v33 = vpop.f32.mrb[14].mxu0  ;;  %v5736_v8 = vpop.f32.mrb[7].mxu1  ;;  %v9717_v22 = vld [vmem:[#allocation16 + $0x320] ss:$8 sps:$4 sm:$0xff]   ;;  %v9722_v47 = vld [vmem:[#allocation16 + $0x334] ss:$8 sps:$4 sm:$0xff]  }
 0x6c4   : > { %v11134_v17 = vadd.f32 %v5863_v39, %v5848_v55  ;;  %v5873_v48 = vadd.f32 %v5859_v28, %v5847_v35  ;;  %v5818_v36 = vpop.f32.mrb[15].mxu0  ;;  %v9725_v39 = vld [vmem:[#allocation16 + $0x344] ss:$8 sps:$4 sm:$0xff]   ;;  %v9723_v28 = vld [vmem:[#allocation16 + $0x340] ss:$8 sps:$4 sm:$0xff]  }
 0x6c5   : > { %vm5876_vm10 = vcmp.ge.f32.partialorder %v5872_v32, 0.0  ;;  %v5880_v62 = vmul.f32 0.01, %v5872_v32  ;;  %v5875_v43 = vadd.f32 %v5867_v54, %v5849_v34  ;;  %v9728_v14 = vld [vmem:[#allocation16 + $0x354] ss:$8 sps:$4 sm:$0xff]  }
 0x6c6   : > { %vm5877_vm11 = vcmp.ge.f32.partialorder %v5873_v48, 0.0  ;;  %v5881_v58 = vmul.f32 0.01, %v5873_v48  ;;  %v9726_v37 = vld [vmem:[#allocation16 + $0x350] ss:$8 sps:$4 sm:$0xff]   ;;  %vm5878_vm13 = vcmp.ge.f32.partialorder %v11134_v17, 0.0 }
 0x6c7   : > { %v5884_v60 = vsel %vm5876_vm10, %v5872_v32, %v5880_v62  ;;  %v5883_v19 = vmul.f32 0.01, %v5875_v43  ;;  %vm5879_vm12 = vcmp.ge.f32.partialorder %v5875_v43, 0.0  ;;  %v9731_v40 = vld [vmem:[#allocation16 + $0x364] ss:$8 sps:$4 sm:$0xff]  }
 0x6c8   : > { %v5892_v61 = vrot.slane %v5884_v60, 1  ;;  %v5900_v42 = vrot.slane %v5884_v60, 7  ;;  %v5908_v7 = vrot.slane %v5884_v60, 5  ;;  %v5885_v4 = vsel %vm5877_vm11, %v5873_v48, %v5881_v58  ;;  %v9729_v54 = vld [vmem:[#allocation16 + $0x360] ss:$8 sps:$4 sm:$0xff]  }
 0x6c9   : > { %v5893_v49 = vrot.slane %v5885_v4, 1  ;;  %v5901_v53 = vrot.slane %v5885_v4, 7  ;;  %v5909_v51 = vrot.slane %v5885_v4, 5  ;;  %v5887_v3 = vsel %vm5879_vm12, %v5875_v43, %v5883_v19  ;;  %v9734_v55 = vld [vmem:[#allocation16 + $0x374] ss:$8 sps:$4 sm:$0xff]  }
 0x6ca   : > { %v5916_v57 = vsel %vm590_vm2, %v5892_v61, %v5900_v42  ;;  %v5920_v6 = vsel %vm590_vm2, %v5900_v42, %v5908_v7  ;;  %v5895_v20 = vrot.slane %v5887_v3, 1  ;;  %v5903_v9 = vrot.slane %v5887_v3, 7  ;;  %v9732_v35 = vld [vmem:[#allocation16 + $0x370] ss:$8 sps:$4 sm:$0xff]   ;;  %v9737_v21 = vld [vmem:[#allocation16 + $0x384] ss:$8 sps:$4 sm:$0xff]  }
 0x6cb   : > { %v11138_v46 = vpack.c.bf16 %v5920_v6, %v5916_v57  ;;  %v5917_v2 = vsel %vm590_vm2, %v5893_v49, %v5901_v53  ;;  %v5921_v23 = vsel %vm590_vm2, %v5901_v53, %v5909_v51  ;;  %v5911_v63 = vrot.slane %v5887_v3, 5  ;;  %v9735_v59 = vld [vmem:[#allocation16 + $0x380] ss:$8 sps:$4 sm:$0xff]   ;;  %v9740_v32 = vld [vmem:[#allocation16 + $0x394] ss:$8 sps:$4 sm:$0xff]  }
 0x6cc   : > { %v11142_v25 = vpack.c.bf16 %v5921_v23, %v5917_v2  ;;  %v5919_v52 = vsel %vm590_vm2, %v5895_v20, %v5903_v9  ;;  %v9738_v34 = vld [vmem:[#allocation16 + $0x390] ss:$8 sps:$4 sm:$0xff]   ;;  %v9743_v33 = vld [vmem:[#allocation16 + $0x3a4] ss:$8 sps:$4 sm:$0xff]   ;;  %v5882_v8 = vmul.f32 0.01, %v11134_v17 }
 0x6cd   : > { %v6060_v0 = vshll.u32 %v11138_v46, 16  ;;  %v5923_v29 = vsel %vm590_vm2, %v5903_v9, %v5911_v63  ;;  %v6058_v30 = vshrl.u32 %v11138_v46, 16  ;;  %v9741_v48 = vld [vmem:[#allocation16 + $0x3a0] ss:$8 sps:$4 sm:$0xff]   ;;  %v9746_v36 = vld [vmem:[#allocation16 + $0x3b4] ss:$8 sps:$4 sm:$0xff]  }
 0x6ce   : > { %v6067_v44 = vshll.u32 %v11142_v25, 16  ;;  %v11148_v50 = vpack.c.bf16 %v5923_v29, %v5919_v52  ;;  %v6065_v11 = vshrl.u32 %v11142_v25, 16  ;;  %v5886_v62 = vsel %vm5878_vm13, %v11134_v17, %v5882_v8  ;;  %v9744_v43 = vld [vmem:[#allocation16 + $0x3b0] ss:$8 sps:$4 sm:$0xff]   ;;  %v9749_v58 = vld [vmem:[#allocation16 + $0x3c4] ss:$8 sps:$4 sm:$0xff]  }
 0x6cf   : > { %v6062_v5 = vrot.slane %v6060_v0, 1  ;;  %v5894_v60 = vrot.slane %v5886_v62, 1  ;;  %v5902_v61 = vrot.slane %v5886_v62, 7  ;;  %v5910_v42 = vrot.slane %v5886_v62, 5  ;;  %v9747_v7 = vld [vmem:[#allocation16 + $0x3c0] ss:$8 sps:$4 sm:$0xff]  }
 0x6d0   : > { %v6069_v38 = vrot.slane %v6067_v44, 1  ;;  %v6081_v31 = vshll.u32 %v11148_v50, 16  ;;  %v6079_v45 = vshrl.u32 %v11148_v50, 16  ;;  %v9752_v19 = vld [vmem:[#allocation16 + $0x3d4] ss:$8 sps:$4 sm:$0xff]  }
 0x6d1   : > { %v6063_v13 = vor.u32 %v6062_v5, %v6058_v30  ;;  %v5918_v4 = vsel %vm590_vm2, %v5894_v60, %v5902_v61  ;;  %v5922_v57 = vsel %vm590_vm2, %v5902_v61, %v5910_v42  ;;  %v9750_v6 = vld [vmem:[#allocation16 + $0x3d0] ss:$8 sps:$4 sm:$0xff]   ;;  %v9755_v17 = vld [vmem:[#allocation16 + $0x3e4] ss:$8 sps:$4 sm:$0xff]   ;;  %v9753_v53 = vld [vmem:[#allocation16 + $0x3e0] ss:$8 sps:$4 sm:$0xff]  }
 0x6d2   : > { %v6070_v41 = vor.u32 %v6069_v38, %v6065_v11  ;;  %v6083_v56 = vrot.slane %v6081_v31, 1  ;;  %v11159_v49 = vpack.c.bf16 %v5922_v57, %v5918_v4  ;;  %v9758_v51 = vld [vmem:[#allocation16 + $0x3f4] ss:$8 sps:$4 sm:$0xff]   ;;  %v9756_v3 = vld [vmem:[#allocation16 + $0x3f0] ss:$8 sps:$4 sm:$0xff]  }
 0x6d3   : > { %v9761_v20 = vld [vmem:[#allocation16 + $0x4] ss:$8 sps:$4 sm:$0xff]   ;;  %v9759_v63 = vld [vmem:[#allocation16] ss:$8 sps:$4 sm:$0xff]   ;;  %v9764_v52 = vld [vmem:[#allocation16 + $0x14] ss:$8 sps:$4 sm:$0xff]  }
 0x6d4   : > { %6441 = vmatprep.mubr.bf16.mxu1 %v6070_v41  ;;  %v6084_v10 = vor.u32 %v6083_v56, %v6079_v45  ;;  %v6074_v2 = vshll.u32 %v11159_v49, 16  ;;  %v6072_v9 = vshrl.u32 %v11159_v49, 16  ;;  %v9762_v29 = vld [vmem:[#allocation16 + $0x10] ss:$8 sps:$4 sm:$0xff]   ;;  %v9767_v44 = vld [vmem:[#allocation16 + $0x24] ss:$8 sps:$4 sm:$0xff]  }
 0x6d5   : > { %6442 = vmatmul.mubr.bf16.vlgmr.msra.gmra.mrb[8].mxu1 %v6063_v13  ;;  %v9765_v5 = vld [vmem:[#allocation16 + $0x20] ss:$8 sps:$4 sm:$0xff]   ;;  %v9770_v11 = vld [vmem:[#allocation16 + $0x34] ss:$8 sps:$4 sm:$0xff]   ;;  %v9768_v38 = vld [vmem:[#allocation16 + $0x30] ss:$8 sps:$4 sm:$0xff]  }
 0x6d6   : > { %6451 = vmatpush1.bf16.msra.mxu1 %v9711_v12  ;;  %6482 = vmatprep.mubr.bf16.mxu1 %v6084_v10  ;;  %v6076_v23 = vrot.slane %v6074_v2, 1  ;;  %v9773_v31 = vld [vmem:[#allocation16 + $0x44] ss:$8 sps:$4 sm:$0xff]   ;;  %v9771_v30 = vld [vmem:[#allocation16 + $0x40] ss:$8 sps:$4 sm:$0xff]  }
 0x6d7   : > { %6452 = vmatprep.subr.bf16.mxu1 %v9716_v27  ;;  %v9776_v41 = vld [vmem:[#allocation16 + $0x54] ss:$8 sps:$4 sm:$0xff]   ;;  %v9774_v12 = vld [vmem:[#allocation16 + $0x50] ss:$8 sps:$4 sm:$0xff]   ;;  %v9779_v45 = vld [vmem:[#allocation16 + $0x64] ss:$8 sps:$4 sm:$0xff]  }
 0x6d8   : > { %v6077_v0 = vor.u32 %v6076_v23, %v6072_v9  ;;  %v9777_v56 = vld [vmem:[#allocation16 + $0x60] ss:$8 sps:$4 sm:$0xff]   ;;  %v9782_v13 = vld [vmem:[#allocation16 + $0x74] ss:$8 sps:$4 sm:$0xff]   ;;  %v9780_v27 = vld [vmem:[#allocation16 + $0x70] ss:$8 sps:$4 sm:$0xff]  }
 0x6d9   : > { %v9785_v10 = vld [vmem:[#allocation16 + $0x84] ss:$8 sps:$4 sm:$0xff]   ;;  %v9810_v8 = vld [vmem:[#allocation16 + $0x110] ss:$8 sps:$4 sm:$0xff]   ;;  %v9818_v62 = vld [vmem:[#allocation16 + $0x134] ss:$8 sps:$4 sm:$0xff]  }
 0x6da   : > { %6453 = vmatpush1.bf16.msra.mxu1 %v9714_v24  ;;  %v9783_v24 = vld [vmem:[#allocation16 + $0x80] ss:$8 sps:$4 sm:$0xff]   ;;  %v9824_v61 = vld [vmem:[#allocation16 + $0x154] ss:$8 sps:$4 sm:$0xff]   ;;  %v9822_v42 = vld [vmem:[#allocation16 + $0x150] ss:$8 sps:$4 sm:$0xff]  }
 0x6db   : > { %6454 = vmatprep.subr.bf16.mxu1 %v9719_v16  ;;  %v9788_v16 = vld [vmem:[#allocation16 + $0x94] ss:$8 sps:$4 sm:$0xff]   ;;  %v9819_v60 = vld [vmem:[#allocation16 + $0x140] ss:$8 sps:$4 sm:$0xff]   ;;  %v9828_v57 = vld [vmem:[#allocation16 + $0x170] ss:$8 sps:$4 sm:$0xff]  }
 0x6dc   : > { %v9830_v4 = vld [vmem:[#allocation16 + $0x174] ss:$8 sps:$4 sm:$0xff]   ;;  %v9839_v2 = vld [vmem:[#allocation16 + $0x1a4] ss:$8 sps:$4 sm:$0xff]  }
 0x6dd   : > { %v9842_v23 = vld [vmem:[#allocation16 + $0x1b4] ss:$8 sps:$4 sm:$0xff]   ;;  %v9845_v9 = vld [vmem:[#allocation16 + $0x1c4] ss:$8 sps:$4 sm:$0xff]  }
 0x6de   : > { %6455 = vmatpush1.bf16.msra.mxu1 %v9717_v22  ;;  %v9786_v22 = vld [vmem:[#allocation16 + $0x90] ss:$8 sps:$4 sm:$0xff]  }
 0x6df   : > { %6456 = vmatprep.subr.bf16.mxu1 %v9722_v47  ;;  %v9791_v47 = vld [vmem:[#allocation16 + $0xa4] ss:$8 sps:$4 sm:$0xff]  }
 0x6e2   : > { %6457 = vmatpush1.bf16.msra.mxu1 %v9720_v26  ;;  %v9789_v26 = vld [vmem:[#allocation16 + $0xa0] ss:$8 sps:$4 sm:$0xff]  }
 0x6e3   : > { %6458 = vmatprep.subr.bf16.mxu1 %v9725_v39  ;;  %v9794_v39 = vld [vmem:[#allocation16 + $0xb4] ss:$8 sps:$4 sm:$0xff]  }
 0x6e6   : > { %6459 = vmatpush1.bf16.msra.mxu1 %v9723_v28  ;;  %v9792_v28 = vld [vmem:[#allocation16 + $0xb0] ss:$8 sps:$4 sm:$0xff]  }
 0x6e7   : > { %6460 = vmatprep.subr.bf16.mxu1 %v9728_v14  ;;  %v9797_v14 = vld [vmem:[#allocation16 + $0xc4] ss:$8 sps:$4 sm:$0xff]  }
 0x6ea   : > { %6461 = vmatpush1.bf16.msra.mxu1 %v9726_v37  ;;  %v9795_v37 = vld [vmem:[#allocation16 + $0xc0] ss:$8 sps:$4 sm:$0xff]  }
 0x6eb   : > { %6462 = vmatprep.subr.bf16.mxu1 %v9731_v40  ;;  %v9800_v40 = vld [vmem:[#allocation16 + $0xd4] ss:$8 sps:$4 sm:$0xff]  }
 0x6ee   : > { %6463 = vmatpush1.bf16.msra.mxu1 %v9729_v54  ;;  %v9798_v54 = vld [vmem:[#allocation16 + $0xd0] ss:$8 sps:$4 sm:$0xff]  }
 0x6ef   : > { %6464 = vmatprep.subr.bf16.mxu1 %v9734_v55  ;;  %v9803_v55 = vld [vmem:[#allocation16 + $0xe4] ss:$8 sps:$4 sm:$0xff]  }
 0x6f2   : > { %6465 = vmatpush1.bf16.msra.mxu1 %v9732_v35  ;;  %v9801_v35 = vld [vmem:[#allocation16 + $0xe0] ss:$8 sps:$4 sm:$0xff]  }
 0x6f3   : > { %6466 = vmatprep.subr.bf16.mxu1 %v9737_v21  ;;  %v9806_v21 = vld [vmem:[#allocation16 + $0xf4] ss:$8 sps:$4 sm:$0xff]  }
 0x6f6   : > { %6467 = vmatpush1.bf16.msra.mxu1 %v9735_v59  ;;  %v9804_v59 = vld [vmem:[#allocation16 + $0xf0] ss:$8 sps:$4 sm:$0xff]  }
 0x6f7   : > { %6468 = vmatprep.subr.bf16.mxu1 %v9740_v32  ;;  %v9809_v32 = vld [vmem:[#allocation16 + $0x104] ss:$8 sps:$4 sm:$0xff]  }
 0x6fa   : > { %6469 = vmatpush1.bf16.msra.mxu1 %v9738_v34  ;;  %v9807_v34 = vld [vmem:[#allocation16 + $0x100] ss:$8 sps:$4 sm:$0xff]  }
 0x6fb   : > { %6470 = vmatprep.subr.bf16.mxu1 %v9743_v33  ;;  %v9812_v33 = vld [vmem:[#allocation16 + $0x114] ss:$8 sps:$4 sm:$0xff]  }
 0x6fe   : > { %6471 = vmatpush1.bf16.msra.mxu1 %v9741_v48  ;;  %v9815_v48 = vld [vmem:[#allocation16 + $0x124] ss:$8 sps:$4 sm:$0xff]  }
 0x6ff   : > { %6472 = vmatprep.subr.bf16.mxu1 %v9746_v36  ;;  %v9813_v36 = vld [vmem:[#allocation16 + $0x120] ss:$8 sps:$4 sm:$0xff]  }
 0x702   : > { %6473 = vmatpush1.bf16.msra.mxu1 %v9744_v43  ;;  %v9816_v43 = vld [vmem:[#allocation16 + $0x130] ss:$8 sps:$4 sm:$0xff]  }
 0x703   : > { %6474 = vmatprep.subr.bf16.mxu1 %v9749_v58  ;;  %v9821_v58 = vld [vmem:[#allocation16 + $0x144] ss:$8 sps:$4 sm:$0xff]  }
 0x706   : > { %6475 = vmatpush1.bf16.msra.mxu1 %v9747_v7  ;;  %v9827_v7 = vld [vmem:[#allocation16 + $0x164] ss:$8 sps:$4 sm:$0xff]  }
 0x707   : > { %6476 = vmatprep.subr.bf16.mxu1 %v9752_v19  ;;  %v9825_v19 = vld [vmem:[#allocation16 + $0x160] ss:$8 sps:$4 sm:$0xff]  }
 0x70a   : > { %6477 = vmatpush1.bf16.msra.mxu1 %v9750_v6  ;;  %v9833_v6 = vld [vmem:[#allocation16 + $0x184] ss:$8 sps:$4 sm:$0xff]  }
 0x70b   : > { %6478 = vmatprep.subr.bf16.mxu1 %v9755_v17  ;;  %v9831_v17 = vld [vmem:[#allocation16 + $0x180] ss:$8 sps:$4 sm:$0xff]  }
 0x70e   : > { %6479 = vmatpush1.bf16.msra.mxu1 %v9753_v53  ;;  %v9836_v53 = vld [vmem:[#allocation16 + $0x194] ss:$8 sps:$4 sm:$0xff]  }
 0x70f   : > { %6480 = vmatprep.subr.bf16.mxu1 %v9758_v51  ;;  %v9834_v51 = vld [vmem:[#allocation16 + $0x190] ss:$8 sps:$4 sm:$0xff]  }
 0x712   : > { %6481 = vmatpush1.bf16.msra.mxu1 %v9756_v3  ;;  %v9837_v3 = vld [vmem:[#allocation16 + $0x1a0] ss:$8 sps:$4 sm:$0xff]  }
 0x713   : > { %6811 = vmatprep.subr.bf16.mxu1 %v9761_v20  ;;  %v9840_v20 = vld [vmem:[#allocation16 + $0x1b0] ss:$8 sps:$4 sm:$0xff]  }
 0x715   : > { %6483 = vmatmul.mubr.bf16.vlgmr.msra.gmra.mrb[8].mxu1 %v6077_v0  ;;  %v9848_v0 = vld [vmem:[#allocation16 + $0x1d4] ss:$8 sps:$4 sm:$0xff]  }
 0x716   : > { %6812 = vmatpush1.bf16.msra.mxu1 %v9759_v63  ;;  %6843 = vmatprep.mubr.bf16.mxu1 %v11142_v25  ;;  %v9843_v63 = vld [vmem:[#allocation16 + $0x1c0] ss:$8 sps:$4 sm:$0xff]  }
 0x717   : > { %6813 = vmatprep.subr.bf16.mxu1 %v9764_v52  ;;  %v9846_v52 = vld [vmem:[#allocation16 + $0x1d0] ss:$8 sps:$4 sm:$0xff]  }
 0x71a   : > { %6814 = vmatpush1.bf16.msra.mxu1 %v9762_v29  ;;  %v9851_v29 = vld [vmem:[#allocation16 + $0x1e4] ss:$8 sps:$4 sm:$0xff]  }
 0x71b   : > { %6815 = vmatprep.subr.bf16.mxu1 %v9767_v44  ;;  %v9849_v44 = vld [vmem:[#allocation16 + $0x1e0] ss:$8 sps:$4 sm:$0xff]  }
 0x71e   : > { %6816 = vmatpush1.bf16.msra.mxu1 %v9765_v5  ;;  %v9854_v5 = vld [vmem:[#allocation16 + $0x1f4] ss:$8 sps:$4 sm:$0xff]  }
 0x71f   : > { %6817 = vmatprep.subr.bf16.mxu1 %v9770_v11  ;;  %v9852_v11 = vld [vmem:[#allocation16 + $0x1f0] ss:$8 sps:$4 sm:$0xff]  }
 0x722   : > { %6818 = vmatpush1.bf16.msra.mxu1 %v9768_v38  ;;  %v9857_v38 = vld [vmem:[#allocation16 + $0x404] ss:$8 sps:$4 sm:$0xff]  }
 0x723   : > { %6819 = vmatprep.subr.bf16.mxu1 %v9773_v31  ;;  %v9855_v31 = vld [vmem:[#allocation16 + $0x400] ss:$8 sps:$4 sm:$0xff]  }
 0x726   : > { %6820 = vmatpush1.bf16.msra.mxu1 %v9771_v30  ;;  %v9860_v30 = vld [vmem:[#allocation16 + $0x414] ss:$8 sps:$4 sm:$0xff]  }
 0x727   : > { %6821 = vmatprep.subr.bf16.mxu1 %v9776_v41  ;;  %v6963_v41 = vrot.slane %v11142_v25, 1  ;;  %v9870_v25 = vld [vmem:[#allocation16 + $0x450] ss:$8 sps:$4 sm:$0xff]  }
 0x72a   : > { %6822 = vmatpush1.bf16.msra.mxu1 %v9774_v12  ;;  %v9858_v12 = vld [vmem:[#allocation16 + $0x410] ss:$8 sps:$4 sm:$0xff]  }
 0x72b   : > { %6823 = vmatprep.subr.bf16.mxu1 %v9779_v45  ;;  %v9863_v45 = vld [vmem:[#allocation16 + $0x424] ss:$8 sps:$4 sm:$0xff]  }
 0x72e   : > { %6824 = vmatpush1.bf16.msra.mxu1 %v9777_v56  ;;  %v9861_v56 = vld [vmem:[#allocation16 + $0x420] ss:$8 sps:$4 sm:$0xff]  }
 0x72f   : > { %6825 = vmatprep.subr.bf16.mxu1 %v9782_v13  ;;  %v9866_v13 = vld [vmem:[#allocation16 + $0x434] ss:$8 sps:$4 sm:$0xff]  }
 0x732   : > { %6826 = vmatpush1.bf16.msra.mxu1 %v9780_v27  ;;  %v9864_v27 = vld [vmem:[#allocation16 + $0x430] ss:$8 sps:$4 sm:$0xff]  }
 0x733   : > { %6827 = vmatprep.subr.bf16.mxu1 %v9785_v10  ;;  %v9869_v10 = vld [vmem:[#allocation16 + $0x444] ss:$8 sps:$4 sm:$0xff]  }
 0x736   : > { %6828 = vmatpush1.bf16.msra.mxu1 %v9783_v24  ;;  %v9867_v24 = vld [vmem:[#allocation16 + $0x440] ss:$8 sps:$4 sm:$0xff]  }
 0x737   : > { %6829 = vmatprep.subr.bf16.mxu1 %v9788_v16  ;;  %v9872_v16 = vld [vmem:[#allocation16 + $0x454] ss:$8 sps:$4 sm:$0xff]  }
 0x73a   : > { %6830 = vmatpush1.bf16.msra.mxu1 %v9786_v22  ;;  %v9875_v22 = vld [vmem:[#allocation16 + $0x464] ss:$8 sps:$4 sm:$0xff]  }
 0x73b   : > { %6831 = vmatprep.subr.bf16.mxu1 %v9791_v47  ;;  %v9873_v47 = vld [vmem:[#allocation16 + $0x460] ss:$8 sps:$4 sm:$0xff]  }
 0x73e   : > { %6832 = vmatpush1.bf16.msra.mxu1 %v9789_v26  ;;  %v9878_v26 = vld [vmem:[#allocation16 + $0x474] ss:$8 sps:$4 sm:$0xff]  }
 0x73f   : > { %6833 = vmatprep.subr.bf16.mxu1 %v9794_v39  ;;  %v9876_v39 = vld [vmem:[#allocation16 + $0x470] ss:$8 sps:$4 sm:$0xff]  }
 0x742   : > { %6834 = vmatpush1.bf16.msra.mxu1 %v9792_v28  ;;  %v9881_v28 = vld [vmem:[#allocation16 + $0x484] ss:$8 sps:$4 sm:$0xff]  }
 0x743   : > { %6835 = vmatprep.subr.bf16.mxu1 %v9797_v14  ;;  %v9879_v14 = vld [vmem:[#allocation16 + $0x480] ss:$8 sps:$4 sm:$0xff]  }
 0x746   : > { %6836 = vmatpush1.bf16.msra.mxu1 %v9795_v37  ;;  %v9884_v37 = vld [vmem:[#allocation16 + $0x494] ss:$8 sps:$4 sm:$0xff]  }
 0x747   : > { %6837 = vmatprep.subr.bf16.mxu1 %v9800_v40  ;;  %v9882_v40 = vld [vmem:[#allocation16 + $0x490] ss:$8 sps:$4 sm:$0xff]  }
 0x74a   : > { %6838 = vmatpush1.bf16.msra.mxu1 %v9798_v54  ;;  %v9887_v54 = vld [vmem:[#allocation16 + $0x4a4] ss:$8 sps:$4 sm:$0xff]  }
 0x74b   : > { %6839 = vmatprep.subr.bf16.mxu1 %v9803_v55  ;;  %v9885_v55 = vld [vmem:[#allocation16 + $0x4a0] ss:$8 sps:$4 sm:$0xff]  }
 0x74e   : > { %6840 = vmatpush1.bf16.msra.mxu1 %v9801_v35  ;;  %v9890_v35 = vld [vmem:[#allocation16 + $0x4b4] ss:$8 sps:$4 sm:$0xff]  }
 0x74f   : > { %6841 = vmatprep.subr.bf16.mxu1 %v9806_v21  ;;  %v9888_v21 = vld [vmem:[#allocation16 + $0x4b0] ss:$8 sps:$4 sm:$0xff]  }
 0x752   : > { %6842 = vmatpush1.bf16.msra.mxu1 %v9804_v59  ;;  %v9893_v59 = vld [vmem:[#allocation16 + $0x4c4] ss:$8 sps:$4 sm:$0xff]  }
 0x753   : > { %6852 = vmatprep.subr.bf16.mxu1 %v9809_v32  ;;  %v9891_v32 = vld [vmem:[#allocation16 + $0x4c0] ss:$8 sps:$4 sm:$0xff]  }
 0x755   : > { %6844 = vmatmul.mubr.bf16.vlgmr.msra.gmra.mrb[8].mxu1 %v11138_v46 }
 0x756   : > { %6853 = vmatpush1.bf16.msra.mxu1 %v9807_v34  ;;  %6884 = vmatprep.mubr.bf16.mxu1 %v11148_v50  ;;  %v9896_v34 = vld [vmem:[#allocation16 + $0x4d4] ss:$8 sps:$4 sm:$0xff]  }
 0x757   : > { %6854 = vmatprep.subr.bf16.mxu1 %v9812_v33  ;;  %v9894_v33 = vld [vmem:[#allocation16 + $0x4d0] ss:$8 sps:$4 sm:$0xff]  }
 0x75a   : > { %6855 = vmatpush1.bf16.msra.mxu1 %v9810_v8  ;;  %v9899_v8 = vld [vmem:[#allocation16 + $0x4e4] ss:$8 sps:$4 sm:$0xff]  }
 0x75b   : > { %6856 = vmatprep.subr.bf16.mxu1 %v9815_v48  ;;  %v9897_v48 = vld [vmem:[#allocation16 + $0x4e0] ss:$8 sps:$4 sm:$0xff]  }
 0x75e   : > { %6857 = vmatpush1.bf16.msra.mxu1 %v9813_v36  ;;  %v9902_v36 = vld [vmem:[#allocation16 + $0x4f4] ss:$8 sps:$4 sm:$0xff]  }
 0x75f   : > { %6858 = vmatprep.subr.bf16.mxu1 %v9818_v62  ;;  %v9900_v62 = vld [vmem:[#allocation16 + $0x4f0] ss:$8 sps:$4 sm:$0xff]  }
 0x762   : > { %6859 = vmatpush1.bf16.msra.mxu1 %v9816_v43  ;;  %v9905_v43 = vld [vmem:[#allocation16 + $0x504] ss:$8 sps:$4 sm:$0xff]  }
 0x763   : > { %6860 = vmatprep.subr.bf16.mxu1 %v9821_v58  ;;  %v9903_v58 = vld [vmem:[#allocation16 + $0x500] ss:$8 sps:$4 sm:$0xff]  }
 0x766   : > { %6861 = vmatpush1.bf16.msra.mxu1 %v9819_v60  ;;  %v6962_v60 = vrot.slane %v11138_v46, 1  ;;  %v9915_v46 = vld [vmem:[#allocation16 + $0x540] ss:$8 sps:$4 sm:$0xff]  }
 0x767   : > { %6862 = vmatprep.subr.bf16.mxu1 %v9824_v61  ;;  %v9908_v61 = vld [vmem:[#allocation16 + $0x514] ss:$8 sps:$4 sm:$0xff]  }
 0x76a   : > { %6863 = vmatpush1.bf16.msra.mxu1 %v9822_v42  ;;  %v6965_v42 = vrot.slane %v11148_v50, 1  ;;  %v9918_v50 = vld [vmem:[#allocation16 + $0x550] ss:$8 sps:$4 sm:$0xff]  }
 0x76b   : > { %6864 = vmatprep.subr.bf16.mxu1 %v9827_v7  ;;  %v9906_v7 = vld [vmem:[#allocation16 + $0x510] ss:$8 sps:$4 sm:$0xff]  }
 0x76e   : > { %6865 = vmatpush1.bf16.msra.mxu1 %v9825_v19  ;;  %v9911_v19 = vld [vmem:[#allocation16 + $0x524] ss:$8 sps:$4 sm:$0xff]  }
 0x76f   : > { %6866 = vmatprep.subr.bf16.mxu1 %v9830_v4  ;;  %v9909_v4 = vld [vmem:[#allocation16 + $0x520] ss:$8 sps:$4 sm:$0xff]  }
 0x772   : > { %6867 = vmatpush1.bf16.msra.mxu1 %v9828_v57  ;;  %v9914_v57 = vld [vmem:[#allocation16 + $0x534] ss:$8 sps:$4 sm:$0xff]  }
 0x773   : > { %6868 = vmatprep.subr.bf16.mxu1 %v9833_v6  ;;  %v9912_v6 = vld [vmem:[#allocation16 + $0x530] ss:$8 sps:$4 sm:$0xff]  }
 0x776   : > { %6869 = vmatpush1.bf16.msra.mxu1 %v9831_v17  ;;  %v9917_v17 = vld [vmem:[#allocation16 + $0x544] ss:$8 sps:$4 sm:$0xff]  }
 0x777   : > { %6870 = vmatprep.subr.bf16.mxu1 %v9836_v53  ;;  %v9920_v53 = vld [vmem:[#allocation16 + $0x554] ss:$8 sps:$4 sm:$0xff]  }
 0x77a   : > { %6871 = vmatpush1.bf16.msra.mxu1 %v9834_v51  ;;  %v9923_v51 = vld [vmem:[#allocation16 + $0x564] ss:$8 sps:$4 sm:$0xff]  }
 0x77b   : > { %6872 = vmatprep.subr.bf16.mxu1 %v9839_v2  ;;  %v9921_v2 = vld [vmem:[#allocation16 + $0x560] ss:$8 sps:$4 sm:$0xff]  }
 0x77e   : > { %6873 = vmatpush1.bf16.msra.mxu1 %v9837_v3  ;;  %v9926_v3 = vld [vmem:[#allocation16 + $0x574] ss:$8 sps:$4 sm:$0xff]  }
 0x77f   : > { %6874 = vmatprep.subr.bf16.mxu1 %v9842_v23  ;;  %v9924_v23 = vld [vmem:[#allocation16 + $0x570] ss:$8 sps:$4 sm:$0xff]  }
 0x782   : > { %6875 = vmatpush1.bf16.msra.mxu1 %v9840_v20  ;;  %v9929_v20 = vld [vmem:[#allocation16 + $0x584] ss:$8 sps:$4 sm:$0xff]  }
 0x783   : > { %6876 = vmatprep.subr.bf16.mxu1 %v9845_v9  ;;  %v9927_v9 = vld [vmem:[#allocation16 + $0x580] ss:$8 sps:$4 sm:$0xff]  }
 0x786   : > { %6877 = vmatpush1.bf16.msra.mxu1 %v9843_v63  ;;  %v9932_v63 = vld [vmem:[#allocation16 + $0x594] ss:$8 sps:$4 sm:$0xff]  }
 0x787   : > { %6878 = vmatprep.subr.bf16.mxu1 %v9848_v0  ;;  %v9930_v0 = vld [vmem:[#allocation16 + $0x590] ss:$8 sps:$4 sm:$0xff]  }
 0x78a   : > { %6879 = vmatpush1.bf16.msra.mxu1 %v9846_v52  ;;  %v9935_v52 = vld [vmem:[#allocation16 + $0x5a4] ss:$8 sps:$4 sm:$0xff]  }
 0x78b   : > { %6880 = vmatprep.subr.bf16.mxu1 %v9851_v29  ;;  %v9933_v29 = vld [vmem:[#allocation16 + $0x5a0] ss:$8 sps:$4 sm:$0xff]  }
 0x78e   : > { %6881 = vmatpush1.bf16.msra.mxu1 %v9849_v44  ;;  %v9938_v44 = vld [vmem:[#allocation16 + $0x5b4] ss:$8 sps:$4 sm:$0xff]  }
 0x78f   : > { %6882 = vmatprep.subr.bf16.mxu1 %v9854_v5  ;;  %v9936_v5 = vld [vmem:[#allocation16 + $0x5b0] ss:$8 sps:$4 sm:$0xff]  }
 0x792   : > { %6883 = vmatpush1.bf16.msra.mxu1 %v9852_v11  ;;  %v9941_v11 = vld [vmem:[#allocation16 + $0x5c4] ss:$8 sps:$4 sm:$0xff]  }
 0x793   : > { %7290 = vmatprep.subr.bf16.mxu1 %v9857_v38  ;;  %v9939_v38 = vld [vmem:[#allocation16 + $0x5c0] ss:$8 sps:$4 sm:$0xff]  }
 0x795   : > { %6885 = vmatmul.mubr.bf16.vlgmr.msra.gmra.mrb[8].mxu1 %v11159_v49 }
 0x796   : > { %7291 = vmatpush1.bf16.msra.mxu1 %v9855_v31  ;;  %7322 = vmatprep.mubr.bf16.mxu1 %v6963_v41  ;;  %v9944_v31 = vld [vmem:[#allocation16 + $0x5d4] ss:$8 sps:$4 sm:$0xff]   ;;  %v9947_v41 = vld [vmem:[#allocation16 + $0x5e4] ss:$8 sps:$4 sm:$0xff]  }
 0x797   : > { %7292 = vmatprep.subr.bf16.mxu1 %v9860_v30  ;;  %v9942_v30 = vld [vmem:[#allocation16 + $0x5d0] ss:$8 sps:$4 sm:$0xff]  }
 0x79a   : > { %7293 = vmatpush1.bf16.msra.mxu1 %v9858_v12  ;;  %v9945_v12 = vld [vmem:[#allocation16 + $0x5e0] ss:$8 sps:$4 sm:$0xff]  }
 0x79b   : > { %7294 = vmatprep.subr.bf16.mxu1 %v9863_v45  ;;  %v9950_v45 = vld [vmem:[#allocation16 + $0x5f4] ss:$8 sps:$4 sm:$0xff]  }
 0x79e   : > { %7295 = vmatpush1.bf16.msra.mxu1 %v9861_v56  ;;  %v9948_v56 = vld [vmem:[#allocation16 + $0x5f0] ss:$8 sps:$4 sm:$0xff]  }
 0x79f   : > { %7296 = vmatprep.subr.bf16.mxu1 %v9866_v13  ;;  %v6964_v13 = vrot.slane %v11159_v49, 1 }
 0x7a2   : > { %7297 = vmatpush1.bf16.msra.mxu1 %v9864_v27  ;;  %v7374_v27 = vld [vmem:[#allocation17] sm:$0x3] }
 0x7a3   : > { %7298 = vmatprep.subr.bf16.mxu1 %v9869_v10  ;;  %v7388_v10 = vld [vmem:[#allocation19] sm:$0x3] }
 0x7a6   : > { %7299 = vmatpush1.bf16.msra.mxu1 %v9867_v24  ;;  %v7379_v24 = vrot.slane %v7374_v27, %v10769_v15 }
 0x7a7   : > { %7300 = vmatprep.subr.bf16.mxu1 %v9872_v16  ;;  %v7383_v16 = vrot.slane %v7374_v27, %v10772_v18 }
 0x7aa   : > { %7301 = vmatpush1.bf16.msra.mxu1 %v9870_v25  ;;  %v7393_v25 = vrot.slane %v7388_v10, %v10769_v15 }
 0x7ab   : > { %7302 = vmatprep.subr.bf16.mxu1 %v9875_v22 }
 0x7ae   : > { %7303 = vmatpush1.bf16.msra.mxu1 %v9873_v47  ;;  %v7397_v47 = vrot.slane %v7388_v10, %v10772_v18 }
 0x7af   : > { %7304 = vmatprep.subr.bf16.mxu1 %v9878_v26 }
 0x7b2   : > { %7305 = vmatpush1.bf16.msra.mxu1 %v9876_v39 }
 0x7b3   : > { %7306 = vmatprep.subr.bf16.mxu1 %v9881_v28 }
 0x7b6   : > { %7307 = vmatpush1.bf16.msra.mxu1 %v9879_v14 }
 0x7b7   : > { %7308 = vmatprep.subr.bf16.mxu1 %v9884_v37 }
 0x7ba   : > { %7309 = vmatpush1.bf16.msra.mxu1 %v9882_v40 }
 0x7bb   : > { %7310 = vmatprep.subr.bf16.mxu1 %v9887_v54 }
 0x7be   : > { %7311 = vmatpush1.bf16.msra.mxu1 %v9885_v55 }
 0x7bf   : > { %7312 = vmatprep.subr.bf16.mxu1 %v9890_v35 }
 0x7c2   : > { %7313 = vmatpush1.bf16.msra.mxu1 %v9888_v21 }
 0x7c3   : > { %7314 = vmatprep.subr.bf16.mxu1 %v9893_v59 }
 0x7c6   : > { %7315 = vmatpush1.bf16.msra.mxu1 %v9891_v32 }
 0x7c7   : > { %7316 = vmatprep.subr.bf16.mxu1 %v9896_v34 }
 0x7ca   : > { %7317 = vmatpush1.bf16.msra.mxu1 %v9894_v33 }
 0x7cb   : > { %7318 = vmatprep.subr.bf16.mxu1 %v9899_v8 }
 0x7ce   : > { %7319 = vmatpush1.bf16.msra.mxu1 %v9897_v48 }
 0x7cf   : > { %7320 = vmatprep.subr.bf16.mxu1 %v9902_v36 }
 0x7d2   : > { %7321 = vmatpush1.bf16.msra.mxu1 %v9900_v62 }
 0x7d3   : > { %7331 = vmatprep.subr.bf16.mxu1 %v9905_v43 }
 0x7d5   : > { %7323 = vmatmul.mubr.bf16.vlgmr.msra.gmra.mrb[8].mxu1 %v6962_v60 }
 0x7d6   : > { %7332 = vmatpush1.bf16.msra.mxu1 %v9903_v58  ;;  %7363 = vmatprep.mubr.bf16.mxu1 %v6965_v42 }
 0x7d7   : > { %7333 = vmatprep.subr.bf16.mxu1 %v9908_v61 }
 0x7da   : > { %7334 = vmatpush1.bf16.msra.mxu1 %v9906_v7 }
 0x7db   : > { %7335 = vmatprep.subr.bf16.mxu1 %v9911_v19 }
 0x7de   : > { %7336 = vmatpush1.bf16.msra.mxu1 %v9909_v4 }
 0x7df   : > { %7337 = vmatprep.subr.bf16.mxu1 %v9914_v57 }
 0x7e2   : > { %7338 = vmatpush1.bf16.msra.mxu1 %v9912_v6 }
 0x7e3   : > { %7339 = vmatprep.subr.bf16.mxu1 %v9917_v17 }
 0x7e6   : > { %7340 = vmatpush1.bf16.msra.mxu1 %v9915_v46 }
 0x7e7   : > { %7341 = vmatprep.subr.bf16.mxu1 %v9920_v53 }
 0x7ea   : > { %7342 = vmatpush1.bf16.msra.mxu1 %v9918_v50 }
 0x7eb   : > { %7343 = vmatprep.subr.bf16.mxu1 %v9923_v51 }
 0x7ee   : > { %7344 = vmatpush1.bf16.msra.mxu1 %v9921_v2 }
 0x7ef   : > { %7345 = vmatprep.subr.bf16.mxu1 %v9926_v3 }
 0x7f2   : > { %7346 = vmatpush1.bf16.msra.mxu1 %v9924_v23 }
 0x7f3   : > { %7347 = vmatprep.subr.bf16.mxu1 %v9929_v20 }
 0x7f6   : > { %7348 = vmatpush1.bf16.msra.mxu1 %v9927_v9 }
 0x7f7   : > { %7349 = vmatprep.subr.bf16.mxu1 %v9932_v63 }
 0x7fa   : > { %7350 = vmatpush1.bf16.msra.mxu1 %v9930_v0 }
 0x7fb   : > { %7351 = vmatprep.subr.bf16.mxu1 %v9935_v52 }
 0x7fe   : > { %7352 = vmatpush1.bf16.msra.mxu1 %v9933_v29 }
 0x7ff   : > { %7353 = vmatprep.subr.bf16.mxu1 %v9938_v44 }
 0x802   : > { %7354 = vmatpush1.bf16.msra.mxu1 %v9936_v5 }
 0x803   : > { %7355 = vmatprep.subr.bf16.mxu1 %v9941_v11 }
 0x806   : > { %7356 = vmatpush1.bf16.msra.mxu1 %v9939_v38 }
 0x807   : > { %7357 = vmatprep.subr.bf16.mxu1 %v9944_v31 }
 0x80a   : > { %7358 = vmatpush1.bf16.msra.mxu1 %v9942_v30 }
 0x80b   : > { %7359 = vmatprep.subr.bf16.mxu1 %v9947_v41 }
 0x80e   : > { %7360 = vmatpush1.bf16.msra.mxu1 %v9945_v12 }
 0x80f   : > { %7361 = vmatprep.subr.bf16.mxu1 %v9950_v45 }
 0x812   : > { %7362 = vmatpush1.bf16.msra.mxu1 %v9948_v56 }
 0x815   : > { %7364 = vmatmul.mubr.bf16.vlgmr.msra.gmra.mrb[8].mxu1 %v6964_v13 }
 0x8e8   : > { %v7365_v22 = vpop.f32.mrb[8].mxu1 }
 0x8e9   : > { %v7386_v26 = vmul.f32 %v7379_v24, %v7365_v22  ;;  %v7367_v39 = vpop.f32.mrb[9].mxu1 }
 0x8ea   : > { %v7387_v28 = vmul.f32 %v7383_v16, %v7367_v39  ;;  %v7369_v14 = vpop.f32.mrb[10].mxu1 }
 0x8eb   : > { %v7400_v37 = vadd.f32 %v7393_v25, %v7386_v26  ;;  %v7370_v40 = vpop.f32.mrb[11].mxu1 }
 0x8ec   : > { %v7401_v54 = vadd.f32 %v7397_v47, %v7387_v28 }
 0x8ed   : > { %vm7402_vm2 = vcmp.ge.f32.partialorder %v7400_v37, 0.0  ;;  %v7404_v49 = vmul.f32 0.01, %v7400_v37 }
 0x8ee   : > { %vm7403_vm14 = vcmp.ge.f32.partialorder %v7401_v54, 0.0  ;;  %v7405_v55 = vmul.f32 0.01, %v7401_v54 }
 0x8ef   : > { %v7406_v35 = vsel %vm7402_vm2, %v7400_v37, %v7404_v49 }
 0x8f0   : > { %v7407_v21 = vsel %vm7403_vm14, %v7401_v54, %v7405_v55 }
 0x8f1   : > { %v7410_v59 = vcombine.low %v7406_v35, %v7407_v21  ;;  %v7411_v32 = vcombine.high %v7406_v35, %v7407_v21 }
 0x8f3   : > { %v7418_v15 = vrot.slane %v7410_v59, %v10861_v1  ;;  %v7425_v34 = vrot.slane %v7411_v32, %v10861_v1 }
 0x8f5   : > { %v7426_v18 = vcombine.high %v7418_v15, %v7418_v15  ;;  %v7427_v33 = vcombine.high %v7425_v34, %v7425_v34  ;;  %v7434_v8 = vrot.slane %v7418_v15, %v10861_v1  ;;  %v7450_v48 = vrot.slane %v7425_v34, %v10861_v1 }
 0x8f7   : > { %v7435_v36 = vcombine.high %v7434_v8, %v7434_v8  ;;  %v7442_v62 = vrot.slane %v7426_v18, %v10861_v1  ;;  %v7451_v43 = vcombine.high %v7450_v48, %v7450_v48  ;;  %v7458_v58 = vrot.slane %v7427_v33, %v10861_v1 }
 0x8f8   : > { %v7468_v60 = vsel %vm628_vm0, %v7434_v8, -inf  ;;  %v7496_v61 = vsel %vm628_vm0, %v7450_v48, -inf }
 0x8f9   : > { %v7443_v42 = vcombine.high %v7442_v62, %v7442_v62  ;;  %v7459_v7 = vcombine.high %v7458_v58, %v7458_v58  ;;  %v7469_v19 = vrot.slane %v7468_v60, 4  ;;  %v7475_v4 = vsel %vm628_vm0, %v7435_v36, -inf }
 0x8fa   : > { %v7476_v57 = vrot.slane %v7475_v4, 4  ;;  %v7482_v6 = vsel %vm628_vm0, %v7442_v62, -inf  ;;  %v7497_v17 = vrot.slane %v7496_v61, 4  ;;  %v7503_v46 = vsel %vm628_vm0, %v7451_v43, -inf }
 0x8fb   : > { %v7470_v53 = vmax.f32 %v7468_v60, %v7469_v19  ;;  %v7483_v50 = vrot.slane %v7482_v6, 4  ;;  %v7489_v51 = vsel %vm628_vm0, %v7443_v42, -inf  ;;  %v7504_v1 = vrot.slane %v7503_v46, 4 }
 0x8fc   : > { %v7477_v2 = vmax.f32 %v7475_v4, %v7476_v57  ;;  %v7490_v3 = vrot.slane %v7489_v51, 4  ;;  %v7498_v23 = vmax.f32 %v7496_v61, %v7497_v17  ;;  %v7510_v20 = vsel %vm628_vm0, %v7458_v58, -inf }
 0x8fd   : > { %v7471_v9 = vrot.slane %v7470_v53, 2  ;;  %v7484_v63 = vmax.f32 %v7482_v6, %v7483_v50  ;;  %v7505_v0 = vmax.f32 %v7503_v46, %v7504_v1  ;;  %v7511_v52 = vrot.slane %v7510_v20, 4 }
 0x8fe   : > { %v7478_v29 = vrot.slane %v7477_v2, 2  ;;  %v7491_v44 = vmax.f32 %v7489_v51, %v7490_v3  ;;  %v7499_v5 = vrot.slane %v7498_v23, 2  ;;  %v7517_v11 = vsel %vm628_vm0, %v7459_v7, -inf }
 0x8ff   : > { %v7472_v38 = vmax.f32 %v7470_v53, %v7471_v9  ;;  %v7485_v31 = vrot.slane %v7484_v63, 2  ;;  %v7506_v30 = vrot.slane %v7505_v0, 2  ;;  %v7512_v41 = vmax.f32 %v7510_v20, %v7511_v52 }
 0x900   : > { %v7479_v12 = vmax.f32 %v7477_v2, %v7478_v29  ;;  %v7492_v45 = vrot.slane %v7491_v44, 2  ;;  %v7500_v56 = vmax.f32 %v7498_v23, %v7499_v5  ;;  %v7518_v13 = vrot.slane %v7517_v11, 4 }
 0x901   : > { %v7486_v27 = vmax.f32 %v7484_v63, %v7485_v31  ;;  %v7507_v10 = vmax.f32 %v7505_v0, %v7506_v30  ;;  %v7513_v24 = vrot.slane %v7512_v41, 2  ;;  %v7473_v14 = vrot.slane %v7472_v38, 1 }
 0x902   : > { %v7480_v16 = vrot.slane %v7479_v12, 1  ;;  %v7493_v25 = vmax.f32 %v7491_v44, %v7492_v45  ;;  %v7501_v22 = vrot.slane %v7500_v56, 1  ;;  %v7519_v47 = vmax.f32 %v7517_v11, %v7518_v13 }
 0x903   : > { %v7487_v26 = vrot.slane %v7486_v27, 1  ;;  %v7508_v39 = vrot.slane %v7507_v10, 1  ;;  %v7514_v28 = vmax.f32 %v7512_v41, %v7513_v24  ;;  %v7474_v15 = vmax.f32 %v7472_v38, %v7473_v14 }
 0x904   : > { %v7494_v37 = vrot.slane %v7493_v25, 1  ;;  %v7520_v40 = vrot.slane %v7519_v47, 2  ;;  %v7481_v54 = vmax.f32 %v7479_v12, %v7480_v16  ;;  %v7502_v49 = vmax.f32 %v7500_v56, %v7501_v22 }
 0x905   : > { %v7509_v55 = vmax.f32 %v7507_v10, %v7508_v39  ;;  %v7488_v35 = vmax.f32 %v7486_v27, %v7487_v26  ;;  %v7515_v59 = vrot.slane %v7514_v28, 1  ;;  %vm7537_vm0 = vcmask 1041409  }
 0x906   : > { %v7495_v21 = vmax.f32 %v7493_v25, %v7494_v37  ;;  %v7521_v32 = vmax.f32 %v7519_v47, %v7520_v40  ;;  %v7532_v8 = vcombine.low %v7474_v15, %v7481_v54 }
 0x907   : > { %v7534_v33 = vcombine.low %v7502_v49, %v7509_v55  ;;  %v7516_v48 = vmax.f32 %v7514_v28, %v7515_v59 }
 0x908   : > { %v7522_v34 = vrot.slane %v7521_v32, 1  ;;  %v7533_v18 = vcombine.low %v7488_v35, %v7495_v21 }
 0x909   : > { %v7540_v60 = vrot.slane %v7534_v33, 6 }
 0x90a   : > { %v7523_v36 = vmax.f32 %v7521_v32, %v7522_v34  ;;  %v7536_v62 = vrot.slane %v7533_v18, 7 }
 0x90c   : > { %v7535_v43 = vcombine.low %v7516_v48, %v7523_v36  ;;  %v7538_v58 = vsel %vm7537_vm0, %v7536_v62, %v7532_v8 }
 0x90d   : > { %v7539_v61 = vsel %vm2934_vm7, %v7536_v62, %v7538_v58 }
 0x90e   : > { %v7541_v42 = vsel %vm2928_vm4, %v7540_v60, %v7539_v61  ;;  %v7543_v7 = vrot.slane %v7535_v43, 5 }
 0x90f   : > { %v7542_v19 = vsel %vm2936_vm8, %v7540_v60, %v7541_v42 }
 0x910   : > { %v7544_v4 = vsel %vm2930_vm5, %v7543_v7, %v7542_v19 }
 0x911   : > { %v7545_v57 = vsel %vm2938_vm9, %v7543_v7, %v7544_v4 }
 0x912   : > { %7547 = vst [vmem:[%s577_s15] sm:$0xff] %v7545_v57 }
 0x913   : > { %10272 = shalt.err (!%p10269_p10)
}
 0x914   : > { %s10273_s25 = scalar_lea.hbm %s11200_s23, 128  ;;  %s10277_s24 = scalar_lea.hbm %s11306_s30, 256 }
 0x915   : > { %p10274_p2 = scmp.ne.s32.totalorder %s11200_s23, %s10273_s25  ;;  %p10278_p7 = scmp.lt.u32.totalorder %s11200_s23, %s11306_s30 }
 0x916   : > { %p10279_p8 = scmp.lt.u32.totalorder %s10277_s24, %s10273_s25  ;;  %p10281_p13 = scmp.lt.u32.totalorder %s10273_s25, %s11200_s23 }
 0x917   : > { %p10275_p3 = pnand %p10274_p2, %p11307_p1 }
 0x918   : > { %p10280_p11 = por %p10279_p8, %p10278_p7 }
 0x919   : > { %p10276_p4 = pneg %p10275_p3 }
 0x91a   : > { %p10282_p0 = por %p10281_p13, %p10280_p11 }
 0x91c   : > { %p10283_p6 = pnand %p10282_p0, %p10276_p4 }
 0x91e   : > { %10286 = shalt.err (!%p10283_p6)
}
 0x91f   : > { %8680 = dma.vmem_to_hbm [thread:$0]  (%p11307_p1), %s11202_s22, 128, %s11200_s23, %s7549_s29  }
 0x920 PF: > { %s11308_s3 = sld [smem:[#allocation31_spill]]  ;;  %s11309_s21 = sld [smem:[#allocation28_spill]] }
 0x921   : > { %s11310_s15 = sld [smem:[#allocation35_spill]] }
 0x926   : > { %p8742_p5 = scmp.ge.s32.totalorder %s11308_s3, 2  ;;  %s7575_s16 = sand.u32 1, %s11309_s21  }
 0x927   : > { %p11311_p9 = scmp.ne.s32.totalorder %s11310_s15, 0  ;;  %s7576_s20 = scalar_lea.sflag [#allocation4], %s7575_s16 }
 0x929   : > { %p8717_p12 = pnand %p8742_p5, %p11311_p9 }
 0x92b   : > { %10328 = dma.done.wait (!%p8717_p12), %s7576_s20, 128  }
 0x92c   : > { %10330 = vsyncadd (!%p8717_p12), %s7576_s20, 4294967168  ;;  %s11312_s28 = sld [smem:[#allocation32_spill]]  ;;  %s11313_s25 = sld [smem:[#allocation29_spill]] }
 0x92d   : > { %s11314_s26 = sld [smem:[#allocation30_spill]]  ;;  %s11315_s27 = sld [smem:[#allocation33_spill]] }
 0x932   : > { %p29_p10 = scmp.ge.s32.totalorder %s11312_s28, 4  }
 0x934   :  { %31 = sbr.rel (!%p29_p10) target bundleno = 13 (0xd), region = 160 }
 0x93b   :  { %7581 = vsyncpa [#allocation3], 1 }
 0x93c   :  { %7583 = vsyncpa [#allocation3 + $0x1], 1 }
 0x93d   :  { %7584 = vsyncpa [#allocation6], 1 }
 0x93e   :  { %7585 = vsyncpa [#allocation9], 1 }
 0x93f   :  { %7586 = vsyncpa [#allocation12], 1 }
 0x940   :  { %7587 = vsyncpa [#allocation15], 1 }
 0x941   :  { %7588 = vsyncpa [#allocation18], 1 }
 0x942   :  { %7589 = vsyncpa [#allocation4], 1 }
 0x943   :  { %7591 = vsyncpa [#allocation4 + $0x1], 1 }

</bundles_post_ra>
